<compile_context>
chip_gen: v5e
topology: v5e:2x2
jax: 0.10.0
libtpu: 0.0.40
codegen_flags: <defaults>
</compile_context>

<pallas_src>
import functools
import math

import jax
import jax.numpy as jnp
from jax.experimental import pallas as pl
from jax.experimental.pallas import tpu as pltpu


SEQ = 5       # past matches per branch == conv channels == LSTM timesteps
CONV_L = 18   # conv length == LSTM input feature size
CONV_K = 3    # conv kernel size


# ----------------------------- small helpers --------------------------------

def _relu(x):
    return jnp.maximum(x, 0.0)


def _gelu(x):
    # TODO(synk): PyTorch nn.GELU() default is the exact erf form; the tanh
    # approximation is used here for robust Mosaic (EUP) lowering.
    return jax.nn.gelu(x, approximate=True)


def _sigmoid(x):
    # exp + approximate reciprocal both run on the EUP slot, freeing the VPU in the
    # serialized LSTM recurrence.
    return pl.reciprocal(1.0 + jnp.exp(-x), approx=True)


def _f32dot(a, b):
    return jnp.dot(a, b, preferred_element_type=jnp.float32)


def _vm_spec(arr):
    """Whole-array VMEM block, resident across all grid steps."""
    return pl.BlockSpec(arr.shape, lambda g, nd=arr.ndim: (0,) * nd)


# ---------------------- fused PastAnalyser kernel ----------------------------

def _past_kernel(ep_ref, xp_ref,
                 w1a_ref, b1a_ref, w1b_ref, b1b_ref,
                 convw_ref, convb_ref,
                 wih0_ref, whh0_ref, bl0_ref,
                 wih1_ref, whh1_ref, bl1_ref,
                 wih2_ref, whh2_ref, bl2_ref,
                 w2a_ref, b2a_ref, w2b_ref, b2b_ref,
                 o_ref,
                 xbuf, hbuf0, hbuf1,
                 *, B, d):
    ep = ep_ref[0]          # (SEQ*B, 2d)   rows: s*B + n  (embedded team pairs)
    xp = xp_ref[0]          # (SEQ*B, 20)   rows: ci*B + n (conv input, length padded)

    # ---- fc_block1 on the embedded team pairs (strength comparison), GELU ----
    s_h = _gelu(_f32dot(ep, w1a_ref[...]) + b1a_ref[...])
    strength = _gelu(_f32dot(s_h, w1b_ref[...]) + b1b_ref[...])   # (SEQ*B, d), s-major

    # ---- Conv1d(5, 5, 3, padding=1), fused: 75 scalar*vector FMAs ------------
    # Output channel t becomes LSTM timestep t; result stacked t-major in xbuf.
    for t in range(SEQ):
        acc = jnp.zeros((B, CONV_L), jnp.float32)
        for ci in range(SEQ):
            for k in range(CONV_K):
                w = convw_ref[t * (SEQ * CONV_K) + ci * CONV_K + k]
                acc = acc + w * xp[ci * B:(ci + 1) * B, k:k + CONV_L]
        xbuf[t * B:(t + 1) * B, :] = acc + convb_ref[t]

    # ---- 3-layer LSTM; input projection hoisted out of the t-loop ------------
    def run_layer(gates_in, whh, out_buf):
        h = jnp.zeros((B, d), jnp.float32)
        c = jnp.zeros((B, d), jnp.float32)
        hs = []
        for t in range(SEQ):
            g = gates_in[t * B:(t + 1) * B, :] + _f32dot(h, whh)
            i_g = _sigmoid(g[:, 0 * d:1 * d])
            f_g = _sigmoid(g[:, 1 * d:2 * d])
            g_g = jnp.tanh(g[:, 2 * d:3 * d])
            o_g = _sigmoid(g[:, 3 * d:4 * d])
            c = f_g * c + i_g * g_g
            h = o_g * jnp.tanh(c)
            if out_buf is not None:
                out_buf[t * B:(t + 1) * B, :] = h
            hs.append(h)
        return hs

    gin0 = _f32dot(xbuf[...], wih0_ref[...]) + bl0_ref[...]    # (SEQ*B, 4d)
    run_layer(gin0, whh0_ref[...], hbuf0)
    gin1 = _f32dot(hbuf0[...], wih1_ref[...]) + bl1_ref[...]
    run_layer(gin1, whh1_ref[...], hbuf1)
    gin2 = _f32dot(hbuf1[...], wih2_ref[...]) + bl2_ref[...]
    hs2 = run_layer(gin2, whh2_ref[...], None)                 # list of (B, d)

    # ---- add strength, flatten over (seq, d) and fc_block2 (GELU) ------------
    # flatten(-2,-1) -> columns are s-major, so the first matmul decomposes into
    # per-s row blocks of the weight (avoids any lane concatenation).
    w2a = w2a_ref[...]
    acc2 = jnp.zeros((B, SEQ * d), jnp.float32) + b2a_ref[...]
    for s in range(SEQ):
        z_s = strength[s * B:(s + 1) * B, :] + hs2[s]
        acc2 = acc2 + _f32dot(z_s, w2a[s * d:(s + 1) * d, :])
    h2 = _gelu(acc2)
    o_ref[0, :, :] = _gelu(_f32dot(h2, w2b_ref[...]) + b2b_ref[...])   # (B, d)


def past_analyser_call(pa, ep, xpad, B, d):
    """ep: (3, SEQ*B, 2d) s-major rows; xpad: (3, SEQ*B, 20) ci-major rows."""
    w1a, b1a, w1b, b1b = pa["fc1"]
    w2a, b2a, w2b, b2b = pa["fc2"]
    (wih0, whh0, bl0), (wih1, whh1, bl1), (wih2, whh2, bl2) = pa["lstm"]

    head = [w1a, b1a, w1b, b1b]
    tail = [wih0, whh0, bl0, wih1, whh1, bl1, wih2, whh2, bl2,
            w2a, b2a, w2b, b2b]

    in_specs = (
        [pl.BlockSpec((1, SEQ * B, 2 * d), lambda g: (g, 0, 0)),
         pl.BlockSpec((1, SEQ * B, CONV_L + 2), lambda g: (g, 0, 0))]
        + [_vm_spec(a) for a in head]
        + [pl.BlockSpec(memory_space=pltpu.MemorySpace.SMEM),   # conv weights (75,)
           pl.BlockSpec(memory_space=pltpu.MemorySpace.SMEM)]   # conv bias (5,)
        + [_vm_spec(a) for a in tail]
    )

    kernel = functools.partial(_past_kernel, B=B, d=d)
    return pl.pallas_call(
        kernel,
        grid=(3,),
        in_specs=in_specs,
        out_specs=pl.BlockSpec((1, B, d), lambda g: (g, 0, 0)),
        out_shape=jax.ShapeDtypeStruct((3, B, d), jnp.float32),
        scratch_shapes=[
            pltpu.VMEM((SEQ * B, CONV_L), jnp.float32),   # stacked conv outputs
            pltpu.VMEM((SEQ * B, d), jnp.float32),        # layer-0 hidden sequence
            pltpu.VMEM((SEQ * B, d), jnp.float32),        # layer-1 hidden sequence
        ],
        compiler_params=pltpu.CompilerParams(
            dimension_semantics=("parallel",)),
    )(ep, xpad, *head, pa["conv_w"], pa["conv_b"], *tail)


# ----------------------- fused main-branch kernel ----------------------------

def _main_kernel(feats_ref, embm_ref, past_ref,
                 w1a_ref, b1a_ref, w1b_ref, b1b_ref,
                 w2a_ref, b2a_ref, w2b_ref, b2b_ref,
                 w3a_ref, b3a_ref, w3b_ref, b3b_ref,
                 o_ref, *, B, d):
    # fc_block1 (ReLU) on the 7 match features; rows are t-major (t*B + n).
    x = _relu(_f32dot(feats_ref[...], w1a_ref[...]) + b1a_ref[...])
    x = _relu(_f32dot(x, w1b_ref[...]) + b1b_ref[...])          # (2B, d)
    x = x + embm_ref[...]                                       # + team embeddings

    # flatten over (t, d) and fc_block2 (ReLU), decomposed per t.
    w2a = w2a_ref[...]
    acc = jnp.zeros((B, 4 * d), jnp.float32) + b2a_ref[...]
    for t in range(2):
        acc = acc + _f32dot(x[t * B:(t + 1) * B, :], w2a[t * d:(t + 1) * d, :])
    xm = _relu(_f32dot(_relu(acc), w2b_ref[...]) + b2b_ref[...])   # (B, d)

    # concat([x, ab, a, b], -1) + fc_block3, decomposed over the 4 branches.
    w3a = w3a_ref[...]
    acc3 = jnp.zeros((B, 8 * d), jnp.float32) + b3a_ref[...]
    acc3 = acc3 + _f32dot(xm, w3a[0:d, :])
    for g in range(3):
        acc3 = acc3 + _f32dot(past_ref[g], w3a[(g + 1) * d:(g + 2) * d, :])
    logits = _f32dot(_relu(acc3), w3b_ref[...]) + b3b_ref[...]     # (B, 3)

    m = jnp.max(logits, axis=-1, keepdims=True)
    e = jnp.exp(logits - m)
    o_ref[...] = e / jnp.sum(e, axis=-1, keepdims=True)


def main_call(params, feats_m, embm, past_out, B, d):
    w1a, b1a, w1b, b1b = params["fc1"]
    w2a, b2a, w2b, b2b = params["fc2"]
    w3a, b3a, w3b, b3b = params["fc3"]
    args = (feats_m, embm, past_out,
            w1a, b1a, w1b, b1b, w2a, b2a, w2b, b2b, w3a, b3a, w3b, b3b)
    kernel = functools.partial(_main_kernel, B=B, d=d)
    return pl.pallas_call(
        kernel,
        grid=(1,),
        in_specs=[_vm_spec(a) for a in args],
        out_specs=pl.BlockSpec((B, 3), lambda i: (0, 0)),
        out_shape=jax.ShapeDtypeStruct((B, 3), jnp.float32),
    )(*args)


# -------------------------------- Model --------------------------------------

def model_forward(params, match, matches_ab, matches_a, matches_b):
    emb = params["emb"]
    d = emb.shape[1]
    B = match.shape[0]

    # --- past-analyser glue: stack branches, embedding gathers, layout --------
    past = jnp.stack([matches_ab, matches_a, matches_b], axis=0)       # (3,B,5,20)
    teams = past[..., :2].astype(jnp.int32)                            # (3,B,5,2)
    ep = jnp.take(emb, teams, axis=0).reshape(3, B, SEQ, 2 * d)        # flatten(-2)
    ep = ep.transpose(0, 2, 1, 3).reshape(3, SEQ * B, 2 * d)           # rows s*B+n
    feats = past[..., 2:]                                              # (3,B,5,18) NCL
    xpad = jnp.pad(feats, ((0, 0), (0, 0), (0, 0), (1, 1)))            # conv padding=1
    xpad = xpad.transpose(0, 2, 1, 3).reshape(3, SEQ * B, CONV_L + 2)  # rows ci*B+n

    past_out = past_analyser_call(params["pa"], ep, xpad, B, d)        # (3,B,d)

    # --- main branch glue ------------------------------------------------------
    ids = match[:, :, 0].astype(jnp.int32)                             # (B,2)
    embm = jnp.take(emb, ids, axis=0).transpose(1, 0, 2).reshape(2 * B, d)  # rows t*B+n
    feats_m = match[:, :, 1:].transpose(1, 0, 2).reshape(2 * B, 7)          # rows t*B+n

    return main_call(params, feats_m, embm, past_out, B, d)            # (B, 3)


# --------------------------- parameter init ----------------------------------

def init_params(key, emb_size, d):
    keys = iter(jax.random.split(key, 64))

    def lin(in_d, out_d):
        w = jax.random.normal(next(keys), (in_d, out_d), jnp.float32) / math.sqrt(in_d)
        b = jax.random.normal(next(keys), (1, out_d), jnp.float32) * 0.01
        return w, b

    params = {}
    params["emb"] = jax.random.normal(next(keys), (emb_size + 1, d), jnp.float32) * 0.1
    params["fc1"] = lin(7, 2 * d) + lin(2 * d, d)
    params["fc2"] = lin(2 * d, 4 * d) + lin(4 * d, d)
    params["fc3"] = lin(4 * d, 8 * d) + lin(8 * d, 3)

    pa = {}
    pa["fc1"] = lin(2 * d, 3 * d) + lin(3 * d, d)
    pa["fc2"] = lin(SEQ * d, SEQ * d) + lin(SEQ * d, d)
    wconv = jax.random.normal(next(keys), (SEQ, SEQ, CONV_K), jnp.float32) * 0.2
    pa["conv_w"] = wconv.reshape(-1)                       # (75,) index = t*15+ci*3+k
    pa["conv_b"] = jax.random.normal(next(keys), (SEQ,), jnp.float32) * 0.01
    lstm = []
    in_sizes = [CONV_L, d, d]
    for l in range(3):
        wih = jax.random.normal(next(keys), (in_sizes[l], 4 * d), jnp.float32) / math.sqrt(d)
        whh = jax.random.normal(next(keys), (d, 4 * d), jnp.float32) / math.sqrt(d)
        # TODO(synk): PyTorch LSTM has separate b_ih and b_hh; a single (summed) bias
        # is used here, which is equivalent for the forward pass.
        bl = jax.random.normal(next(keys), (1, 4 * d), jnp.float32) * 0.01
        lstm.append((wih, whh, bl))
    pa["lstm"] = lstm
    params["pa"] = pa
    return params


# ---------------------------------- main --------------------------------------

if __name__ == "__main__":
    B, d_model, emb_size = 2, 32, 10
    key = jax.random.PRNGKey(0)
    k_match, k_ab, k_a, k_b, k_params = jax.random.split(key, 5)

    def make_match(k):
        ki, kf = jax.random.split(k)
        ids = jax.random.randint(ki, (B, 2, 1), 0, emb_size + 1).astype(jnp.float32)
        feats = jax.random.normal(kf, (B, 2, 7), jnp.float32)
        return jnp.concatenate([ids, feats], axis=-1)          # (B, 2, 8)

    def make_past(k):
        ki, kf = jax.random.split(k)
        ids = jax.random.randint(ki, (B, SEQ, 2), 0, emb_size + 1).astype(jnp.float32)
        feats = jax.random.normal(kf, (B, SEQ, CONV_L), jnp.float32)
        return jnp.concatenate([ids, feats], axis=-1)          # (B, 5, 20)

    match = make_match(k_match)
    matches_ab = make_past(k_ab)
    matches_a = make_past(k_a)
    matches_b = make_past(k_b)
    params = init_params(k_params, emb_size, d_model)

    fwd = jax.jit(model_forward)
    out = fwd(params, match, matches_ab, matches_a, matches_b)
    out = jax.block_until_ready(out)

    assert out.shape == (B, 3), out.shape
    assert bool(jnp.all(jnp.isfinite(out)))
    # softmax rows sum to 1
    assert bool(jnp.allclose(jnp.sum(out, axis=-1), 1.0, atol=1e-5))
    print("KERNEL_OK")
</pallas_src>

<mosaic_0001>
module attributes {stable_mosaic.version = 11 : i64} {
  func.func @_main_kernel(%arg0: i32, %arg1: memref<4x7xf32, #tpu.memory_space<vmem>>, %arg2: memref<4x32xf32, #tpu.memory_space<vmem>>, %arg3: memref<3x2x32xf32, #tpu.memory_space<vmem>>, %arg4: memref<7x64xf32, #tpu.memory_space<vmem>>, %arg5: memref<1x64xf32, #tpu.memory_space<vmem>>, %arg6: memref<64x32xf32, #tpu.memory_space<vmem>>, %arg7: memref<1x32xf32, #tpu.memory_space<vmem>>, %arg8: memref<64x128xf32, #tpu.memory_space<vmem>>, %arg9: memref<1x128xf32, #tpu.memory_space<vmem>>, %arg10: memref<128x32xf32, #tpu.memory_space<vmem>>, %arg11: memref<1x32xf32, #tpu.memory_space<vmem>>, %arg12: memref<128x256xf32, #tpu.memory_space<vmem>>, %arg13: memref<1x256xf32, #tpu.memory_space<vmem>>, %arg14: memref<256x3xf32, #tpu.memory_space<vmem>>, %arg15: memref<1x3xf32, #tpu.memory_space<vmem>>, %arg16: memref<2x3xf32, #tpu.memory_space<vmem>>) attributes {dimension_semantics = [#tpu.dimension_semantics<arbitrary>], iteration_bounds = array<i64: 1>, scalar_prefetch = 0 : i64, scratch_operands = 0 : i64, tpu.core_type = #tpu.core_type<tc>, window_params = [{pipeline_mode = #tpu.pipeline_mode<synchronous>, transform_indices = @transform_0, window_bounds = array<i64: 4, 7>}, {pipeline_mode = #tpu.pipeline_mode<synchronous>, transform_indices = @transform_1, window_bounds = array<i64: 4, 32>}, {pipeline_mode = #tpu.pipeline_mode<synchronous>, transform_indices = @transform_2, window_bounds = array<i64: 3, 2, 32>}, {pipeline_mode = #tpu.pipeline_mode<synchronous>, transform_indices = @transform_3, window_bounds = array<i64: 7, 64>}, {pipeline_mode = #tpu.pipeline_mode<synchronous>, transform_indices = @transform_4, window_bounds = array<i64: 1, 64>}, {pipeline_mode = #tpu.pipeline_mode<synchronous>, transform_indices = @transform_5, window_bounds = array<i64: 64, 32>}, {pipeline_mode = #tpu.pipeline_mode<synchronous>, transform_indices = @transform_6, window_bounds = array<i64: 1, 32>}, {pipeline_mode = #tpu.pipeline_mode<synchronous>, transform_indices = @transform_7, window_bounds = array<i64: 64, 128>}, {pipeline_mode = #tpu.pipeline_mode<synchronous>, transform_indices = @transform_8, window_bounds = array<i64: 1, 128>}, {pipeline_mode = #tpu.pipeline_mode<synchronous>, transform_indices = @transform_9, window_bounds = array<i64: 128, 32>}, {pipeline_mode = #tpu.pipeline_mode<synchronous>, transform_indices = @transform_10, window_bounds = array<i64: 1, 32>}, {pipeline_mode = #tpu.pipeline_mode<synchronous>, transform_indices = @transform_11, window_bounds = array<i64: 128, 256>}, {pipeline_mode = #tpu.pipeline_mode<synchronous>, transform_indices = @transform_12, window_bounds = array<i64: 1, 256>}, {pipeline_mode = #tpu.pipeline_mode<synchronous>, transform_indices = @transform_13, window_bounds = array<i64: 256, 3>}, {pipeline_mode = #tpu.pipeline_mode<synchronous>, transform_indices = @transform_14, window_bounds = array<i64: 1, 3>}, {pipeline_mode = #tpu.pipeline_mode<synchronous>, transform_indices = @transform_15, window_bounds = array<i64: 2, 3>}]} {
    %c0 = arith.constant 0 : index
    %c0_0 = arith.constant 0 : index
    %0 = vector.load %arg1[%c0, %c0_0] : memref<4x7xf32, #tpu.memory_space<vmem>>, vector<4x7xf32>
    %c0_1 = arith.constant 0 : index
    %c0_2 = arith.constant 0 : index
    %1 = vector.load %arg4[%c0_1, %c0_2] : memref<7x64xf32, #tpu.memory_space<vmem>>, vector<7x64xf32>
    %cst = arith.constant dense<0.000000e+00> : vector<4x64xf32>
    %2 = tpu.matmul %0, %1, %cst {dimension_numbers = #tpu.dot_dimension_numbers<[1], [0], [0], [1], [0, 0, 1, 1], [], []>} : vector<4x7xf32>, vector<7x64xf32>, vector<4x64xf32> -> vector<4x64xf32>
    %c0_3 = arith.constant 0 : index
    %c0_4 = arith.constant 0 : index
    %3 = vector.load %arg5[%c0_3, %c0_4] : memref<1x64xf32, #tpu.memory_space<vmem>>, vector<1x64xf32>
    %4 = vector.broadcast %3 : vector<1x64xf32> to vector<4x64xf32>
    %5 = arith.addf %2, %4 : vector<4x64xf32>
    %cst_5 = arith.constant 0.000000e+00 : f32
    %6 = vector.broadcast %cst_5 : f32 to vector<4x64xf32>
    %7 = arith.maximumf %5, %6 : vector<4x64xf32>
    %c0_6 = arith.constant 0 : index
    %c0_7 = arith.constant 0 : index
    %8 = vector.load %arg6[%c0_6, %c0_7] : memref<64x32xf32, #tpu.memory_space<vmem>>, vector<64x32xf32>
    %cst_8 = arith.constant dense<0.000000e+00> : vector<4x32xf32>
    %9 = tpu.matmul %7, %8, %cst_8 {dimension_numbers = #tpu.dot_dimension_numbers<[1], [0], [0], [1], [0, 0, 1, 1], [], []>} : vector<4x64xf32>, vector<64x32xf32>, vector<4x32xf32> -> vector<4x32xf32>
    %c0_9 = arith.constant 0 : index
    %c0_10 = arith.constant 0 : index
    %10 = vector.load %arg7[%c0_9, %c0_10] : memref<1x32xf32, #tpu.memory_space<vmem>>, vector<1x32xf32>
    %11 = vector.broadcast %10 : vector<1x32xf32> to vector<4x32xf32>
    %12 = arith.addf %9, %11 : vector<4x32xf32>
    %cst_11 = arith.constant 0.000000e+00 : f32
    %13 = vector.broadcast %cst_11 : f32 to vector<4x32xf32>
    %14 = arith.maximumf %12, %13 : vector<4x32xf32>
    %c0_12 = arith.constant 0 : index
    %c0_13 = arith.constant 0 : index
    %15 = vector.load %arg2[%c0_12, %c0_13] : memref<4x32xf32, #tpu.memory_space<vmem>>, vector<4x32xf32>
    %16 = arith.addf %14, %15 : vector<4x32xf32>
    %c0_14 = arith.constant 0 : index
    %c0_15 = arith.constant 0 : index
    %17 = vector.load %arg8[%c0_14, %c0_15] : memref<64x128xf32, #tpu.memory_space<vmem>>, vector<64x128xf32>
    %cst_16 = arith.constant 0.000000e+00 : f32
    %18 = vector.broadcast %cst_16 : f32 to vector<2x128xf32>
    %c0_17 = arith.constant 0 : index
    %c0_18 = arith.constant 0 : index
    %19 = vector.load %arg9[%c0_17, %c0_18] : memref<1x128xf32, #tpu.memory_space<vmem>>, vector<1x128xf32>
    %20 = vector.broadcast %19 : vector<1x128xf32> to vector<2x128xf32>
    %21 = arith.addf %18, %20 : vector<2x128xf32>
    %22 = vector.extract_strided_slice %16 {offsets = [0, 0], sizes = [2, 32], strides = [1, 1]} : vector<4x32xf32> to vector<2x32xf32>
    %23 = vector.extract_strided_slice %17 {offsets = [0, 0], sizes = [32, 128], strides = [1, 1]} : vector<64x128xf32> to vector<32x128xf32>
    %cst_19 = arith.constant dense<0.000000e+00> : vector<2x128xf32>
    %24 = tpu.matmul %22, %23, %cst_19 {dimension_numbers = #tpu.dot_dimension_numbers<[1], [0], [0], [1], [0, 0, 1, 1], [], []>} : vector<2x32xf32>, vector<32x128xf32>, vector<2x128xf32> -> vector<2x128xf32>
    %25 = arith.addf %21, %24 : vector<2x128xf32>
    %26 = vector.extract_strided_slice %16 {offsets = [2, 0], sizes = [2, 32], strides = [1, 1]} : vector<4x32xf32> to vector<2x32xf32>
    %27 = vector.extract_strided_slice %17 {offsets = [32, 0], sizes = [32, 128], strides = [1, 1]} : vector<64x128xf32> to vector<32x128xf32>
    %cst_20 = arith.constant dense<0.000000e+00> : vector<2x128xf32>
    %28 = tpu.matmul %26, %27, %cst_20 {dimension_numbers = #tpu.dot_dimension_numbers<[1], [0], [0], [1], [0, 0, 1, 1], [], []>} : vector<2x32xf32>, vector<32x128xf32>, vector<2x128xf32> -> vector<2x128xf32>
    %29 = arith.addf %25, %28 : vector<2x128xf32>
    %cst_21 = arith.constant 0.000000e+00 : f32
    %30 = vector.broadcast %cst_21 : f32 to vector<2x128xf32>
    %31 = arith.maximumf %29, %30 : vector<2x128xf32>
    %c0_22 = arith.constant 0 : index
    %c0_23 = arith.constant 0 : index
    %32 = vector.load %arg10[%c0_22, %c0_23] : memref<128x32xf32, #tpu.memory_space<vmem>>, vector<128x32xf32>
    %cst_24 = arith.constant dense<0.000000e+00> : vector<2x32xf32>
    %33 = tpu.matmul %31, %32, %cst_24 {dimension_numbers = #tpu.dot_dimension_numbers<[1], [0], [0], [1], [0, 0, 1, 1], [], []>} : vector<2x128xf32>, vector<128x32xf32>, vector<2x32xf32> -> vector<2x32xf32>
    %c0_25 = arith.constant 0 : index
    %c0_26 = arith.constant 0 : index
    %34 = vector.load %arg11[%c0_25, %c0_26] : memref<1x32xf32, #tpu.memory_space<vmem>>, vector<1x32xf32>
    %35 = vector.broadcast %34 : vector<1x32xf32> to vector<2x32xf32>
    %36 = arith.addf %33, %35 : vector<2x32xf32>
    %cst_27 = arith.constant 0.000000e+00 : f32
    %37 = vector.broadcast %cst_27 : f32 to vector<2x32xf32>
    %38 = arith.maximumf %36, %37 : vector<2x32xf32>
    %c0_28 = arith.constant 0 : index
    %c0_29 = arith.constant 0 : index
    %39 = vector.load %arg12[%c0_28, %c0_29] : memref<128x256xf32, #tpu.memory_space<vmem>>, vector<128x256xf32>
    %cst_30 = arith.constant 0.000000e+00 : f32
    %40 = vector.broadcast %cst_30 : f32 to vector<2x256xf32>
    %c0_31 = arith.constant 0 : index
    %c0_32 = arith.constant 0 : index
    %41 = vector.load %arg13[%c0_31, %c0_32] : memref<1x256xf32, #tpu.memory_space<vmem>>, vector<1x256xf32>
    %42 = vector.broadcast %41 : vector<1x256xf32> to vector<2x256xf32>
    %43 = arith.addf %40, %42 : vector<2x256xf32>
    %44 = vector.extract_strided_slice %39 {offsets = [0, 0], sizes = [32, 256], strides = [1, 1]} : vector<128x256xf32> to vector<32x256xf32>
    %cst_33 = arith.constant dense<0.000000e+00> : vector<2x256xf32>
    %45 = tpu.matmul %38, %44, %cst_33 {dimension_numbers = #tpu.dot_dimension_numbers<[1], [0], [0], [1], [0, 0, 1, 1], [], []>} : vector<2x32xf32>, vector<32x256xf32>, vector<2x256xf32> -> vector<2x256xf32>
    %46 = arith.addf %43, %45 : vector<2x256xf32>
    %c0_34 = arith.constant 0 : index
    %c0_35 = arith.constant 0 : index
    %c0_36 = arith.constant 0 : index
    %47 = vector.load %arg3[%c0_34, %c0_35, %c0_36] : memref<3x2x32xf32, #tpu.memory_space<vmem>>, vector<1x2x32xf32>
    %48 = vector.shape_cast %47 : vector<1x2x32xf32> to vector<2x32xf32>
    %49 = vector.extract_strided_slice %39 {offsets = [32, 0], sizes = [32, 256], strides = [1, 1]} : vector<128x256xf32> to vector<32x256xf32>
    %cst_37 = arith.constant dense<0.000000e+00> : vector<2x256xf32>
    %50 = tpu.matmul %48, %49, %cst_37 {dimension_numbers = #tpu.dot_dimension_numbers<[1], [0], [0], [1], [0, 0, 1, 1], [], []>} : vector<2x32xf32>, vector<32x256xf32>, vector<2x256xf32> -> vector<2x256xf32>
    %51 = arith.addf %46, %50 : vector<2x256xf32>
    %c1 = arith.constant 1 : index
    %c0_38 = arith.constant 0 : index
    %c0_39 = arith.constant 0 : index
    %52 = vector.load %arg3[%c1, %c0_38, %c0_39] : memref<3x2x32xf32, #tpu.memory_space<vmem>>, vector<1x2x32xf32>
    %53 = vector.shape_cast %52 : vector<1x2x32xf32> to vector<2x32xf32>
    %54 = vector.extract_strided_slice %39 {offsets = [64, 0], sizes = [32, 256], strides = [1, 1]} : vector<128x256xf32> to vector<32x256xf32>
    %cst_40 = arith.constant dense<0.000000e+00> : vector<2x256xf32>
    %55 = tpu.matmul %53, %54, %cst_40 {dimension_numbers = #tpu.dot_dimension_numbers<[1], [0], [0], [1], [0, 0, 1, 1], [], []>} : vector<2x32xf32>, vector<32x256xf32>, vector<2x256xf32> -> vector<2x256xf32>
    %56 = arith.addf %51, %55 : vector<2x256xf32>
    %c2 = arith.constant 2 : index
    %c0_41 = arith.constant 0 : index
    %c0_42 = arith.constant 0 : index
    %57 = vector.load %arg3[%c2, %c0_41, %c0_42] : memref<3x2x32xf32, #tpu.memory_space<vmem>>, vector<1x2x32xf32>
    %58 = vector.shape_cast %57 : vector<1x2x32xf32> to vector<2x32xf32>
    %59 = vector.extract_strided_slice %39 {offsets = [96, 0], sizes = [32, 256], strides = [1, 1]} : vector<128x256xf32> to vector<32x256xf32>
    %cst_43 = arith.constant dense<0.000000e+00> : vector<2x256xf32>
    %60 = tpu.matmul %58, %59, %cst_43 {dimension_numbers = #tpu.dot_dimension_numbers<[1], [0], [0], [1], [0, 0, 1, 1], [], []>} : vector<2x32xf32>, vector<32x256xf32>, vector<2x256xf32> -> vector<2x256xf32>
    %61 = arith.addf %56, %60 : vector<2x256xf32>
    %cst_44 = arith.constant 0.000000e+00 : f32
    %62 = vector.broadcast %cst_44 : f32 to vector<2x256xf32>
    %63 = arith.maximumf %61, %62 : vector<2x256xf32>
    %c0_45 = arith.constant 0 : index
    %c0_46 = arith.constant 0 : index
    %64 = vector.load %arg14[%c0_45, %c0_46] : memref<256x3xf32, #tpu.memory_space<vmem>>, vector<256x3xf32>
    %cst_47 = arith.constant dense<0.000000e+00> : vector<2x3xf32>
    %65 = tpu.matmul %63, %64, %cst_47 {dimension_numbers = #tpu.dot_dimension_numbers<[1], [0], [0], [1], [0, 0, 1, 1], [], []>} : vector<2x256xf32>, vector<256x3xf32>, vector<2x3xf32> -> vector<2x3xf32>
    %c0_48 = arith.constant 0 : index
    %c0_49 = arith.constant 0 : index
    %66 = vector.load %arg15[%c0_48, %c0_49] : memref<1x3xf32, #tpu.memory_space<vmem>>, vector<1x3xf32>
    %67 = vector.broadcast %66 : vector<1x3xf32> to vector<2x3xf32>
    %68 = arith.addf %65, %67 : vector<2x3xf32>
    %cst_50 = arith.constant dense<0xFF800000> : vector<2xf32>
    %69 = vector.multi_reduction <maximumf>, %68, %cst_50 [1] : vector<2x3xf32> to vector<2xf32>
    %70 = vector.shape_cast %69 : vector<2xf32> to vector<2x1xf32>
    %71 = vector.broadcast %70 : vector<2x1xf32> to vector<2x3xf32>
    %72 = arith.subf %68, %71 : vector<2x3xf32>
    %73 = math.exp %72 : vector<2x3xf32>
    %cst_51 = arith.constant dense<0.000000e+00> : vector<2xf32>
    %74 = vector.multi_reduction <add>, %73, %cst_51 [1] : vector<2x3xf32> to vector<2xf32>
    %75 = vector.shape_cast %74 : vector<2xf32> to vector<2x1xf32>
    %76 = vector.broadcast %75 : vector<2x1xf32> to vector<2x3xf32>
    %77 = arith.divf %73, %76 : vector<2x3xf32>
    %c0_52 = arith.constant 0 : index
    %c0_53 = arith.constant 0 : index
    %78 = vector.load %arg16[%c0_52, %c0_53] : memref<2x3xf32, #tpu.memory_space<vmem>>, vector<2x3xf32>
    tpu.vector_store %arg16[%c0_52, %c0_53], %77 {strides = array<i32>} : memref<2x3xf32, #tpu.memory_space<vmem>>, vector<2x3xf32>,
    return
  }
  func.func @transform_0(%arg0: i32) -> (i32, i32) {
    %c0_i32 = arith.constant 0 : i32
    %c0_i32_0 = arith.constant 0 : i32
    %c0_i32_1 = arith.constant 0 : i32
    return %c0_i32, %c0_i32_0 : i32, i32
  }
  func.func @transform_1(%arg0: i32) -> (i32, i32) {
    %c0_i32 = arith.constant 0 : i32
    %c0_i32_0 = arith.constant 0 : i32
    %c0_i32_1 = arith.constant 0 : i32
    return %c0_i32, %c0_i32_0 : i32, i32
  }
  func.func @transform_2(%arg0: i32) -> (i32, i32, i32) {
    %c0_i32 = arith.constant 0 : i32
    %c0_i32_0 = arith.constant 0 : i32
    %c0_i32_1 = arith.constant 0 : i32
    %c0_i32_2 = arith.constant 0 : i32
    return %c0_i32, %c0_i32_0, %c0_i32_1 : i32, i32, i32
  }
  func.func @transform_3(%arg0: i32) -> (i32, i32) {
    %c0_i32 = arith.constant 0 : i32
    %c0_i32_0 = arith.constant 0 : i32
    %c0_i32_1 = arith.constant 0 : i32
    return %c0_i32, %c0_i32_0 : i32, i32
  }
  func.func @transform_4(%arg0: i32) -> (i32, i32) {
    %c0_i32 = arith.constant 0 : i32
    %c0_i32_0 = arith.constant 0 : i32
    %c0_i32_1 = arith.constant 0 : i32
    return %c0_i32, %c0_i32_0 : i32, i32
  }
  func.func @transform_5(%arg0: i32) -> (i32, i32) {
    %c0_i32 = arith.constant 0 : i32
    %c0_i32_0 = arith.constant 0 : i32
    %c0_i32_1 = arith.constant 0 : i32
    return %c0_i32, %c0_i32_0 : i32, i32
  }
  func.func @transform_6(%arg0: i32) -> (i32, i32) {
    %c0_i32 = arith.constant 0 : i32
    %c0_i32_0 = arith.constant 0 : i32
    %c0_i32_1 = arith.constant 0 : i32
    return %c0_i32, %c0_i32_0 : i32, i32
  }
  func.func @transform_7(%arg0: i32) -> (i32, i32) {
    %c0_i32 = arith.constant 0 : i32
    %c0_i32_0 = arith.constant 0 : i32
    %c0_i32_1 = arith.constant 0 : i32
    return %c0_i32, %c0_i32_0 : i32, i32
  }
  func.func @transform_8(%arg0: i32) -> (i32, i32) {
    %c0_i32 = arith.constant 0 : i32
    %c0_i32_0 = arith.constant 0 : i32
    %c0_i32_1 = arith.constant 0 : i32
    return %c0_i32, %c0_i32_0 : i32, i32
  }
  func.func @transform_9(%arg0: i32) -> (i32, i32) {
    %c0_i32 = arith.constant 0 : i32
    %c0_i32_0 = arith.constant 0 : i32
    %c0_i32_1 = arith.constant 0 : i32
    return %c0_i32, %c0_i32_0 : i32, i32
  }
  func.func @transform_10(%arg0: i32) -> (i32, i32) {
    %c0_i32 = arith.constant 0 : i32
    %c0_i32_0 = arith.constant 0 : i32
    %c0_i32_1 = arith.constant 0 : i32
    return %c0_i32, %c0_i32_0 : i32, i32
  }
  func.func @transform_11(%arg0: i32) -> (i32, i32) {
    %c0_i32 = arith.constant 0 : i32
    %c0_i32_0 = arith.constant 0 : i32
    %c0_i32_1 = arith.constant 0 : i32
    return %c0_i32, %c0_i32_0 : i32, i32
  }
  func.func @transform_12(%arg0: i32) -> (i32, i32) {
    %c0_i32 = arith.constant 0 : i32
    %c0_i32_0 = arith.constant 0 : i32
    %c0_i32_1 = arith.constant 0 : i32
    return %c0_i32, %c0_i32_0 : i32, i32
  }
  func.func @transform_13(%arg0: i32) -> (i32, i32) {
    %c0_i32 = arith.constant 0 : i32
    %c0_i32_0 = arith.constant 0 : i32
    %c0_i32_1 = arith.constant 0 : i32
    return %c0_i32, %c0_i32_0 : i32, i32
  }
  func.func @transform_14(%arg0: i32) -> (i32, i32) {
    %c0_i32 = arith.constant 0 : i32
    %c0_i32_0 = arith.constant 0 : i32
    %c0_i32_1 = arith.constant 0 : i32
    return %c0_i32, %c0_i32_0 : i32, i32
  }
  func.func @transform_15(%arg0: i32) -> (i32, i32) {
    %c0_i32 = arith.constant 0 : i32
    %c0_i32_0 = arith.constant 0 : i32
    %c0_i32_1 = arith.constant 0 : i32
    return %c0_i32, %c0_i32_0 : i32, i32
  }
}

module attributes {stable_mosaic.version = 11 : i64} {
  func.func @_past_kernel(%arg0: i32, %arg1: memref<1x10x64xf32, #tpu.memory_space<vmem>>, %arg2: memref<1x10x20xf32, #tpu.memory_space<vmem>>, %arg3: memref<64x96xf32, #tpu.memory_space<vmem>>, %arg4: memref<1x96xf32, #tpu.memory_space<vmem>>, %arg5: memref<96x32xf32, #tpu.memory_space<vmem>>, %arg6: memref<1x32xf32, #tpu.memory_space<vmem>>, %arg7: memref<75xf32, #tpu.memory_space<smem>>, %arg8: memref<5xf32, #tpu.memory_space<smem>>, %arg9: memref<18x128xf32, #tpu.memory_space<vmem>>, %arg10: memref<32x128xf32, #tpu.memory_space<vmem>>, %arg11: memref<1x128xf32, #tpu.memory_space<vmem>>, %arg12: memref<32x128xf32, #tpu.memory_space<vmem>>, %arg13: memref<32x128xf32, #tpu.memory_space<vmem>>, %arg14: memref<1x128xf32, #tpu.memory_space<vmem>>, %arg15: memref<32x128xf32, #tpu.memory_space<vmem>>, %arg16: memref<32x128xf32, #tpu.memory_space<vmem>>, %arg17: memref<1x128xf32, #tpu.memory_space<vmem>>, %arg18: memref<160x160xf32, #tpu.memory_space<vmem>>, %arg19: memref<1x160xf32, #tpu.memory_space<vmem>>, %arg20: memref<160x32xf32, #tpu.memory_space<vmem>>, %arg21: memref<1x32xf32, #tpu.memory_space<vmem>>, %arg22: memref<1x2x32xf32, #tpu.memory_space<vmem>>, %arg23: memref<10x18xf32, #tpu.memory_space<vmem>>, %arg24: memref<10x32xf32, #tpu.memory_space<vmem>>, %arg25: memref<10x32xf32, #tpu.memory_space<vmem>>) attributes {dimension_semantics = [#tpu.dimension_semantics<parallel>], iteration_bounds = array<i64: 3>, scalar_prefetch = 0 : i64, scratch_operands = 3 : i64, tpu.core_type = #tpu.core_type<tc>, window_params = [{transform_indices = @transform_0, window_bounds = array<i64: 1, 10, 64>}, {transform_indices = @transform_1, window_bounds = array<i64: 1, 10, 20>}, {pipeline_mode = #tpu.pipeline_mode<synchronous>, transform_indices = @transform_2, window_bounds = array<i64: 64, 96>}, {pipeline_mode = #tpu.pipeline_mode<synchronous>, transform_indices = @transform_3, window_bounds = array<i64: 1, 96>}, {pipeline_mode = #tpu.pipeline_mode<synchronous>, transform_indices = @transform_4, window_bounds = array<i64: 96, 32>}, {pipeline_mode = #tpu.pipeline_mode<synchronous>, transform_indices = @transform_5, window_bounds = array<i64: 1, 32>}, {transform_indices = @transform_6, window_bounds = array<i64: 75>}, {transform_indices = @transform_7, window_bounds = array<i64: 5>}, {pipeline_mode = #tpu.pipeline_mode<synchronous>, transform_indices = @transform_8, window_bounds = array<i64: 18, 128>}, {pipeline_mode = #tpu.pipeline_mode<synchronous>, transform_indices = @transform_9, window_bounds = array<i64: 32, 128>}, {pipeline_mode = #tpu.pipeline_mode<synchronous>, transform_indices = @transform_10, window_bounds = array<i64: 1, 128>}, {pipeline_mode = #tpu.pipeline_mode<synchronous>, transform_indices = @transform_11, window_bounds = array<i64: 32, 128>}, {pipeline_mode = #tpu.pipeline_mode<synchronous>, transform_indices = @transform_12, window_bounds = array<i64: 32, 128>}, {pipeline_mode = #tpu.pipeline_mode<synchronous>, transform_indices = @transform_13, window_bounds = array<i64: 1, 128>}, {pipeline_mode = #tpu.pipeline_mode<synchronous>, transform_indices = @transform_14, window_bounds = array<i64: 32, 128>}, {pipeline_mode = #tpu.pipeline_mode<synchronous>, transform_indices = @transform_15, window_bounds = array<i64: 32, 128>}, {pipeline_mode = #tpu.pipeline_mode<synchronous>, transform_indices = @transform_16, window_bounds = array<i64: 1, 128>}, {pipeline_mode = #tpu.pipeline_mode<synchronous>, transform_indices = @transform_17, window_bounds = array<i64: 160, 160>}, {pipeline_mode = #tpu.pipeline_mode<synchronous>, transform_indices = @transform_18, window_bounds = array<i64: 1, 160>}, {pipeline_mode = #tpu.pipeline_mode<synchronous>, transform_indices = @transform_19, window_bounds = array<i64: 160, 32>}, {pipeline_mode = #tpu.pipeline_mode<synchronous>, transform_indices = @transform_20, window_bounds = array<i64: 1, 32>}, {transform_indices = @transform_21, window_bounds = array<i64: 1, 2, 32>}]} {
    %c0 = arith.constant 0 : index
    %c0_0 = arith.constant 0 : index
    %c0_1 = arith.constant 0 : index
    %0 = vector.load %arg1[%c0, %c0_0, %c0_1] : memref<1x10x64xf32, #tpu.memory_space<vmem>>, vector<1x10x64xf32>
    %1 = vector.shape_cast %0 : vector<1x10x64xf32> to vector<10x64xf32>
    %c0_2 = arith.constant 0 : index
    %c0_3 = arith.constant 0 : index
    %c0_4 = arith.constant 0 : index
    %2 = vector.load %arg2[%c0_2, %c0_3, %c0_4] : memref<1x10x20xf32, #tpu.memory_space<vmem>>, vector<1x10x20xf32>
    %3 = vector.shape_cast %2 : vector<1x10x20xf32> to vector<10x20xf32>
    %c0_5 = arith.constant 0 : index
    %c0_6 = arith.constant 0 : index
    %4 = vector.load %arg3[%c0_5, %c0_6] : memref<64x96xf32, #tpu.memory_space<vmem>>, vector<64x96xf32>
    %cst = arith.constant dense<0.000000e+00> : vector<10x96xf32>
    %5 = tpu.matmul %1, %4, %cst {dimension_numbers = #tpu.dot_dimension_numbers<[1], [0], [0], [1], [0, 0, 1, 1], [], []>} : vector<10x64xf32>, vector<64x96xf32>, vector<10x96xf32> -> vector<10x96xf32>
    %c0_7 = arith.constant 0 : index
    %c0_8 = arith.constant 0 : index
    %6 = vector.load %arg4[%c0_7, %c0_8] : memref<1x96xf32, #tpu.memory_space<vmem>>, vector<1x96xf32>
    %7 = vector.broadcast %6 : vector<1x96xf32> to vector<10x96xf32>
    %8 = arith.addf %5, %7 : vector<10x96xf32>
    %9 = arith.mulf %8, %8 : vector<10x96xf32>
    %10 = arith.mulf %8, %9 : vector<10x96xf32>
    %cst_9 = arith.constant 4.471500e-02 : f32
    %11 = vector.broadcast %cst_9 : f32 to vector<10x96xf32>
    %12 = arith.mulf %11, %10 : vector<10x96xf32>
    %13 = arith.addf %8, %12 : vector<10x96xf32>
    %cst_10 = arith.constant 0.797884583 : f32
    %14 = vector.broadcast %cst_10 : f32 to vector<10x96xf32>
    %15 = arith.mulf %14, %13 : vector<10x96xf32>
    %16 = math.tanh %15 : vector<10x96xf32>
    %cst_11 = arith.constant 1.000000e+00 : f32
    %17 = vector.broadcast %cst_11 : f32 to vector<10x96xf32>
    %18 = arith.addf %17, %16 : vector<10x96xf32>
    %cst_12 = arith.constant 5.000000e-01 : f32
    %19 = vector.broadcast %cst_12 : f32 to vector<10x96xf32>
    %20 = arith.mulf %19, %18 : vector<10x96xf32>
    %21 = arith.mulf %8, %20 : vector<10x96xf32>
    %c0_13 = arith.constant 0 : index
    %c0_14 = arith.constant 0 : index
    %22 = vector.load %arg5[%c0_13, %c0_14] : memref<96x32xf32, #tpu.memory_space<vmem>>, vector<96x32xf32>
    %cst_15 = arith.constant dense<0.000000e+00> : vector<10x32xf32>
    %23 = tpu.matmul %21, %22, %cst_15 {dimension_numbers = #tpu.dot_dimension_numbers<[1], [0], [0], [1], [0, 0, 1, 1], [], []>} : vector<10x96xf32>, vector<96x32xf32>, vector<10x32xf32> -> vector<10x32xf32>
    %c0_16 = arith.constant 0 : index
    %c0_17 = arith.constant 0 : index
    %24 = vector.load %arg6[%c0_16, %c0_17] : memref<1x32xf32, #tpu.memory_space<vmem>>, vector<1x32xf32>
    %25 = vector.broadcast %24 : vector<1x32xf32> to vector<10x32xf32>
    %26 = arith.addf %23, %25 : vector<10x32xf32>
    %27 = arith.mulf %26, %26 : vector<10x32xf32>
    %28 = arith.mulf %26, %27 : vector<10x32xf32>
    %cst_18 = arith.constant 4.471500e-02 : f32
    %29 = vector.broadcast %cst_18 : f32 to vector<10x32xf32>
    %30 = arith.mulf %29, %28 : vector<10x32xf32>
    %31 = arith.addf %26, %30 : vector<10x32xf32>
    %cst_19 = arith.constant 0.797884583 : f32
    %32 = vector.broadcast %cst_19 : f32 to vector<10x32xf32>
    %33 = arith.mulf %32, %31 : vector<10x32xf32>
    %34 = math.tanh %33 : vector<10x32xf32>
    %cst_20 = arith.constant 1.000000e+00 : f32
    %35 = vector.broadcast %cst_20 : f32 to vector<10x32xf32>
    %36 = arith.addf %35, %34 : vector<10x32xf32>
    %cst_21 = arith.constant 5.000000e-01 : f32
    %37 = vector.broadcast %cst_21 : f32 to vector<10x32xf32>
    %38 = arith.mulf %37, %36 : vector<10x32xf32>
    %39 = arith.mulf %26, %38 : vector<10x32xf32>
    %cst_22 = arith.constant 0.000000e+00 : f32
    %40 = vector.broadcast %cst_22 : f32 to vector<2x18xf32>
    %c0_23 = arith.constant 0 : index
    %41 = memref.load %arg7[%c0_23] : memref<75xf32, #tpu.memory_space<smem>>
    %42 = vector.extract_strided_slice %3 {offsets = [0, 0], sizes = [2, 18], strides = [1, 1]} : vector<10x20xf32> to vector<2x18xf32>
    %43 = vector.broadcast %41 : f32 to vector<2x18xf32>
    %44 = arith.mulf %43, %42 : vector<2x18xf32>
    %45 = arith.addf %40, %44 : vector<2x18xf32>
    %c1 = arith.constant 1 : index
    %46 = memref.load %arg7[%c1] : memref<75xf32, #tpu.memory_space<smem>>
    %47 = vector.extract_strided_slice %3 {offsets = [0, 1], sizes = [2, 18], strides = [1, 1]} : vector<10x20xf32> to vector<2x18xf32>
    %48 = vector.broadcast %46 : f32 to vector<2x18xf32>
    %49 = arith.mulf %48, %47 : vector<2x18xf32>
    %50 = arith.addf %45, %49 : vector<2x18xf32>
    %c2 = arith.constant 2 : index
    %51 = memref.load %arg7[%c2] : memref<75xf32, #tpu.memory_space<smem>>
    %52 = vector.extract_strided_slice %3 {offsets = [0, 2], sizes = [2, 18], strides = [1, 1]} : vector<10x20xf32> to vector<2x18xf32>
    %53 = vector.broadcast %51 : f32 to vector<2x18xf32>
    %54 = arith.mulf %53, %52 : vector<2x18xf32>
    %55 = arith.addf %50, %54 : vector<2x18xf32>
    %c3 = arith.constant 3 : index
    %56 = memref.load %arg7[%c3] : memref<75xf32, #tpu.memory_space<smem>>
    %57 = vector.extract_strided_slice %3 {offsets = [2, 0], sizes = [2, 18], strides = [1, 1]} : vector<10x20xf32> to vector<2x18xf32>
    %58 = vector.broadcast %56 : f32 to vector<2x18xf32>
    %59 = arith.mulf %58, %57 : vector<2x18xf32>
    %60 = arith.addf %55, %59 : vector<2x18xf32>
    %c4 = arith.constant 4 : index
    %61 = memref.load %arg7[%c4] : memref<75xf32, #tpu.memory_space<smem>>
    %62 = vector.extract_strided_slice %3 {offsets = [2, 1], sizes = [2, 18], strides = [1, 1]} : vector<10x20xf32> to vector<2x18xf32>
    %63 = vector.broadcast %61 : f32 to vector<2x18xf32>
    %64 = arith.mulf %63, %62 : vector<2x18xf32>
    %65 = arith.addf %60, %64 : vector<2x18xf32>
    %c5 = arith.constant 5 : index
    %66 = memref.load %arg7[%c5] : memref<75xf32, #tpu.memory_space<smem>>
    %67 = vector.extract_strided_slice %3 {offsets = [2, 2], sizes = [2, 18], strides = [1, 1]} : vector<10x20xf32> to vector<2x18xf32>
    %68 = vector.broadcast %66 : f32 to vector<2x18xf32>
    %69 = arith.mulf %68, %67 : vector<2x18xf32>
    %70 = arith.addf %65, %69 : vector<2x18xf32>
    %c6 = arith.constant 6 : index
    %71 = memref.load %arg7[%c6] : memref<75xf32, #tpu.memory_space<smem>>
    %72 = vector.extract_strided_slice %3 {offsets = [4, 0], sizes = [2, 18], strides = [1, 1]} : vector<10x20xf32> to vector<2x18xf32>
    %73 = vector.broadcast %71 : f32 to vector<2x18xf32>
    %74 = arith.mulf %73, %72 : vector<2x18xf32>
    %75 = arith.addf %70, %74 : vector<2x18xf32>
    %c7 = arith.constant 7 : index
    %76 = memref.load %arg7[%c7] : memref<75xf32, #tpu.memory_space<smem>>
    %77 = vector.extract_strided_slice %3 {offsets = [4, 1], sizes = [2, 18], strides = [1, 1]} : vector<10x20xf32> to vector<2x18xf32>
    %78 = vector.broadcast %76 : f32 to vector<2x18xf32>
    %79 = arith.mulf %78, %77 : vector<2x18xf32>
    %80 = arith.addf %75, %79 : vector<2x18xf32>
    %c8 = arith.constant 8 : index
    %81 = memref.load %arg7[%c8] : memref<75xf32, #tpu.memory_space<smem>>
    %82 = vector.extract_strided_slice %3 {offsets = [4, 2], sizes = [2, 18], strides = [1, 1]} : vector<10x20xf32> to vector<2x18xf32>
    %83 = vector.broadcast %81 : f32 to vector<2x18xf32>
    %84 = arith.mulf %83, %82 : vector<2x18xf32>
    %85 = arith.addf %80, %84 : vector<2x18xf32>
    %c9 = arith.constant 9 : index
    %86 = memref.load %arg7[%c9] : memref<75xf32, #tpu.memory_space<smem>>
    %87 = vector.extract_strided_slice %3 {offsets = [6, 0], sizes = [2, 18], strides = [1, 1]} : vector<10x20xf32> to vector<2x18xf32>
    %88 = vector.broadcast %86 : f32 to vector<2x18xf32>
    %89 = arith.mulf %88, %87 : vector<2x18xf32>
    %90 = arith.addf %85, %89 : vector<2x18xf32>
    %c10 = arith.constant 10 : index
    %91 = memref.load %arg7[%c10] : memref<75xf32, #tpu.memory_space<smem>>
    %92 = vector.extract_strided_slice %3 {offsets = [6, 1], sizes = [2, 18], strides = [1, 1]} : vector<10x20xf32> to vector<2x18xf32>
    %93 = vector.broadcast %91 : f32 to vector<2x18xf32>
    %94 = arith.mulf %93, %92 : vector<2x18xf32>
    %95 = arith.addf %90, %94 : vector<2x18xf32>
    %c11 = arith.constant 11 : index
    %96 = memref.load %arg7[%c11] : memref<75xf32, #tpu.memory_space<smem>>
    %97 = vector.extract_strided_slice %3 {offsets = [6, 2], sizes = [2, 18], strides = [1, 1]} : vector<10x20xf32> to vector<2x18xf32>
    %98 = vector.broadcast %96 : f32 to vector<2x18xf32>
    %99 = arith.mulf %98, %97 : vector<2x18xf32>
    %100 = arith.addf %95, %99 : vector<2x18xf32>
    %c12 = arith.constant 12 : index
    %101 = memref.load %arg7[%c12] : memref<75xf32, #tpu.memory_space<smem>>
    %102 = vector.extract_strided_slice %3 {offsets = [8, 0], sizes = [2, 18], strides = [1, 1]} : vector<10x20xf32> to vector<2x18xf32>
    %103 = vector.broadcast %101 : f32 to vector<2x18xf32>
    %104 = arith.mulf %103, %102 : vector<2x18xf32>
    %105 = arith.addf %100, %104 : vector<2x18xf32>
    %c13 = arith.constant 13 : index
    %106 = memref.load %arg7[%c13] : memref<75xf32, #tpu.memory_space<smem>>
    %107 = vector.extract_strided_slice %3 {offsets = [8, 1], sizes = [2, 18], strides = [1, 1]} : vector<10x20xf32> to vector<2x18xf32>
    %108 = vector.broadcast %106 : f32 to vector<2x18xf32>
    %109 = arith.mulf %108, %107 : vector<2x18xf32>
    %110 = arith.addf %105, %109 : vector<2x18xf32>
    %c14 = arith.constant 14 : index
    %111 = memref.load %arg7[%c14] : memref<75xf32, #tpu.memory_space<smem>>
    %112 = vector.extract_strided_slice %3 {offsets = [8, 2], sizes = [2, 18], strides = [1, 1]} : vector<10x20xf32> to vector<2x18xf32>
    %113 = vector.broadcast %111 : f32 to vector<2x18xf32>
    %114 = arith.mulf %113, %112 : vector<2x18xf32>
    %115 = arith.addf %110, %114 : vector<2x18xf32>
    %c0_24 = arith.constant 0 : index
    %116 = memref.load %arg8[%c0_24] : memref<5xf32, #tpu.memory_space<smem>>
    %117 = vector.broadcast %116 : f32 to vector<2x18xf32>
    %118 = arith.addf %115, %117 : vector<2x18xf32>
    %c0_25 = arith.constant 0 : index
    %c0_26 = arith.constant 0 : index
    %119 = vector.load %arg23[%c0_25, %c0_26] : memref<10x18xf32, #tpu.memory_space<vmem>>, vector<2x18xf32>
    tpu.vector_store %arg23[%c0_25, %c0_26], %118 {strides = array<i32>} : memref<10x18xf32, #tpu.memory_space<vmem>>, vector<2x18xf32>,
    %cst_27 = arith.constant 0.000000e+00 : f32
    %120 = vector.broadcast %cst_27 : f32 to vector<2x18xf32>
    %c15 = arith.constant 15 : index
    %121 = memref.load %arg7[%c15] : memref<75xf32, #tpu.memory_space<smem>>
    %122 = vector.extract_strided_slice %3 {offsets = [0, 0], sizes = [2, 18], strides = [1, 1]} : vector<10x20xf32> to vector<2x18xf32>
    %123 = vector.broadcast %121 : f32 to vector<2x18xf32>
    %124 = arith.mulf %123, %122 : vector<2x18xf32>
    %125 = arith.addf %120, %124 : vector<2x18xf32>
    %c16 = arith.constant 16 : index
    %126 = memref.load %arg7[%c16] : memref<75xf32, #tpu.memory_space<smem>>
    %127 = vector.extract_strided_slice %3 {offsets = [0, 1], sizes = [2, 18], strides = [1, 1]} : vector<10x20xf32> to vector<2x18xf32>
    %128 = vector.broadcast %126 : f32 to vector<2x18xf32>
    %129 = arith.mulf %128, %127 : vector<2x18xf32>
    %130 = arith.addf %125, %129 : vector<2x18xf32>
    %c17 = arith.constant 17 : index
    %131 = memref.load %arg7[%c17] : memref<75xf32, #tpu.memory_space<smem>>
    %132 = vector.extract_strided_slice %3 {offsets = [0, 2], sizes = [2, 18], strides = [1, 1]} : vector<10x20xf32> to vector<2x18xf32>
    %133 = vector.broadcast %131 : f32 to vector<2x18xf32>
    %134 = arith.mulf %133, %132 : vector<2x18xf32>
    %135 = arith.addf %130, %134 : vector<2x18xf32>
    %c18 = arith.constant 18 : index
    %136 = memref.load %arg7[%c18] : memref<75xf32, #tpu.memory_space<smem>>
    %137 = vector.extract_strided_slice %3 {offsets = [2, 0], sizes = [2, 18], strides = [1, 1]} : vector<10x20xf32> to vector<2x18xf32>
    %138 = vector.broadcast %136 : f32 to vector<2x18xf32>
    %139 = arith.mulf %138, %137 : vector<2x18xf32>
    %140 = arith.addf %135, %139 : vector<2x18xf32>
    %c19 = arith.constant 19 : index
    %141 = memref.load %arg7[%c19] : memref<75xf32, #tpu.memory_space<smem>>
    %142 = vector.extract_strided_slice %3 {offsets = [2, 1], sizes = [2, 18], strides = [1, 1]} : vector<10x20xf32> to vector<2x18xf32>
    %143 = vector.broadcast %141 : f32 to vector<2x18xf32>
    %144 = arith.mulf %143, %142 : vector<2x18xf32>
    %145 = arith.addf %140, %144 : vector<2x18xf32>
    %c20 = arith.constant 20 : index
    %146 = memref.load %arg7[%c20] : memref<75xf32, #tpu.memory_space<smem>>
    %147 = vector.extract_strided_slice %3 {offsets = [2, 2], sizes = [2, 18], strides = [1, 1]} : vector<10x20xf32> to vector<2x18xf32>
    %148 = vector.broadcast %146 : f32 to vector<2x18xf32>
    %149 = arith.mulf %148, %147 : vector<2x18xf32>
    %150 = arith.addf %145, %149 : vector<2x18xf32>
    %c21 = arith.constant 21 : index
    %151 = memref.load %arg7[%c21] : memref<75xf32, #tpu.memory_space<smem>>
    %152 = vector.extract_strided_slice %3 {offsets = [4, 0], sizes = [2, 18], strides = [1, 1]} : vector<10x20xf32> to vector<2x18xf32>
    %153 = vector.broadcast %151 : f32 to vector<2x18xf32>
    %154 = arith.mulf %153, %152 : vector<2x18xf32>
    %155 = arith.addf %150, %154 : vector<2x18xf32>
    %c22 = arith.constant 22 : index
    %156 = memref.load %arg7[%c22] : memref<75xf32, #tpu.memory_space<smem>>
    %157 = vector.extract_strided_slice %3 {offsets = [4, 1], sizes = [2, 18], strides = [1, 1]} : vector<10x20xf32> to vector<2x18xf32>
    %158 = vector.broadcast %156 : f32 to vector<2x18xf32>
    %159 = arith.mulf %158, %157 : vector<2x18xf32>
    %160 = arith.addf %155, %159 : vector<2x18xf32>
    %c23 = arith.constant 23 : index
    %161 = memref.load %arg7[%c23] : memref<75xf32, #tpu.memory_space<smem>>
    %162 = vector.extract_strided_slice %3 {offsets = [4, 2], sizes = [2, 18], strides = [1, 1]} : vector<10x20xf32> to vector<2x18xf32>
    %163 = vector.broadcast %161 : f32 to vector<2x18xf32>
    %164 = arith.mulf %163, %162 : vector<2x18xf32>
    %165 = arith.addf %160, %164 : vector<2x18xf32>
    %c24 = arith.constant 24 : index
    %166 = memref.load %arg7[%c24] : memref<75xf32, #tpu.memory_space<smem>>
    %167 = vector.extract_strided_slice %3 {offsets = [6, 0], sizes = [2, 18], strides = [1, 1]} : vector<10x20xf32> to vector<2x18xf32>
    %168 = vector.broadcast %166 : f32 to vector<2x18xf32>
    %169 = arith.mulf %168, %167 : vector<2x18xf32>
    %170 = arith.addf %165, %169 : vector<2x18xf32>
    %c25 = arith.constant 25 : index
    %171 = memref.load %arg7[%c25] : memref<75xf32, #tpu.memory_space<smem>>
    %172 = vector.extract_strided_slice %3 {offsets = [6, 1], sizes = [2, 18], strides = [1, 1]} : vector<10x20xf32> to vector<2x18xf32>
    %173 = vector.broadcast %171 : f32 to vector<2x18xf32>
    %174 = arith.mulf %173, %172 : vector<2x18xf32>
    %175 = arith.addf %170, %174 : vector<2x18xf32>
    %c26 = arith.constant 26 : index
    %176 = memref.load %arg7[%c26] : memref<75xf32, #tpu.memory_space<smem>>
    %177 = vector.extract_strided_slice %3 {offsets = [6, 2], sizes = [2, 18], strides = [1, 1]} : vector<10x20xf32> to vector<2x18xf32>
    %178 = vector.broadcast %176 : f32 to vector<2x18xf32>
    %179 = arith.mulf %178, %177 : vector<2x18xf32>
    %180 = arith.addf %175, %179 : vector<2x18xf32>
    %c27 = arith.constant 27 : index
    %181 = memref.load %arg7[%c27] : memref<75xf32, #tpu.memory_space<smem>>
    %182 = vector.extract_strided_slice %3 {offsets = [8, 0], sizes = [2, 18], strides = [1, 1]} : vector<10x20xf32> to vector<2x18xf32>
    %183 = vector.broadcast %181 : f32 to vector<2x18xf32>
    %184 = arith.mulf %183, %182 : vector<2x18xf32>
    %185 = arith.addf %180, %184 : vector<2x18xf32>
    %c28 = arith.constant 28 : index
    %186 = memref.load %arg7[%c28] : memref<75xf32, #tpu.memory_space<smem>>
    %187 = vector.extract_strided_slice %3 {offsets = [8, 1], sizes = [2, 18], strides = [1, 1]} : vector<10x20xf32> to vector<2x18xf32>
    %188 = vector.broadcast %186 : f32 to vector<2x18xf32>
    %189 = arith.mulf %188, %187 : vector<2x18xf32>
    %190 = arith.addf %185, %189 : vector<2x18xf32>
    %c29 = arith.constant 29 : index
    %191 = memref.load %arg7[%c29] : memref<75xf32, #tpu.memory_space<smem>>
    %192 = vector.extract_strided_slice %3 {offsets = [8, 2], sizes = [2, 18], strides = [1, 1]} : vector<10x20xf32> to vector<2x18xf32>
    %193 = vector.broadcast %191 : f32 to vector<2x18xf32>
    %194 = arith.mulf %193, %192 : vector<2x18xf32>
    %195 = arith.addf %190, %194 : vector<2x18xf32>
    %c1_28 = arith.constant 1 : index
    %196 = memref.load %arg8[%c1_28] : memref<5xf32, #tpu.memory_space<smem>>
    %197 = vector.broadcast %196 : f32 to vector<2x18xf32>
    %198 = arith.addf %195, %197 : vector<2x18xf32>
    %c2_29 = arith.constant 2 : index
    %c0_30 = arith.constant 0 : index
    %199 = vector.load %arg23[%c2_29, %c0_30] : memref<10x18xf32, #tpu.memory_space<vmem>>, vector<2x18xf32>
    tpu.vector_store %arg23[%c2_29, %c0_30], %198 {strides = array<i32>} : memref<10x18xf32, #tpu.memory_space<vmem>>, vector<2x18xf32>,
    %cst_31 = arith.constant 0.000000e+00 : f32
    %200 = vector.broadcast %cst_31 : f32 to vector<2x18xf32>
    %c30 = arith.constant 30 : index
    %201 = memref.load %arg7[%c30] : memref<75xf32, #tpu.memory_space<smem>>
    %202 = vector.extract_strided_slice %3 {offsets = [0, 0], sizes = [2, 18], strides = [1, 1]} : vector<10x20xf32> to vector<2x18xf32>
    %203 = vector.broadcast %201 : f32 to vector<2x18xf32>
    %204 = arith.mulf %203, %202 : vector<2x18xf32>
    %205 = arith.addf %200, %204 : vector<2x18xf32>
    %c31 = arith.constant 31 : index
    %206 = memref.load %arg7[%c31] : memref<75xf32, #tpu.memory_space<smem>>
    %207 = vector.extract_strided_slice %3 {offsets = [0, 1], sizes = [2, 18], strides = [1, 1]} : vector<10x20xf32> to vector<2x18xf32>
    %208 = vector.broadcast %206 : f32 to vector<2x18xf32>
    %209 = arith.mulf %208, %207 : vector<2x18xf32>
    %210 = arith.addf %205, %209 : vector<2x18xf32>
    %c32 = arith.constant 32 : index
    %211 = memref.load %arg7[%c32] : memref<75xf32, #tpu.memory_space<smem>>
    %212 = vector.extract_strided_slice %3 {offsets = [0, 2], sizes = [2, 18], strides = [1, 1]} : vector<10x20xf32> to vector<2x18xf32>
    %213 = vector.broadcast %211 : f32 to vector<2x18xf32>
    %214 = arith.mulf %213, %212 : vector<2x18xf32>
    %215 = arith.addf %210, %214 : vector<2x18xf32>
    %c33 = arith.constant 33 : index
    %216 = memref.load %arg7[%c33] : memref<75xf32, #tpu.memory_space<smem>>
    %217 = vector.extract_strided_slice %3 {offsets = [2, 0], sizes = [2, 18], strides = [1, 1]} : vector<10x20xf32> to vector<2x18xf32>
    %218 = vector.broadcast %216 : f32 to vector<2x18xf32>
    %219 = arith.mulf %218, %217 : vector<2x18xf32>
    %220 = arith.addf %215, %219 : vector<2x18xf32>
    %c34 = arith.constant 34 : index
    %221 = memref.load %arg7[%c34] : memref<75xf32, #tpu.memory_space<smem>>
    %222 = vector.extract_strided_slice %3 {offsets = [2, 1], sizes = [2, 18], strides = [1, 1]} : vector<10x20xf32> to vector<2x18xf32>
    %223 = vector.broadcast %221 : f32 to vector<2x18xf32>
    %224 = arith.mulf %223, %222 : vector<2x18xf32>
    %225 = arith.addf %220, %224 : vector<2x18xf32>
    %c35 = arith.constant 35 : index
    %226 = memref.load %arg7[%c35] : memref<75xf32, #tpu.memory_space<smem>>
    %227 = vector.extract_strided_slice %3 {offsets = [2, 2], sizes = [2, 18], strides = [1, 1]} : vector<10x20xf32> to vector<2x18xf32>
    %228 = vector.broadcast %226 : f32 to vector<2x18xf32>
    %229 = arith.mulf %228, %227 : vector<2x18xf32>
    %230 = arith.addf %225, %229 : vector<2x18xf32>
    %c36 = arith.constant 36 : index
    %231 = memref.load %arg7[%c36] : memref<75xf32, #tpu.memory_space<smem>>
    %232 = vector.extract_strided_slice %3 {offsets = [4, 0], sizes = [2, 18], strides = [1, 1]} : vector<10x20xf32> to vector<2x18xf32>
    %233 = vector.broadcast %231 : f32 to vector<2x18xf32>
    %234 = arith.mulf %233, %232 : vector<2x18xf32>
    %235 = arith.addf %230, %234 : vector<2x18xf32>
    %c37 = arith.constant 37 : index
    %236 = memref.load %arg7[%c37] : memref<75xf32, #tpu.memory_space<smem>>
    %237 = vector.extract_strided_slice %3 {offsets = [4, 1], sizes = [2, 18], strides = [1, 1]} : vector<10x20xf32> to vector<2x18xf32>
    %238 = vector.broadcast %236 : f32 to vector<2x18xf32>
    %239 = arith.mulf %238, %237 : vector<2x18xf32>
    %240 = arith.addf %235, %239 : vector<2x18xf32>
    %c38 = arith.constant 38 : index
    %241 = memref.load %arg7[%c38] : memref<75xf32, #tpu.memory_space<smem>>
    %242 = vector.extract_strided_slice %3 {offsets = [4, 2], sizes = [2, 18], strides = [1, 1]} : vector<10x20xf32> to vector<2x18xf32>
    %243 = vector.broadcast %241 : f32 to vector<2x18xf32>
    %244 = arith.mulf %243, %242 : vector<2x18xf32>
    %245 = arith.addf %240, %244 : vector<2x18xf32>
    %c39 = arith.constant 39 : index
    %246 = memref.load %arg7[%c39] : memref<75xf32, #tpu.memory_space<smem>>
    %247 = vector.extract_strided_slice %3 {offsets = [6, 0], sizes = [2, 18], strides = [1, 1]} : vector<10x20xf32> to vector<2x18xf32>
    %248 = vector.broadcast %246 : f32 to vector<2x18xf32>
    %249 = arith.mulf %248, %247 : vector<2x18xf32>
    %250 = arith.addf %245, %249 : vector<2x18xf32>
    %c40 = arith.constant 40 : index
    %251 = memref.load %arg7[%c40] : memref<75xf32, #tpu.memory_space<smem>>
    %252 = vector.extract_strided_slice %3 {offsets = [6, 1], sizes = [2, 18], strides = [1, 1]} : vector<10x20xf32> to vector<2x18xf32>
    %253 = vector.broadcast %251 : f32 to vector<2x18xf32>
    %254 = arith.mulf %253, %252 : vector<2x18xf32>
    %255 = arith.addf %250, %254 : vector<2x18xf32>
    %c41 = arith.constant 41 : index
    %256 = memref.load %arg7[%c41] : memref<75xf32, #tpu.memory_space<smem>>
    %257 = vector.extract_strided_slice %3 {offsets = [6, 2], sizes = [2, 18], strides = [1, 1]} : vector<10x20xf32> to vector<2x18xf32>
    %258 = vector.broadcast %256 : f32 to vector<2x18xf32>
    %259 = arith.mulf %258, %257 : vector<2x18xf32>
    %260 = arith.addf %255, %259 : vector<2x18xf32>
    %c42 = arith.constant 42 : index
    %261 = memref.load %arg7[%c42] : memref<75xf32, #tpu.memory_space<smem>>
    %262 = vector.extract_strided_slice %3 {offsets = [8, 0], sizes = [2, 18], strides = [1, 1]} : vector<10x20xf32> to vector<2x18xf32>
    %263 = vector.broadcast %261 : f32 to vector<2x18xf32>
    %264 = arith.mulf %263, %262 : vector<2x18xf32>
    %265 = arith.addf %260, %264 : vector<2x18xf32>
    %c43 = arith.constant 43 : index
    %266 = memref.load %arg7[%c43] : memref<75xf32, #tpu.memory_space<smem>>
    %267 = vector.extract_strided_slice %3 {offsets = [8, 1], sizes = [2, 18], strides = [1, 1]} : vector<10x20xf32> to vector<2x18xf32>
    %268 = vector.broadcast %266 : f32 to vector<2x18xf32>
    %269 = arith.mulf %268, %267 : vector<2x18xf32>
    %270 = arith.addf %265, %269 : vector<2x18xf32>
    %c44 = arith.constant 44 : index
    %271 = memref.load %arg7[%c44] : memref<75xf32, #tpu.memory_space<smem>>
    %272 = vector.extract_strided_slice %3 {offsets = [8, 2], sizes = [2, 18], strides = [1, 1]} : vector<10x20xf32> to vector<2x18xf32>
    %273 = vector.broadcast %271 : f32 to vector<2x18xf32>
    %274 = arith.mulf %273, %272 : vector<2x18xf32>
    %275 = arith.addf %270, %274 : vector<2x18xf32>
    %c2_32 = arith.constant 2 : index
    %276 = memref.load %arg8[%c2_32] : memref<5xf32, #tpu.memory_space<smem>>
    %277 = vector.broadcast %276 : f32 to vector<2x18xf32>
    %278 = arith.addf %275, %277 : vector<2x18xf32>
    %c4_33 = arith.constant 4 : index
    %c0_34 = arith.constant 0 : index
    %279 = vector.load %arg23[%c4_33, %c0_34] : memref<10x18xf32, #tpu.memory_space<vmem>>, vector<2x18xf32>
    tpu.vector_store %arg23[%c4_33, %c0_34], %278 {strides = array<i32>} : memref<10x18xf32, #tpu.memory_space<vmem>>, vector<2x18xf32>,
    %cst_35 = arith.constant 0.000000e+00 : f32
    %280 = vector.broadcast %cst_35 : f32 to vector<2x18xf32>
    %c45 = arith.constant 45 : index
    %281 = memref.load %arg7[%c45] : memref<75xf32, #tpu.memory_space<smem>>
    %282 = vector.extract_strided_slice %3 {offsets = [0, 0], sizes = [2, 18], strides = [1, 1]} : vector<10x20xf32> to vector<2x18xf32>
    %283 = vector.broadcast %281 : f32 to vector<2x18xf32>
    %284 = arith.mulf %283, %282 : vector<2x18xf32>
    %285 = arith.addf %280, %284 : vector<2x18xf32>
    %c46 = arith.constant 46 : index
    %286 = memref.load %arg7[%c46] : memref<75xf32, #tpu.memory_space<smem>>
    %287 = vector.extract_strided_slice %3 {offsets = [0, 1], sizes = [2, 18], strides = [1, 1]} : vector<10x20xf32> to vector<2x18xf32>
    %288 = vector.broadcast %286 : f32 to vector<2x18xf32>
    %289 = arith.mulf %288, %287 : vector<2x18xf32>
    %290 = arith.addf %285, %289 : vector<2x18xf32>
    %c47 = arith.constant 47 : index
    %291 = memref.load %arg7[%c47] : memref<75xf32, #tpu.memory_space<smem>>
    %292 = vector.extract_strided_slice %3 {offsets = [0, 2], sizes = [2, 18], strides = [1, 1]} : vector<10x20xf32> to vector<2x18xf32>
    %293 = vector.broadcast %291 : f32 to vector<2x18xf32>
    %294 = arith.mulf %293, %292 : vector<2x18xf32>
    %295 = arith.addf %290, %294 : vector<2x18xf32>
    %c48 = arith.constant 48 : index
    %296 = memref.load %arg7[%c48] : memref<75xf32, #tpu.memory_space<smem>>
    %297 = vector.extract_strided_slice %3 {offsets = [2, 0], sizes = [2, 18], strides = [1, 1]} : vector<10x20xf32> to vector<2x18xf32>
    %298 = vector.broadcast %296 : f32 to vector<2x18xf32>
    %299 = arith.mulf %298, %297 : vector<2x18xf32>
    %300 = arith.addf %295, %299 : vector<2x18xf32>
    %c49 = arith.constant 49 : index
    %301 = memref.load %arg7[%c49] : memref<75xf32, #tpu.memory_space<smem>>
    %302 = vector.extract_strided_slice %3 {offsets = [2, 1], sizes = [2, 18], strides = [1, 1]} : vector<10x20xf32> to vector<2x18xf32>
    %303 = vector.broadcast %301 : f32 to vector<2x18xf32>
    %304 = arith.mulf %303, %302 : vector<2x18xf32>
    %305 = arith.addf %300, %304 : vector<2x18xf32>
    %c50 = arith.constant 50 : index
    %306 = memref.load %arg7[%c50] : memref<75xf32, #tpu.memory_space<smem>>
    %307 = vector.extract_strided_slice %3 {offsets = [2, 2], sizes = [2, 18], strides = [1, 1]} : vector<10x20xf32> to vector<2x18xf32>
    %308 = vector.broadcast %306 : f32 to vector<2x18xf32>
    %309 = arith.mulf %308, %307 : vector<2x18xf32>
    %310 = arith.addf %305, %309 : vector<2x18xf32>
    %c51 = arith.constant 51 : index
    %311 = memref.load %arg7[%c51] : memref<75xf32, #tpu.memory_space<smem>>
    %312 = vector.extract_strided_slice %3 {offsets = [4, 0], sizes = [2, 18], strides = [1, 1]} : vector<10x20xf32> to vector<2x18xf32>
    %313 = vector.broadcast %311 : f32 to vector<2x18xf32>
    %314 = arith.mulf %313, %312 : vector<2x18xf32>
    %315 = arith.addf %310, %314 : vector<2x18xf32>
    %c52 = arith.constant 52 : index
    %316 = memref.load %arg7[%c52] : memref<75xf32, #tpu.memory_space<smem>>
    %317 = vector.extract_strided_slice %3 {offsets = [4, 1], sizes = [2, 18], strides = [1, 1]} : vector<10x20xf32> to vector<2x18xf32>
    %318 = vector.broadcast %316 : f32 to vector<2x18xf32>
    %319 = arith.mulf %318, %317 : vector<2x18xf32>
    %320 = arith.addf %315, %319 : vector<2x18xf32>
    %c53 = arith.constant 53 : index
    %321 = memref.load %arg7[%c53] : memref<75xf32, #tpu.memory_space<smem>>
    %322 = vector.extract_strided_slice %3 {offsets = [4, 2], sizes = [2, 18], strides = [1, 1]} : vector<10x20xf32> to vector<2x18xf32>
    %323 = vector.broadcast %321 : f32 to vector<2x18xf32>
    %324 = arith.mulf %323, %322 : vector<2x18xf32>
    %325 = arith.addf %320, %324 : vector<2x18xf32>
    %c54 = arith.constant 54 : index
    %326 = memref.load %arg7[%c54] : memref<75xf32, #tpu.memory_space<smem>>
    %327 = vector.extract_strided_slice %3 {offsets = [6, 0], sizes = [2, 18], strides = [1, 1]} : vector<10x20xf32> to vector<2x18xf32>
    %328 = vector.broadcast %326 : f32 to vector<2x18xf32>
    %329 = arith.mulf %328, %327 : vector<2x18xf32>
    %330 = arith.addf %325, %329 : vector<2x18xf32>
    %c55 = arith.constant 55 : index
    %331 = memref.load %arg7[%c55] : memref<75xf32, #tpu.memory_space<smem>>
    %332 = vector.extract_strided_slice %3 {offsets = [6, 1], sizes = [2, 18], strides = [1, 1]} : vector<10x20xf32> to vector<2x18xf32>
    %333 = vector.broadcast %331 : f32 to vector<2x18xf32>
    %334 = arith.mulf %333, %332 : vector<2x18xf32>
    %335 = arith.addf %330, %334 : vector<2x18xf32>
    %c56 = arith.constant 56 : index
    %336 = memref.load %arg7[%c56] : memref<75xf32, #tpu.memory_space<smem>>
    %337 = vector.extract_strided_slice %3 {offsets = [6, 2], sizes = [2, 18], strides = [1, 1]} : vector<10x20xf32> to vector<2x18xf32>
    %338 = vector.broadcast %336 : f32 to vector<2x18xf32>
    %339 = arith.mulf %338, %337 : vector<2x18xf32>
    %340 = arith.addf %335, %339 : vector<2x18xf32>
    %c57 = arith.constant 57 : index
    %341 = memref.load %arg7[%c57] : memref<75xf32, #tpu.memory_space<smem>>
    %342 = vector.extract_strided_slice %3 {offsets = [8, 0], sizes = [2, 18], strides = [1, 1]} : vector<10x20xf32> to vector<2x18xf32>
    %343 = vector.broadcast %341 : f32 to vector<2x18xf32>
    %344 = arith.mulf %343, %342 : vector<2x18xf32>
    %345 = arith.addf %340, %344 : vector<2x18xf32>
    %c58 = arith.constant 58 : index
    %346 = memref.load %arg7[%c58] : memref<75xf32, #tpu.memory_space<smem>>
    %347 = vector.extract_strided_slice %3 {offsets = [8, 1], sizes = [2, 18], strides = [1, 1]} : vector<10x20xf32> to vector<2x18xf32>
    %348 = vector.broadcast %346 : f32 to vector<2x18xf32>
    %349 = arith.mulf %348, %347 : vector<2x18xf32>
    %350 = arith.addf %345, %349 : vector<2x18xf32>
    %c59 = arith.constant 59 : index
    %351 = memref.load %arg7[%c59] : memref<75xf32, #tpu.memory_space<smem>>
    %352 = vector.extract_strided_slice %3 {offsets = [8, 2], sizes = [2, 18], strides = [1, 1]} : vector<10x20xf32> to vector<2x18xf32>
    %353 = vector.broadcast %351 : f32 to vector<2x18xf32>
    %354 = arith.mulf %353, %352 : vector<2x18xf32>
    %355 = arith.addf %350, %354 : vector<2x18xf32>
    %c3_36 = arith.constant 3 : index
    %356 = memref.load %arg8[%c3_36] : memref<5xf32, #tpu.memory_space<smem>>
    %357 = vector.broadcast %356 : f32 to vector<2x18xf32>
    %358 = arith.addf %355, %357 : vector<2x18xf32>
    %c6_37 = arith.constant 6 : index
    %c0_38 = arith.constant 0 : index
    %359 = vector.load %arg23[%c6_37, %c0_38] : memref<10x18xf32, #tpu.memory_space<vmem>>, vector<2x18xf32>
    tpu.vector_store %arg23[%c6_37, %c0_38], %358 {strides = array<i32>} : memref<10x18xf32, #tpu.memory_space<vmem>>, vector<2x18xf32>,
    %cst_39 = arith.constant 0.000000e+00 : f32
    %360 = vector.broadcast %cst_39 : f32 to vector<2x18xf32>
    %c60 = arith.constant 60 : index
    %361 = memref.load %arg7[%c60] : memref<75xf32, #tpu.memory_space<smem>>
    %362 = vector.extract_strided_slice %3 {offsets = [0, 0], sizes = [2, 18], strides = [1, 1]} : vector<10x20xf32> to vector<2x18xf32>
    %363 = vector.broadcast %361 : f32 to vector<2x18xf32>
    %364 = arith.mulf %363, %362 : vector<2x18xf32>
    %365 = arith.addf %360, %364 : vector<2x18xf32>
    %c61 = arith.constant 61 : index
    %366 = memref.load %arg7[%c61] : memref<75xf32, #tpu.memory_space<smem>>
    %367 = vector.extract_strided_slice %3 {offsets = [0, 1], sizes = [2, 18], strides = [1, 1]} : vector<10x20xf32> to vector<2x18xf32>
    %368 = vector.broadcast %366 : f32 to vector<2x18xf32>
    %369 = arith.mulf %368, %367 : vector<2x18xf32>
    %370 = arith.addf %365, %369 : vector<2x18xf32>
    %c62 = arith.constant 62 : index
    %371 = memref.load %arg7[%c62] : memref<75xf32, #tpu.memory_space<smem>>
    %372 = vector.extract_strided_slice %3 {offsets = [0, 2], sizes = [2, 18], strides = [1, 1]} : vector<10x20xf32> to vector<2x18xf32>
    %373 = vector.broadcast %371 : f32 to vector<2x18xf32>
    %374 = arith.mulf %373, %372 : vector<2x18xf32>
    %375 = arith.addf %370, %374 : vector<2x18xf32>
    %c63 = arith.constant 63 : index
    %376 = memref.load %arg7[%c63] : memref<75xf32, #tpu.memory_space<smem>>
    %377 = vector.extract_strided_slice %3 {offsets = [2, 0], sizes = [2, 18], strides = [1, 1]} : vector<10x20xf32> to vector<2x18xf32>
    %378 = vector.broadcast %376 : f32 to vector<2x18xf32>
    %379 = arith.mulf %378, %377 : vector<2x18xf32>
    %380 = arith.addf %375, %379 : vector<2x18xf32>
    %c64 = arith.constant 64 : index
    %381 = memref.load %arg7[%c64] : memref<75xf32, #tpu.memory_space<smem>>
    %382 = vector.extract_strided_slice %3 {offsets = [2, 1], sizes = [2, 18], strides = [1, 1]} : vector<10x20xf32> to vector<2x18xf32>
    %383 = vector.broadcast %381 : f32 to vector<2x18xf32>
    %384 = arith.mulf %383, %382 : vector<2x18xf32>
    %385 = arith.addf %380, %384 : vector<2x18xf32>
    %c65 = arith.constant 65 : index
    %386 = memref.load %arg7[%c65] : memref<75xf32, #tpu.memory_space<smem>>
    %387 = vector.extract_strided_slice %3 {offsets = [2, 2], sizes = [2, 18], strides = [1, 1]} : vector<10x20xf32> to vector<2x18xf32>
    %388 = vector.broadcast %386 : f32 to vector<2x18xf32>
    %389 = arith.mulf %388, %387 : vector<2x18xf32>
    %390 = arith.addf %385, %389 : vector<2x18xf32>
    %c66 = arith.constant 66 : index
    %391 = memref.load %arg7[%c66] : memref<75xf32, #tpu.memory_space<smem>>
    %392 = vector.extract_strided_slice %3 {offsets = [4, 0], sizes = [2, 18], strides = [1, 1]} : vector<10x20xf32> to vector<2x18xf32>
    %393 = vector.broadcast %391 : f32 to vector<2x18xf32>
    %394 = arith.mulf %393, %392 : vector<2x18xf32>
    %395 = arith.addf %390, %394 : vector<2x18xf32>
    %c67 = arith.constant 67 : index
    %396 = memref.load %arg7[%c67] : memref<75xf32, #tpu.memory_space<smem>>
    %397 = vector.extract_strided_slice %3 {offsets = [4, 1], sizes = [2, 18], strides = [1, 1]} : vector<10x20xf32> to vector<2x18xf32>
    %398 = vector.broadcast %396 : f32 to vector<2x18xf32>
    %399 = arith.mulf %398, %397 : vector<2x18xf32>
    %400 = arith.addf %395, %399 : vector<2x18xf32>
    %c68 = arith.constant 68 : index
    %401 = memref.load %arg7[%c68] : memref<75xf32, #tpu.memory_space<smem>>
    %402 = vector.extract_strided_slice %3 {offsets = [4, 2], sizes = [2, 18], strides = [1, 1]} : vector<10x20xf32> to vector<2x18xf32>
    %403 = vector.broadcast %401 : f32 to vector<2x18xf32>
    %404 = arith.mulf %403, %402 : vector<2x18xf32>
    %405 = arith.addf %400, %404 : vector<2x18xf32>
    %c69 = arith.constant 69 : index
    %406 = memref.load %arg7[%c69] : memref<75xf32, #tpu.memory_space<smem>>
    %407 = vector.extract_strided_slice %3 {offsets = [6, 0], sizes = [2, 18], strides = [1, 1]} : vector<10x20xf32> to vector<2x18xf32>
    %408 = vector.broadcast %406 : f32 to vector<2x18xf32>
    %409 = arith.mulf %408, %407 : vector<2x18xf32>
    %410 = arith.addf %405, %409 : vector<2x18xf32>
    %c70 = arith.constant 70 : index
    %411 = memref.load %arg7[%c70] : memref<75xf32, #tpu.memory_space<smem>>
    %412 = vector.extract_strided_slice %3 {offsets = [6, 1], sizes = [2, 18], strides = [1, 1]} : vector<10x20xf32> to vector<2x18xf32>
    %413 = vector.broadcast %411 : f32 to vector<2x18xf32>
    %414 = arith.mulf %413, %412 : vector<2x18xf32>
    %415 = arith.addf %410, %414 : vector<2x18xf32>
    %c71 = arith.constant 71 : index
    %416 = memref.load %arg7[%c71] : memref<75xf32, #tpu.memory_space<smem>>
    %417 = vector.extract_strided_slice %3 {offsets = [6, 2], sizes = [2, 18], strides = [1, 1]} : vector<10x20xf32> to vector<2x18xf32>
    %418 = vector.broadcast %416 : f32 to vector<2x18xf32>
    %419 = arith.mulf %418, %417 : vector<2x18xf32>
    %420 = arith.addf %415, %419 : vector<2x18xf32>
    %c72 = arith.constant 72 : index
    %421 = memref.load %arg7[%c72] : memref<75xf32, #tpu.memory_space<smem>>
    %422 = vector.extract_strided_slice %3 {offsets = [8, 0], sizes = [2, 18], strides = [1, 1]} : vector<10x20xf32> to vector<2x18xf32>
    %423 = vector.broadcast %421 : f32 to vector<2x18xf32>
    %424 = arith.mulf %423, %422 : vector<2x18xf32>
    %425 = arith.addf %420, %424 : vector<2x18xf32>
    %c73 = arith.constant 73 : index
    %426 = memref.load %arg7[%c73] : memref<75xf32, #tpu.memory_space<smem>>
    %427 = vector.extract_strided_slice %3 {offsets = [8, 1], sizes = [2, 18], strides = [1, 1]} : vector<10x20xf32> to vector<2x18xf32>
    %428 = vector.broadcast %426 : f32 to vector<2x18xf32>
    %429 = arith.mulf %428, %427 : vector<2x18xf32>
    %430 = arith.addf %425, %429 : vector<2x18xf32>
    %c74 = arith.constant 74 : index
    %431 = memref.load %arg7[%c74] : memref<75xf32, #tpu.memory_space<smem>>
    %432 = vector.extract_strided_slice %3 {offsets = [8, 2], sizes = [2, 18], strides = [1, 1]} : vector<10x20xf32> to vector<2x18xf32>
    %433 = vector.broadcast %431 : f32 to vector<2x18xf32>
    %434 = arith.mulf %433, %432 : vector<2x18xf32>
    %435 = arith.addf %430, %434 : vector<2x18xf32>
    %c4_40 = arith.constant 4 : index
    %436 = memref.load %arg8[%c4_40] : memref<5xf32, #tpu.memory_space<smem>>
    %437 = vector.broadcast %436 : f32 to vector<2x18xf32>
    %438 = arith.addf %435, %437 : vector<2x18xf32>
    %c8_41 = arith.constant 8 : index
    %c0_42 = arith.constant 0 : index
    %439 = vector.load %arg23[%c8_41, %c0_42] : memref<10x18xf32, #tpu.memory_space<vmem>>, vector<2x18xf32>
    tpu.vector_store %arg23[%c8_41, %c0_42], %438 {strides = array<i32>} : memref<10x18xf32, #tpu.memory_space<vmem>>, vector<2x18xf32>,
    %c0_43 = arith.constant 0 : index
    %c0_44 = arith.constant 0 : index
    %440 = vector.load %arg23[%c0_43, %c0_44] : memref<10x18xf32, #tpu.memory_space<vmem>>, vector<10x18xf32>
    %c0_45 = arith.constant 0 : index
    %c0_46 = arith.constant 0 : index
    %441 = vector.load %arg9[%c0_45, %c0_46] : memref<18x128xf32, #tpu.memory_space<vmem>>, vector<18x128xf32>
    %cst_47 = arith.constant dense<0.000000e+00> : vector<10x128xf32>
    %442 = tpu.matmul %440, %441, %cst_47 {dimension_numbers = #tpu.dot_dimension_numbers<[1], [0], [0], [1], [0, 0, 1, 1], [], []>} : vector<10x18xf32>, vector<18x128xf32>, vector<10x128xf32> -> vector<10x128xf32>
    %c0_48 = arith.constant 0 : index
    %c0_49 = arith.constant 0 : index
    %443 = vector.load %arg11[%c0_48, %c0_49] : memref<1x128xf32, #tpu.memory_space<vmem>>, vector<1x128xf32>
    %444 = vector.broadcast %443 : vector<1x128xf32> to vector<10x128xf32>
    %445 = arith.addf %442, %444 : vector<10x128xf32>
    %c0_50 = arith.constant 0 : index
    %c0_51 = arith.constant 0 : index
    %446 = vector.load %arg10[%c0_50, %c0_51] : memref<32x128xf32, #tpu.memory_space<vmem>>, vector<32x128xf32>
    %cst_52 = arith.constant 0.000000e+00 : f32
    %447 = vector.broadcast %cst_52 : f32 to vector<2x32xf32>
    %cst_53 = arith.constant 0.000000e+00 : f32
    %448 = vector.broadcast %cst_53 : f32 to vector<2x32xf32>
    %449 = vector.extract_strided_slice %445 {offsets = [0, 0], sizes = [2, 128], strides = [1, 1]} : vector<10x128xf32> to vector<2x128xf32>
    %cst_54 = arith.constant dense<0.000000e+00> : vector<2x128xf32>
    %450 = tpu.matmul %447, %446, %cst_54 {dimension_numbers = #tpu.dot_dimension_numbers<[1], [0], [0], [1], [0, 0, 1, 1], [], []>} : vector<2x32xf32>, vector<32x128xf32>, vector<2x128xf32> -> vector<2x128xf32>
    %451 = arith.addf %449, %450 : vector<2x128xf32>
    %452 = vector.extract_strided_slice %451 {offsets = [0, 0], sizes = [2, 32], strides = [1, 1]} : vector<2x128xf32> to vector<2x32xf32>
    %cst_55 = arith.constant 0.000000e+00 : f32
    %453 = vector.broadcast %cst_55 : f32 to vector<2x32xf32>
    %454 = arith.subf %453, %452 : vector<2x32xf32>
    %455 = math.exp %454 : vector<2x32xf32>
    %cst_56 = arith.constant 1.000000e+00 : f32
    %456 = vector.broadcast %cst_56 : f32 to vector<2x32xf32>
    %457 = arith.addf %456, %455 : vector<2x32xf32>
    %458 = tpu.reciprocal %457 {approx = true} : vector<2x32xf32> -> vector<2x32xf32>
    %459 = vector.extract_strided_slice %451 {offsets = [0, 32], sizes = [2, 32], strides = [1, 1]} : vector<2x128xf32> to vector<2x32xf32>
    %cst_57 = arith.constant 0.000000e+00 : f32
    %460 = vector.broadcast %cst_57 : f32 to vector<2x32xf32>
    %461 = arith.subf %460, %459 : vector<2x32xf32>
    %462 = math.exp %461 : vector<2x32xf32>
    %cst_58 = arith.constant 1.000000e+00 : f32
    %463 = vector.broadcast %cst_58 : f32 to vector<2x32xf32>
    %464 = arith.addf %463, %462 : vector<2x32xf32>
    %465 = tpu.reciprocal %464 {approx = true} : vector<2x32xf32> -> vector<2x32xf32>
    %466 = vector.extract_strided_slice %451 {offsets = [0, 64], sizes = [2, 32], strides = [1, 1]} : vector<2x128xf32> to vector<2x32xf32>
    %467 = math.tanh %466 : vector<2x32xf32>
    %468 = vector.extract_strided_slice %451 {offsets = [0, 96], sizes = [2, 32], strides = [1, 1]} : vector<2x128xf32> to vector<2x32xf32>
    %cst_59 = arith.constant 0.000000e+00 : f32
    %469 = vector.broadcast %cst_59 : f32 to vector<2x32xf32>
    %470 = arith.subf %469, %468 : vector<2x32xf32>
    %471 = math.exp %470 : vector<2x32xf32>
    %cst_60 = arith.constant 1.000000e+00 : f32
    %472 = vector.broadcast %cst_60 : f32 to vector<2x32xf32>
    %473 = arith.addf %472, %471 : vector<2x32xf32>
    %474 = tpu.reciprocal %473 {approx = true} : vector<2x32xf32> -> vector<2x32xf32>
    %475 = arith.mulf %465, %448 : vector<2x32xf32>
    %476 = arith.mulf %458, %467 : vector<2x32xf32>
    %477 = arith.addf %475, %476 : vector<2x32xf32>
    %478 = math.tanh %477 : vector<2x32xf32>
    %479 = arith.mulf %474, %478 : vector<2x32xf32>
    %c0_61 = arith.constant 0 : index
    %c0_62 = arith.constant 0 : index
    %480 = vector.load %arg24[%c0_61, %c0_62] : memref<10x32xf32, #tpu.memory_space<vmem>>, vector<2x32xf32>
    tpu.vector_store %arg24[%c0_61, %c0_62], %479 {strides = array<i32>} : memref<10x32xf32, #tpu.memory_space<vmem>>, vector<2x32xf32>,
    %481 = vector.extract_strided_slice %445 {offsets = [2, 0], sizes = [2, 128], strides = [1, 1]} : vector<10x128xf32> to vector<2x128xf32>
    %cst_63 = arith.constant dense<0.000000e+00> : vector<2x128xf32>
    %482 = tpu.matmul %479, %446, %cst_63 {dimension_numbers = #tpu.dot_dimension_numbers<[1], [0], [0], [1], [0, 0, 1, 1], [], []>} : vector<2x32xf32>, vector<32x128xf32>, vector<2x128xf32> -> vector<2x128xf32>
    %483 = arith.addf %481, %482 : vector<2x128xf32>
    %484 = vector.extract_strided_slice %483 {offsets = [0, 0], sizes = [2, 32], strides = [1, 1]} : vector<2x128xf32> to vector<2x32xf32>
    %cst_64 = arith.constant 0.000000e+00 : f32
    %485 = vector.broadcast %cst_64 : f32 to vector<2x32xf32>
    %486 = arith.subf %485, %484 : vector<2x32xf32>
    %487 = math.exp %486 : vector<2x32xf32>
    %cst_65 = arith.constant 1.000000e+00 : f32
    %488 = vector.broadcast %cst_65 : f32 to vector<2x32xf32>
    %489 = arith.addf %488, %487 : vector<2x32xf32>
    %490 = tpu.reciprocal %489 {approx = true} : vector<2x32xf32> -> vector<2x32xf32>
    %491 = vector.extract_strided_slice %483 {offsets = [0, 32], sizes = [2, 32], strides = [1, 1]} : vector<2x128xf32> to vector<2x32xf32>
    %cst_66 = arith.constant 0.000000e+00 : f32
    %492 = vector.broadcast %cst_66 : f32 to vector<2x32xf32>
    %493 = arith.subf %492, %491 : vector<2x32xf32>
    %494 = math.exp %493 : vector<2x32xf32>
    %cst_67 = arith.constant 1.000000e+00 : f32
    %495 = vector.broadcast %cst_67 : f32 to vector<2x32xf32>
    %496 = arith.addf %495, %494 : vector<2x32xf32>
    %497 = tpu.reciprocal %496 {approx = true} : vector<2x32xf32> -> vector<2x32xf32>
    %498 = vector.extract_strided_slice %483 {offsets = [0, 64], sizes = [2, 32], strides = [1, 1]} : vector<2x128xf32> to vector<2x32xf32>
    %499 = math.tanh %498 : vector<2x32xf32>
    %500 = vector.extract_strided_slice %483 {offsets = [0, 96], sizes = [2, 32], strides = [1, 1]} : vector<2x128xf32> to vector<2x32xf32>
    %cst_68 = arith.constant 0.000000e+00 : f32
    %501 = vector.broadcast %cst_68 : f32 to vector<2x32xf32>
    %502 = arith.subf %501, %500 : vector<2x32xf32>
    %503 = math.exp %502 : vector<2x32xf32>
    %cst_69 = arith.constant 1.000000e+00 : f32
    %504 = vector.broadcast %cst_69 : f32 to vector<2x32xf32>
    %505 = arith.addf %504, %503 : vector<2x32xf32>
    %506 = tpu.reciprocal %505 {approx = true} : vector<2x32xf32> -> vector<2x32xf32>
    %507 = arith.mulf %497, %477 : vector<2x32xf32>
    %508 = arith.mulf %490, %499 : vector<2x32xf32>
    %509 = arith.addf %507, %508 : vector<2x32xf32>
    %510 = math.tanh %509 : vector<2x32xf32>
    %511 = arith.mulf %506, %510 : vector<2x32xf32>
    %c2_70 = arith.constant 2 : index
    %c0_71 = arith.constant 0 : index
    %512 = vector.load %arg24[%c2_70, %c0_71] : memref<10x32xf32, #tpu.memory_space<vmem>>, vector<2x32xf32>
    tpu.vector_store %arg24[%c2_70, %c0_71], %511 {strides = array<i32>} : memref<10x32xf32, #tpu.memory_space<vmem>>, vector<2x32xf32>,
    %513 = vector.extract_strided_slice %445 {offsets = [4, 0], sizes = [2, 128], strides = [1, 1]} : vector<10x128xf32> to vector<2x128xf32>
    %cst_72 = arith.constant dense<0.000000e+00> : vector<2x128xf32>
    %514 = tpu.matmul %511, %446, %cst_72 {dimension_numbers = #tpu.dot_dimension_numbers<[1], [0], [0], [1], [0, 0, 1, 1], [], []>} : vector<2x32xf32>, vector<32x128xf32>, vector<2x128xf32> -> vector<2x128xf32>
    %515 = arith.addf %513, %514 : vector<2x128xf32>
    %516 = vector.extract_strided_slice %515 {offsets = [0, 0], sizes = [2, 32], strides = [1, 1]} : vector<2x128xf32> to vector<2x32xf32>
    %cst_73 = arith.constant 0.000000e+00 : f32
    %517 = vector.broadcast %cst_73 : f32 to vector<2x32xf32>
    %518 = arith.subf %517, %516 : vector<2x32xf32>
    %519 = math.exp %518 : vector<2x32xf32>
    %cst_74 = arith.constant 1.000000e+00 : f32
    %520 = vector.broadcast %cst_74 : f32 to vector<2x32xf32>
    %521 = arith.addf %520, %519 : vector<2x32xf32>
    %522 = tpu.reciprocal %521 {approx = true} : vector<2x32xf32> -> vector<2x32xf32>
    %523 = vector.extract_strided_slice %515 {offsets = [0, 32], sizes = [2, 32], strides = [1, 1]} : vector<2x128xf32> to vector<2x32xf32>
    %cst_75 = arith.constant 0.000000e+00 : f32
    %524 = vector.broadcast %cst_75 : f32 to vector<2x32xf32>
    %525 = arith.subf %524, %523 : vector<2x32xf32>
    %526 = math.exp %525 : vector<2x32xf32>
    %cst_76 = arith.constant 1.000000e+00 : f32
    %527 = vector.broadcast %cst_76 : f32 to vector<2x32xf32>
    %528 = arith.addf %527, %526 : vector<2x32xf32>
    %529 = tpu.reciprocal %528 {approx = true} : vector<2x32xf32> -> vector<2x32xf32>
    %530 = vector.extract_strided_slice %515 {offsets = [0, 64], sizes = [2, 32], strides = [1, 1]} : vector<2x128xf32> to vector<2x32xf32>
    %531 = math.tanh %530 : vector<2x32xf32>
    %532 = vector.extract_strided_slice %515 {offsets = [0, 96], sizes = [2, 32], strides = [1, 1]} : vector<2x128xf32> to vector<2x32xf32>
    %cst_77 = arith.constant 0.000000e+00 : f32
    %533 = vector.broadcast %cst_77 : f32 to vector<2x32xf32>
    %534 = arith.subf %533, %532 : vector<2x32xf32>
    %535 = math.exp %534 : vector<2x32xf32>
    %cst_78 = arith.constant 1.000000e+00 : f32
    %536 = vector.broadcast %cst_78 : f32 to vector<2x32xf32>
    %537 = arith.addf %536, %535 : vector<2x32xf32>
    %538 = tpu.reciprocal %537 {approx = true} : vector<2x32xf32> -> vector<2x32xf32>
    %539 = arith.mulf %529, %509 : vector<2x32xf32>
    %540 = arith.mulf %522, %531 : vector<2x32xf32>
    %541 = arith.addf %539, %540 : vector<2x32xf32>
    %542 = math.tanh %541 : vector<2x32xf32>
    %543 = arith.mulf %538, %542 : vector<2x32xf32>
    %c4_79 = arith.constant 4 : index
    %c0_80 = arith.constant 0 : index
    %544 = vector.load %arg24[%c4_79, %c0_80] : memref<10x32xf32, #tpu.memory_space<vmem>>, vector<2x32xf32>
    tpu.vector_store %arg24[%c4_79, %c0_80], %543 {strides = array<i32>} : memref<10x32xf32, #tpu.memory_space<vmem>>, vector<2x32xf32>,
    %545 = vector.extract_strided_slice %445 {offsets = [6, 0], sizes = [2, 128], strides = [1, 1]} : vector<10x128xf32> to vector<2x128xf32>
    %cst_81 = arith.constant dense<0.000000e+00> : vector<2x128xf32>
    %546 = tpu.matmul %543, %446, %cst_81 {dimension_numbers = #tpu.dot_dimension_numbers<[1], [0], [0], [1], [0, 0, 1, 1], [], []>} : vector<2x32xf32>, vector<32x128xf32>, vector<2x128xf32> -> vector<2x128xf32>
    %547 = arith.addf %545, %546 : vector<2x128xf32>
    %548 = vector.extract_strided_slice %547 {offsets = [0, 0], sizes = [2, 32], strides = [1, 1]} : vector<2x128xf32> to vector<2x32xf32>
    %cst_82 = arith.constant 0.000000e+00 : f32
    %549 = vector.broadcast %cst_82 : f32 to vector<2x32xf32>
    %550 = arith.subf %549, %548 : vector<2x32xf32>
    %551 = math.exp %550 : vector<2x32xf32>
    %cst_83 = arith.constant 1.000000e+00 : f32
    %552 = vector.broadcast %cst_83 : f32 to vector<2x32xf32>
    %553 = arith.addf %552, %551 : vector<2x32xf32>
    %554 = tpu.reciprocal %553 {approx = true} : vector<2x32xf32> -> vector<2x32xf32>
    %555 = vector.extract_strided_slice %547 {offsets = [0, 32], sizes = [2, 32], strides = [1, 1]} : vector<2x128xf32> to vector<2x32xf32>
    %cst_84 = arith.constant 0.000000e+00 : f32
    %556 = vector.broadcast %cst_84 : f32 to vector<2x32xf32>
    %557 = arith.subf %556, %555 : vector<2x32xf32>
    %558 = math.exp %557 : vector<2x32xf32>
    %cst_85 = arith.constant 1.000000e+00 : f32
    %559 = vector.broadcast %cst_85 : f32 to vector<2x32xf32>
    %560 = arith.addf %559, %558 : vector<2x32xf32>
    %561 = tpu.reciprocal %560 {approx = true} : vector<2x32xf32> -> vector<2x32xf32>
    %562 = vector.extract_strided_slice %547 {offsets = [0, 64], sizes = [2, 32], strides = [1, 1]} : vector<2x128xf32> to vector<2x32xf32>
    %563 = math.tanh %562 : vector<2x32xf32>
    %564 = vector.extract_strided_slice %547 {offsets = [0, 96], sizes = [2, 32], strides = [1, 1]} : vector<2x128xf32> to vector<2x32xf32>
    %cst_86 = arith.constant 0.000000e+00 : f32
    %565 = vector.broadcast %cst_86 : f32 to vector<2x32xf32>
    %566 = arith.subf %565, %564 : vector<2x32xf32>
    %567 = math.exp %566 : vector<2x32xf32>
    %cst_87 = arith.constant 1.000000e+00 : f32
    %568 = vector.broadcast %cst_87 : f32 to vector<2x32xf32>
    %569 = arith.addf %568, %567 : vector<2x32xf32>
    %570 = tpu.reciprocal %569 {approx = true} : vector<2x32xf32> -> vector<2x32xf32>
    %571 = arith.mulf %561, %541 : vector<2x32xf32>
    %572 = arith.mulf %554, %563 : vector<2x32xf32>
    %573 = arith.addf %571, %572 : vector<2x32xf32>
    %574 = math.tanh %573 : vector<2x32xf32>
    %575 = arith.mulf %570, %574 : vector<2x32xf32>
    %c6_88 = arith.constant 6 : index
    %c0_89 = arith.constant 0 : index
    %576 = vector.load %arg24[%c6_88, %c0_89] : memref<10x32xf32, #tpu.memory_space<vmem>>, vector<2x32xf32>
    tpu.vector_store %arg24[%c6_88, %c0_89], %575 {strides = array<i32>} : memref<10x32xf32, #tpu.memory_space<vmem>>, vector<2x32xf32>,
    %577 = vector.extract_strided_slice %445 {offsets = [8, 0], sizes = [2, 128], strides = [1, 1]} : vector<10x128xf32> to vector<2x128xf32>
    %cst_90 = arith.constant dense<0.000000e+00> : vector<2x128xf32>
    %578 = tpu.matmul %575, %446, %cst_90 {dimension_numbers = #tpu.dot_dimension_numbers<[1], [0], [0], [1], [0, 0, 1, 1], [], []>} : vector<2x32xf32>, vector<32x128xf32>, vector<2x128xf32> -> vector<2x128xf32>
    %579 = arith.addf %577, %578 : vector<2x128xf32>
    %580 = vector.extract_strided_slice %579 {offsets = [0, 0], sizes = [2, 32], strides = [1, 1]} : vector<2x128xf32> to vector<2x32xf32>
    %cst_91 = arith.constant 0.000000e+00 : f32
    %581 = vector.broadcast %cst_91 : f32 to vector<2x32xf32>
    %582 = arith.subf %581, %580 : vector<2x32xf32>
    %583 = math.exp %582 : vector<2x32xf32>
    %cst_92 = arith.constant 1.000000e+00 : f32
    %584 = vector.broadcast %cst_92 : f32 to vector<2x32xf32>
    %585 = arith.addf %584, %583 : vector<2x32xf32>
    %586 = tpu.reciprocal %585 {approx = true} : vector<2x32xf32> -> vector<2x32xf32>
    %587 = vector.extract_strided_slice %579 {offsets = [0, 32], sizes = [2, 32], strides = [1, 1]} : vector<2x128xf32> to vector<2x32xf32>
    %cst_93 = arith.constant 0.000000e+00 : f32
    %588 = vector.broadcast %cst_93 : f32 to vector<2x32xf32>
    %589 = arith.subf %588, %587 : vector<2x32xf32>
    %590 = math.exp %589 : vector<2x32xf32>
    %cst_94 = arith.constant 1.000000e+00 : f32
    %591 = vector.broadcast %cst_94 : f32 to vector<2x32xf32>
    %592 = arith.addf %591, %590 : vector<2x32xf32>
    %593 = tpu.reciprocal %592 {approx = true} : vector<2x32xf32> -> vector<2x32xf32>
    %594 = vector.extract_strided_slice %579 {offsets = [0, 64], sizes = [2, 32], strides = [1, 1]} : vector<2x128xf32> to vector<2x32xf32>
    %595 = math.tanh %594 : vector<2x32xf32>
    %596 = vector.extract_strided_slice %579 {offsets = [0, 96], sizes = [2, 32], strides = [1, 1]} : vector<2x128xf32> to vector<2x32xf32>
    %cst_95 = arith.constant 0.000000e+00 : f32
    %597 = vector.broadcast %cst_95 : f32 to vector<2x32xf32>
    %598 = arith.subf %597, %596 : vector<2x32xf32>
    %599 = math.exp %598 : vector<2x32xf32>
    %cst_96 = arith.constant 1.000000e+00 : f32
    %600 = vector.broadcast %cst_96 : f32 to vector<2x32xf32>
    %601 = arith.addf %600, %599 : vector<2x32xf32>
    %602 = tpu.reciprocal %601 {approx = true} : vector<2x32xf32> -> vector<2x32xf32>
    %603 = arith.mulf %593, %573 : vector<2x32xf32>
    %604 = arith.mulf %586, %595 : vector<2x32xf32>
    %605 = arith.addf %603, %604 : vector<2x32xf32>
    %606 = math.tanh %605 : vector<2x32xf32>
    %607 = arith.mulf %602, %606 : vector<2x32xf32>
    %c8_97 = arith.constant 8 : index
    %c0_98 = arith.constant 0 : index
    %608 = vector.load %arg24[%c8_97, %c0_98] : memref<10x32xf32, #tpu.memory_space<vmem>>, vector<2x32xf32>
    tpu.vector_store %arg24[%c8_97, %c0_98], %607 {strides = array<i32>} : memref<10x32xf32, #tpu.memory_space<vmem>>, vector<2x32xf32>,
    %c0_99 = arith.constant 0 : index
    %c0_100 = arith.constant 0 : index
    %609 = vector.load %arg24[%c0_99, %c0_100] : memref<10x32xf32, #tpu.memory_space<vmem>>, vector<10x32xf32>
    %c0_101 = arith.constant 0 : index
    %c0_102 = arith.constant 0 : index
    %610 = vector.load %arg12[%c0_101, %c0_102] : memref<32x128xf32, #tpu.memory_space<vmem>>, vector<32x128xf32>
    %cst_103 = arith.constant dense<0.000000e+00> : vector<10x128xf32>
    %611 = tpu.matmul %609, %610, %cst_103 {dimension_numbers = #tpu.dot_dimension_numbers<[1], [0], [0], [1], [0, 0, 1, 1], [], []>} : vector<10x32xf32>, vector<32x128xf32>, vector<10x128xf32> -> vector<10x128xf32>
    %c0_104 = arith.constant 0 : index
    %c0_105 = arith.constant 0 : index
    %612 = vector.load %arg14[%c0_104, %c0_105] : memref<1x128xf32, #tpu.memory_space<vmem>>, vector<1x128xf32>
    %613 = vector.broadcast %612 : vector<1x128xf32> to vector<10x128xf32>
    %614 = arith.addf %611, %613 : vector<10x128xf32>
    %c0_106 = arith.constant 0 : index
    %c0_107 = arith.constant 0 : index
    %615 = vector.load %arg13[%c0_106, %c0_107] : memref<32x128xf32, #tpu.memory_space<vmem>>, vector<32x128xf32>
    %cst_108 = arith.constant 0.000000e+00 : f32
    %616 = vector.broadcast %cst_108 : f32 to vector<2x32xf32>
    %cst_109 = arith.constant 0.000000e+00 : f32
    %617 = vector.broadcast %cst_109 : f32 to vector<2x32xf32>
    %618 = vector.extract_strided_slice %614 {offsets = [0, 0], sizes = [2, 128], strides = [1, 1]} : vector<10x128xf32> to vector<2x128xf32>
    %cst_110 = arith.constant dense<0.000000e+00> : vector<2x128xf32>
    %619 = tpu.matmul %616, %615, %cst_110 {dimension_numbers = #tpu.dot_dimension_numbers<[1], [0], [0], [1], [0, 0, 1, 1], [], []>} : vector<2x32xf32>, vector<32x128xf32>, vector<2x128xf32> -> vector<2x128xf32>
    %620 = arith.addf %618, %619 : vector<2x128xf32>
    %621 = vector.extract_strided_slice %620 {offsets = [0, 0], sizes = [2, 32], strides = [1, 1]} : vector<2x128xf32> to vector<2x32xf32>
    %cst_111 = arith.constant 0.000000e+00 : f32
    %622 = vector.broadcast %cst_111 : f32 to vector<2x32xf32>
    %623 = arith.subf %622, %621 : vector<2x32xf32>
    %624 = math.exp %623 : vector<2x32xf32>
    %cst_112 = arith.constant 1.000000e+00 : f32
    %625 = vector.broadcast %cst_112 : f32 to vector<2x32xf32>
    %626 = arith.addf %625, %624 : vector<2x32xf32>
    %627 = tpu.reciprocal %626 {approx = true} : vector<2x32xf32> -> vector<2x32xf32>
    %628 = vector.extract_strided_slice %620 {offsets = [0, 32], sizes = [2, 32], strides = [1, 1]} : vector<2x128xf32> to vector<2x32xf32>
    %cst_113 = arith.constant 0.000000e+00 : f32
    %629 = vector.broadcast %cst_113 : f32 to vector<2x32xf32>
    %630 = arith.subf %629, %628 : vector<2x32xf32>
    %631 = math.exp %630 : vector<2x32xf32>
    %cst_114 = arith.constant 1.000000e+00 : f32
    %632 = vector.broadcast %cst_114 : f32 to vector<2x32xf32>
    %633 = arith.addf %632, %631 : vector<2x32xf32>
    %634 = tpu.reciprocal %633 {approx = true} : vector<2x32xf32> -> vector<2x32xf32>
    %635 = vector.extract_strided_slice %620 {offsets = [0, 64], sizes = [2, 32], strides = [1, 1]} : vector<2x128xf32> to vector<2x32xf32>
    %636 = math.tanh %635 : vector<2x32xf32>
    %637 = vector.extract_strided_slice %620 {offsets = [0, 96], sizes = [2, 32], strides = [1, 1]} : vector<2x128xf32> to vector<2x32xf32>
    %cst_115 = arith.constant 0.000000e+00 : f32
    %638 = vector.broadcast %cst_115 : f32 to vector<2x32xf32>
    %639 = arith.subf %638, %637 : vector<2x32xf32>
    %640 = math.exp %639 : vector<2x32xf32>
    %cst_116 = arith.constant 1.000000e+00 : f32
    %641 = vector.broadcast %cst_116 : f32 to vector<2x32xf32>
    %642 = arith.addf %641, %640 : vector<2x32xf32>
    %643 = tpu.reciprocal %642 {approx = true} : vector<2x32xf32> -> vector<2x32xf32>
    %644 = arith.mulf %634, %617 : vector<2x32xf32>
    %645 = arith.mulf %627, %636 : vector<2x32xf32>
    %646 = arith.addf %644, %645 : vector<2x32xf32>
    %647 = math.tanh %646 : vector<2x32xf32>
    %648 = arith.mulf %643, %647 : vector<2x32xf32>
    %c0_117 = arith.constant 0 : index
    %c0_118 = arith.constant 0 : index
    %649 = vector.load %arg25[%c0_117, %c0_118] : memref<10x32xf32, #tpu.memory_space<vmem>>, vector<2x32xf32>
    tpu.vector_store %arg25[%c0_117, %c0_118], %648 {strides = array<i32>} : memref<10x32xf32, #tpu.memory_space<vmem>>, vector<2x32xf32>,
    %650 = vector.extract_strided_slice %614 {offsets = [2, 0], sizes = [2, 128], strides = [1, 1]} : vector<10x128xf32> to vector<2x128xf32>
    %cst_119 = arith.constant dense<0.000000e+00> : vector<2x128xf32>
    %651 = tpu.matmul %648, %615, %cst_119 {dimension_numbers = #tpu.dot_dimension_numbers<[1], [0], [0], [1], [0, 0, 1, 1], [], []>} : vector<2x32xf32>, vector<32x128xf32>, vector<2x128xf32> -> vector<2x128xf32>
    %652 = arith.addf %650, %651 : vector<2x128xf32>
    %653 = vector.extract_strided_slice %652 {offsets = [0, 0], sizes = [2, 32], strides = [1, 1]} : vector<2x128xf32> to vector<2x32xf32>
    %cst_120 = arith.constant 0.000000e+00 : f32
    %654 = vector.broadcast %cst_120 : f32 to vector<2x32xf32>
    %655 = arith.subf %654, %653 : vector<2x32xf32>
    %656 = math.exp %655 : vector<2x32xf32>
    %cst_121 = arith.constant 1.000000e+00 : f32
    %657 = vector.broadcast %cst_121 : f32 to vector<2x32xf32>
    %658 = arith.addf %657, %656 : vector<2x32xf32>
    %659 = tpu.reciprocal %658 {approx = true} : vector<2x32xf32> -> vector<2x32xf32>
    %660 = vector.extract_strided_slice %652 {offsets = [0, 32], sizes = [2, 32], strides = [1, 1]} : vector<2x128xf32> to vector<2x32xf32>
    %cst_122 = arith.constant 0.000000e+00 : f32
    %661 = vector.broadcast %cst_122 : f32 to vector<2x32xf32>
    %662 = arith.subf %661, %660 : vector<2x32xf32>
    %663 = math.exp %662 : vector<2x32xf32>
    %cst_123 = arith.constant 1.000000e+00 : f32
    %664 = vector.broadcast %cst_123 : f32 to vector<2x32xf32>
    %665 = arith.addf %664, %663 : vector<2x32xf32>
    %666 = tpu.reciprocal %665 {approx = true} : vector<2x32xf32> -> vector<2x32xf32>
    %667 = vector.extract_strided_slice %652 {offsets = [0, 64], sizes = [2, 32], strides = [1, 1]} : vector<2x128xf32> to vector<2x32xf32>
    %668 = math.tanh %667 : vector<2x32xf32>
    %669 = vector.extract_strided_slice %652 {offsets = [0, 96], sizes = [2, 32], strides = [1, 1]} : vector<2x128xf32> to vector<2x32xf32>
    %cst_124 = arith.constant 0.000000e+00 : f32
    %670 = vector.broadcast %cst_124 : f32 to vector<2x32xf32>
    %671 = arith.subf %670, %669 : vector<2x32xf32>
    %672 = math.exp %671 : vector<2x32xf32>
    %cst_125 = arith.constant 1.000000e+00 : f32
    %673 = vector.broadcast %cst_125 : f32 to vector<2x32xf32>
    %674 = arith.addf %673, %672 : vector<2x32xf32>
    %675 = tpu.reciprocal %674 {approx = true} : vector<2x32xf32> -> vector<2x32xf32>
    %676 = arith.mulf %666, %646 : vector<2x32xf32>
    %677 = arith.mulf %659, %668 : vector<2x32xf32>
    %678 = arith.addf %676, %677 : vector<2x32xf32>
    %679 = math.tanh %678 : vector<2x32xf32>
    %680 = arith.mulf %675, %679 : vector<2x32xf32>
    %c2_126 = arith.constant 2 : index
    %c0_127 = arith.constant 0 : index
    %681 = vector.load %arg25[%c2_126, %c0_127] : memref<10x32xf32, #tpu.memory_space<vmem>>, vector<2x32xf32>
    tpu.vector_store %arg25[%c2_126, %c0_127], %680 {strides = array<i32>} : memref<10x32xf32, #tpu.memory_space<vmem>>, vector<2x32xf32>,
    %682 = vector.extract_strided_slice %614 {offsets = [4, 0], sizes = [2, 128], strides = [1, 1]} : vector<10x128xf32> to vector<2x128xf32>
    %cst_128 = arith.constant dense<0.000000e+00> : vector<2x128xf32>
    %683 = tpu.matmul %680, %615, %cst_128 {dimension_numbers = #tpu.dot_dimension_numbers<[1], [0], [0], [1], [0, 0, 1, 1], [], []>} : vector<2x32xf32>, vector<32x128xf32>, vector<2x128xf32> -> vector<2x128xf32>
    %684 = arith.addf %682, %683 : vector<2x128xf32>
    %685 = vector.extract_strided_slice %684 {offsets = [0, 0], sizes = [2, 32], strides = [1, 1]} : vector<2x128xf32> to vector<2x32xf32>
    %cst_129 = arith.constant 0.000000e+00 : f32
    %686 = vector.broadcast %cst_129 : f32 to vector<2x32xf32>
    %687 = arith.subf %686, %685 : vector<2x32xf32>
    %688 = math.exp %687 : vector<2x32xf32>
    %cst_130 = arith.constant 1.000000e+00 : f32
    %689 = vector.broadcast %cst_130 : f32 to vector<2x32xf32>
    %690 = arith.addf %689, %688 : vector<2x32xf32>
    %691 = tpu.reciprocal %690 {approx = true} : vector<2x32xf32> -> vector<2x32xf32>
    %692 = vector.extract_strided_slice %684 {offsets = [0, 32], sizes = [2, 32], strides = [1, 1]} : vector<2x128xf32> to vector<2x32xf32>
    %cst_131 = arith.constant 0.000000e+00 : f32
    %693 = vector.broadcast %cst_131 : f32 to vector<2x32xf32>
    %694 = arith.subf %693, %692 : vector<2x32xf32>
    %695 = math.exp %694 : vector<2x32xf32>
    %cst_132 = arith.constant 1.000000e+00 : f32
    %696 = vector.broadcast %cst_132 : f32 to vector<2x32xf32>
    %697 = arith.addf %696, %695 : vector<2x32xf32>
    %698 = tpu.reciprocal %697 {approx = true} : vector<2x32xf32> -> vector<2x32xf32>
    %699 = vector.extract_strided_slice %684 {offsets = [0, 64], sizes = [2, 32], strides = [1, 1]} : vector<2x128xf32> to vector<2x32xf32>
    %700 = math.tanh %699 : vector<2x32xf32>
    %701 = vector.extract_strided_slice %684 {offsets = [0, 96], sizes = [2, 32], strides = [1, 1]} : vector<2x128xf32> to vector<2x32xf32>
    %cst_133 = arith.constant 0.000000e+00 : f32
    %702 = vector.broadcast %cst_133 : f32 to vector<2x32xf32>
    %703 = arith.subf %702, %701 : vector<2x32xf32>
    %704 = math.exp %703 : vector<2x32xf32>
    %cst_134 = arith.constant 1.000000e+00 : f32
    %705 = vector.broadcast %cst_134 : f32 to vector<2x32xf32>
    %706 = arith.addf %705, %704 : vector<2x32xf32>
    %707 = tpu.reciprocal %706 {approx = true} : vector<2x32xf32> -> vector<2x32xf32>
    %708 = arith.mulf %698, %678 : vector<2x32xf32>
    %709 = arith.mulf %691, %700 : vector<2x32xf32>
    %710 = arith.addf %708, %709 : vector<2x32xf32>
    %711 = math.tanh %710 : vector<2x32xf32>
    %712 = arith.mulf %707, %711 : vector<2x32xf32>
    %c4_135 = arith.constant 4 : index
    %c0_136 = arith.constant 0 : index
    %713 = vector.load %arg25[%c4_135, %c0_136] : memref<10x32xf32, #tpu.memory_space<vmem>>, vector<2x32xf32>
    tpu.vector_store %arg25[%c4_135, %c0_136], %712 {strides = array<i32>} : memref<10x32xf32, #tpu.memory_space<vmem>>, vector<2x32xf32>,
    %714 = vector.extract_strided_slice %614 {offsets = [6, 0], sizes = [2, 128], strides = [1, 1]} : vector<10x128xf32> to vector<2x128xf32>
    %cst_137 = arith.constant dense<0.000000e+00> : vector<2x128xf32>
    %715 = tpu.matmul %712, %615, %cst_137 {dimension_numbers = #tpu.dot_dimension_numbers<[1], [0], [0], [1], [0, 0, 1, 1], [], []>} : vector<2x32xf32>, vector<32x128xf32>, vector<2x128xf32> -> vector<2x128xf32>
    %716 = arith.addf %714, %715 : vector<2x128xf32>
    %717 = vector.extract_strided_slice %716 {offsets = [0, 0], sizes = [2, 32], strides = [1, 1]} : vector<2x128xf32> to vector<2x32xf32>
    %cst_138 = arith.constant 0.000000e+00 : f32
    %718 = vector.broadcast %cst_138 : f32 to vector<2x32xf32>
    %719 = arith.subf %718, %717 : vector<2x32xf32>
    %720 = math.exp %719 : vector<2x32xf32>
    %cst_139 = arith.constant 1.000000e+00 : f32
    %721 = vector.broadcast %cst_139 : f32 to vector<2x32xf32>
    %722 = arith.addf %721, %720 : vector<2x32xf32>
    %723 = tpu.reciprocal %722 {approx = true} : vector<2x32xf32> -> vector<2x32xf32>
    %724 = vector.extract_strided_slice %716 {offsets = [0, 32], sizes = [2, 32], strides = [1, 1]} : vector<2x128xf32> to vector<2x32xf32>
    %cst_140 = arith.constant 0.000000e+00 : f32
    %725 = vector.broadcast %cst_140 : f32 to vector<2x32xf32>
    %726 = arith.subf %725, %724 : vector<2x32xf32>
    %727 = math.exp %726 : vector<2x32xf32>
    %cst_141 = arith.constant 1.000000e+00 : f32
    %728 = vector.broadcast %cst_141 : f32 to vector<2x32xf32>
    %729 = arith.addf %728, %727 : vector<2x32xf32>
    %730 = tpu.reciprocal %729 {approx = true} : vector<2x32xf32> -> vector<2x32xf32>
    %731 = vector.extract_strided_slice %716 {offsets = [0, 64], sizes = [2, 32], strides = [1, 1]} : vector<2x128xf32> to vector<2x32xf32>
    %732 = math.tanh %731 : vector<2x32xf32>
    %733 = vector.extract_strided_slice %716 {offsets = [0, 96], sizes = [2, 32], strides = [1, 1]} : vector<2x128xf32> to vector<2x32xf32>
    %cst_142 = arith.constant 0.000000e+00 : f32
    %734 = vector.broadcast %cst_142 : f32 to vector<2x32xf32>
    %735 = arith.subf %734, %733 : vector<2x32xf32>
    %736 = math.exp %735 : vector<2x32xf32>
    %cst_143 = arith.constant 1.000000e+00 : f32
    %737 = vector.broadcast %cst_143 : f32 to vector<2x32xf32>
    %738 = arith.addf %737, %736 : vector<2x32xf32>
    %739 = tpu.reciprocal %738 {approx = true} : vector<2x32xf32> -> vector<2x32xf32>
    %740 = arith.mulf %730, %710 : vector<2x32xf32>
    %741 = arith.mulf %723, %732 : vector<2x32xf32>
    %742 = arith.addf %740, %741 : vector<2x32xf32>
    %743 = math.tanh %742 : vector<2x32xf32>
    %744 = arith.mulf %739, %743 : vector<2x32xf32>
    %c6_144 = arith.constant 6 : index
    %c0_145 = arith.constant 0 : index
    %745 = vector.load %arg25[%c6_144, %c0_145] : memref<10x32xf32, #tpu.memory_space<vmem>>, vector<2x32xf32>
    tpu.vector_store %arg25[%c6_144, %c0_145], %744 {strides = array<i32>} : memref<10x32xf32, #tpu.memory_space<vmem>>, vector<2x32xf32>,
    %746 = vector.extract_strided_slice %614 {offsets = [8, 0], sizes = [2, 128], strides = [1, 1]} : vector<10x128xf32> to vector<2x128xf32>
    %cst_146 = arith.constant dense<0.000000e+00> : vector<2x128xf32>
    %747 = tpu.matmul %744, %615, %cst_146 {dimension_numbers = #tpu.dot_dimension_numbers<[1], [0], [0], [1], [0, 0, 1, 1], [], []>} : vector<2x32xf32>, vector<32x128xf32>, vector<2x128xf32> -> vector<2x128xf32>
    %748 = arith.addf %746, %747 : vector<2x128xf32>
    %749 = vector.extract_strided_slice %748 {offsets = [0, 0], sizes = [2, 32], strides = [1, 1]} : vector<2x128xf32> to vector<2x32xf32>
    %cst_147 = arith.constant 0.000000e+00 : f32
    %750 = vector.broadcast %cst_147 : f32 to vector<2x32xf32>
    %751 = arith.subf %750, %749 : vector<2x32xf32>
    %752 = math.exp %751 : vector<2x32xf32>
    %cst_148 = arith.constant 1.000000e+00 : f32
    %753 = vector.broadcast %cst_148 : f32 to vector<2x32xf32>
    %754 = arith.addf %753, %752 : vector<2x32xf32>
    %755 = tpu.reciprocal %754 {approx = true} : vector<2x32xf32> -> vector<2x32xf32>
    %756 = vector.extract_strided_slice %748 {offsets = [0, 32], sizes = [2, 32], strides = [1, 1]} : vector<2x128xf32> to vector<2x32xf32>
    %cst_149 = arith.constant 0.000000e+00 : f32
    %757 = vector.broadcast %cst_149 : f32 to vector<2x32xf32>
    %758 = arith.subf %757, %756 : vector<2x32xf32>
    %759 = math.exp %758 : vector<2x32xf32>
    %cst_150 = arith.constant 1.000000e+00 : f32
    %760 = vector.broadcast %cst_150 : f32 to vector<2x32xf32>
    %761 = arith.addf %760, %759 : vector<2x32xf32>
    %762 = tpu.reciprocal %761 {approx = true} : vector<2x32xf32> -> vector<2x32xf32>
    %763 = vector.extract_strided_slice %748 {offsets = [0, 64], sizes = [2, 32], strides = [1, 1]} : vector<2x128xf32> to vector<2x32xf32>
    %764 = math.tanh %763 : vector<2x32xf32>
    %765 = vector.extract_strided_slice %748 {offsets = [0, 96], sizes = [2, 32], strides = [1, 1]} : vector<2x128xf32> to vector<2x32xf32>
    %cst_151 = arith.constant 0.000000e+00 : f32
    %766 = vector.broadcast %cst_151 : f32 to vector<2x32xf32>
    %767 = arith.subf %766, %765 : vector<2x32xf32>
    %768 = math.exp %767 : vector<2x32xf32>
    %cst_152 = arith.constant 1.000000e+00 : f32
    %769 = vector.broadcast %cst_152 : f32 to vector<2x32xf32>
    %770 = arith.addf %769, %768 : vector<2x32xf32>
    %771 = tpu.reciprocal %770 {approx = true} : vector<2x32xf32> -> vector<2x32xf32>
    %772 = arith.mulf %762, %742 : vector<2x32xf32>
    %773 = arith.mulf %755, %764 : vector<2x32xf32>
    %774 = arith.addf %772, %773 : vector<2x32xf32>
    %775 = math.tanh %774 : vector<2x32xf32>
    %776 = arith.mulf %771, %775 : vector<2x32xf32>
    %c8_153 = arith.constant 8 : index
    %c0_154 = arith.constant 0 : index
    %777 = vector.load %arg25[%c8_153, %c0_154] : memref<10x32xf32, #tpu.memory_space<vmem>>, vector<2x32xf32>
    tpu.vector_store %arg25[%c8_153, %c0_154], %776 {strides = array<i32>} : memref<10x32xf32, #tpu.memory_space<vmem>>, vector<2x32xf32>,
    %c0_155 = arith.constant 0 : index
    %c0_156 = arith.constant 0 : index
    %778 = vector.load %arg25[%c0_155, %c0_156] : memref<10x32xf32, #tpu.memory_space<vmem>>, vector<10x32xf32>
    %c0_157 = arith.constant 0 : index
    %c0_158 = arith.constant 0 : index
    %779 = vector.load %arg15[%c0_157, %c0_158] : memref<32x128xf32, #tpu.memory_space<vmem>>, vector<32x128xf32>
    %cst_159 = arith.constant dense<0.000000e+00> : vector<10x128xf32>
    %780 = tpu.matmul %778, %779, %cst_159 {dimension_numbers = #tpu.dot_dimension_numbers<[1], [0], [0], [1], [0, 0, 1, 1], [], []>} : vector<10x32xf32>, vector<32x128xf32>, vector<10x128xf32> -> vector<10x128xf32>
    %c0_160 = arith.constant 0 : index
    %c0_161 = arith.constant 0 : index
    %781 = vector.load %arg17[%c0_160, %c0_161] : memref<1x128xf32, #tpu.memory_space<vmem>>, vector<1x128xf32>
    %782 = vector.broadcast %781 : vector<1x128xf32> to vector<10x128xf32>
    %783 = arith.addf %780, %782 : vector<10x128xf32>
    %c0_162 = arith.constant 0 : index
    %c0_163 = arith.constant 0 : index
    %784 = vector.load %arg16[%c0_162, %c0_163] : memref<32x128xf32, #tpu.memory_space<vmem>>, vector<32x128xf32>
    %cst_164 = arith.constant 0.000000e+00 : f32
    %785 = vector.broadcast %cst_164 : f32 to vector<2x32xf32>
    %cst_165 = arith.constant 0.000000e+00 : f32
    %786 = vector.broadcast %cst_165 : f32 to vector<2x32xf32>
    %787 = vector.extract_strided_slice %783 {offsets = [0, 0], sizes = [2, 128], strides = [1, 1]} : vector<10x128xf32> to vector<2x128xf32>
    %cst_166 = arith.constant dense<0.000000e+00> : vector<2x128xf32>
    %788 = tpu.matmul %785, %784, %cst_166 {dimension_numbers = #tpu.dot_dimension_numbers<[1], [0], [0], [1], [0, 0, 1, 1], [], []>} : vector<2x32xf32>, vector<32x128xf32>, vector<2x128xf32> -> vector<2x128xf32>
    %789 = arith.addf %787, %788 : vector<2x128xf32>
    %790 = vector.extract_strided_slice %789 {offsets = [0, 0], sizes = [2, 32], strides = [1, 1]} : vector<2x128xf32> to vector<2x32xf32>
    %cst_167 = arith.constant 0.000000e+00 : f32
    %791 = vector.broadcast %cst_167 : f32 to vector<2x32xf32>
    %792 = arith.subf %791, %790 : vector<2x32xf32>
    %793 = math.exp %792 : vector<2x32xf32>
    %cst_168 = arith.constant 1.000000e+00 : f32
    %794 = vector.broadcast %cst_168 : f32 to vector<2x32xf32>
    %795 = arith.addf %794, %793 : vector<2x32xf32>
    %796 = tpu.reciprocal %795 {approx = true} : vector<2x32xf32> -> vector<2x32xf32>
    %797 = vector.extract_strided_slice %789 {offsets = [0, 32], sizes = [2, 32], strides = [1, 1]} : vector<2x128xf32> to vector<2x32xf32>
    %cst_169 = arith.constant 0.000000e+00 : f32
    %798 = vector.broadcast %cst_169 : f32 to vector<2x32xf32>
    %799 = arith.subf %798, %797 : vector<2x32xf32>
    %800 = math.exp %799 : vector<2x32xf32>
    %cst_170 = arith.constant 1.000000e+00 : f32
    %801 = vector.broadcast %cst_170 : f32 to vector<2x32xf32>
    %802 = arith.addf %801, %800 : vector<2x32xf32>
    %803 = tpu.reciprocal %802 {approx = true} : vector<2x32xf32> -> vector<2x32xf32>
    %804 = vector.extract_strided_slice %789 {offsets = [0, 64], sizes = [2, 32], strides = [1, 1]} : vector<2x128xf32> to vector<2x32xf32>
    %805 = math.tanh %804 : vector<2x32xf32>
    %806 = vector.extract_strided_slice %789 {offsets = [0, 96], sizes = [2, 32], strides = [1, 1]} : vector<2x128xf32> to vector<2x32xf32>
    %cst_171 = arith.constant 0.000000e+00 : f32
    %807 = vector.broadcast %cst_171 : f32 to vector<2x32xf32>
    %808 = arith.subf %807, %806 : vector<2x32xf32>
    %809 = math.exp %808 : vector<2x32xf32>
    %cst_172 = arith.constant 1.000000e+00 : f32
    %810 = vector.broadcast %cst_172 : f32 to vector<2x32xf32>
    %811 = arith.addf %810, %809 : vector<2x32xf32>
    %812 = tpu.reciprocal %811 {approx = true} : vector<2x32xf32> -> vector<2x32xf32>
    %813 = arith.mulf %803, %786 : vector<2x32xf32>
    %814 = arith.mulf %796, %805 : vector<2x32xf32>
    %815 = arith.addf %813, %814 : vector<2x32xf32>
    %816 = math.tanh %815 : vector<2x32xf32>
    %817 = arith.mulf %812, %816 : vector<2x32xf32>
    %818 = vector.extract_strided_slice %783 {offsets = [2, 0], sizes = [2, 128], strides = [1, 1]} : vector<10x128xf32> to vector<2x128xf32>
    %cst_173 = arith.constant dense<0.000000e+00> : vector<2x128xf32>
    %819 = tpu.matmul %817, %784, %cst_173 {dimension_numbers = #tpu.dot_dimension_numbers<[1], [0], [0], [1], [0, 0, 1, 1], [], []>} : vector<2x32xf32>, vector<32x128xf32>, vector<2x128xf32> -> vector<2x128xf32>
    %820 = arith.addf %818, %819 : vector<2x128xf32>
    %821 = vector.extract_strided_slice %820 {offsets = [0, 0], sizes = [2, 32], strides = [1, 1]} : vector<2x128xf32> to vector<2x32xf32>
    %cst_174 = arith.constant 0.000000e+00 : f32
    %822 = vector.broadcast %cst_174 : f32 to vector<2x32xf32>
    %823 = arith.subf %822, %821 : vector<2x32xf32>
    %824 = math.exp %823 : vector<2x32xf32>
    %cst_175 = arith.constant 1.000000e+00 : f32
    %825 = vector.broadcast %cst_175 : f32 to vector<2x32xf32>
    %826 = arith.addf %825, %824 : vector<2x32xf32>
    %827 = tpu.reciprocal %826 {approx = true} : vector<2x32xf32> -> vector<2x32xf32>
    %828 = vector.extract_strided_slice %820 {offsets = [0, 32], sizes = [2, 32], strides = [1, 1]} : vector<2x128xf32> to vector<2x32xf32>
    %cst_176 = arith.constant 0.000000e+00 : f32
    %829 = vector.broadcast %cst_176 : f32 to vector<2x32xf32>
    %830 = arith.subf %829, %828 : vector<2x32xf32>
    %831 = math.exp %830 : vector<2x32xf32>
    %cst_177 = arith.constant 1.000000e+00 : f32
    %832 = vector.broadcast %cst_177 : f32 to vector<2x32xf32>
    %833 = arith.addf %832, %831 : vector<2x32xf32>
    %834 = tpu.reciprocal %833 {approx = true} : vector<2x32xf32> -> vector<2x32xf32>
    %835 = vector.extract_strided_slice %820 {offsets = [0, 64], sizes = [2, 32], strides = [1, 1]} : vector<2x128xf32> to vector<2x32xf32>
    %836 = math.tanh %835 : vector<2x32xf32>
    %837 = vector.extract_strided_slice %820 {offsets = [0, 96], sizes = [2, 32], strides = [1, 1]} : vector<2x128xf32> to vector<2x32xf32>
    %cst_178 = arith.constant 0.000000e+00 : f32
    %838 = vector.broadcast %cst_178 : f32 to vector<2x32xf32>
    %839 = arith.subf %838, %837 : vector<2x32xf32>
    %840 = math.exp %839 : vector<2x32xf32>
    %cst_179 = arith.constant 1.000000e+00 : f32
    %841 = vector.broadcast %cst_179 : f32 to vector<2x32xf32>
    %842 = arith.addf %841, %840 : vector<2x32xf32>
    %843 = tpu.reciprocal %842 {approx = true} : vector<2x32xf32> -> vector<2x32xf32>
    %844 = arith.mulf %834, %815 : vector<2x32xf32>
    %845 = arith.mulf %827, %836 : vector<2x32xf32>
    %846 = arith.addf %844, %845 : vector<2x32xf32>
    %847 = math.tanh %846 : vector<2x32xf32>
    %848 = arith.mulf %843, %847 : vector<2x32xf32>
    %849 = vector.extract_strided_slice %783 {offsets = [4, 0], sizes = [2, 128], strides = [1, 1]} : vector<10x128xf32> to vector<2x128xf32>
    %cst_180 = arith.constant dense<0.000000e+00> : vector<2x128xf32>
    %850 = tpu.matmul %848, %784, %cst_180 {dimension_numbers = #tpu.dot_dimension_numbers<[1], [0], [0], [1], [0, 0, 1, 1], [], []>} : vector<2x32xf32>, vector<32x128xf32>, vector<2x128xf32> -> vector<2x128xf32>
    %851 = arith.addf %849, %850 : vector<2x128xf32>
    %852 = vector.extract_strided_slice %851 {offsets = [0, 0], sizes = [2, 32], strides = [1, 1]} : vector<2x128xf32> to vector<2x32xf32>
    %cst_181 = arith.constant 0.000000e+00 : f32
    %853 = vector.broadcast %cst_181 : f32 to vector<2x32xf32>
    %854 = arith.subf %853, %852 : vector<2x32xf32>
    %855 = math.exp %854 : vector<2x32xf32>
    %cst_182 = arith.constant 1.000000e+00 : f32
    %856 = vector.broadcast %cst_182 : f32 to vector<2x32xf32>
    %857 = arith.addf %856, %855 : vector<2x32xf32>
    %858 = tpu.reciprocal %857 {approx = true} : vector<2x32xf32> -> vector<2x32xf32>
    %859 = vector.extract_strided_slice %851 {offsets = [0, 32], sizes = [2, 32], strides = [1, 1]} : vector<2x128xf32> to vector<2x32xf32>
    %cst_183 = arith.constant 0.000000e+00 : f32
    %860 = vector.broadcast %cst_183 : f32 to vector<2x32xf32>
    %861 = arith.subf %860, %859 : vector<2x32xf32>
    %862 = math.exp %861 : vector<2x32xf32>
    %cst_184 = arith.constant 1.000000e+00 : f32
    %863 = vector.broadcast %cst_184 : f32 to vector<2x32xf32>
    %864 = arith.addf %863, %862 : vector<2x32xf32>
    %865 = tpu.reciprocal %864 {approx = true} : vector<2x32xf32> -> vector<2x32xf32>
    %866 = vector.extract_strided_slice %851 {offsets = [0, 64], sizes = [2, 32], strides = [1, 1]} : vector<2x128xf32> to vector<2x32xf32>
    %867 = math.tanh %866 : vector<2x32xf32>
    %868 = vector.extract_strided_slice %851 {offsets = [0, 96], sizes = [2, 32], strides = [1, 1]} : vector<2x128xf32> to vector<2x32xf32>
    %cst_185 = arith.constant 0.000000e+00 : f32
    %869 = vector.broadcast %cst_185 : f32 to vector<2x32xf32>
    %870 = arith.subf %869, %868 : vector<2x32xf32>
    %871 = math.exp %870 : vector<2x32xf32>
    %cst_186 = arith.constant 1.000000e+00 : f32
    %872 = vector.broadcast %cst_186 : f32 to vector<2x32xf32>
    %873 = arith.addf %872, %871 : vector<2x32xf32>
    %874 = tpu.reciprocal %873 {approx = true} : vector<2x32xf32> -> vector<2x32xf32>
    %875 = arith.mulf %865, %846 : vector<2x32xf32>
    %876 = arith.mulf %858, %867 : vector<2x32xf32>
    %877 = arith.addf %875, %876 : vector<2x32xf32>
    %878 = math.tanh %877 : vector<2x32xf32>
    %879 = arith.mulf %874, %878 : vector<2x32xf32>
    %880 = vector.extract_strided_slice %783 {offsets = [6, 0], sizes = [2, 128], strides = [1, 1]} : vector<10x128xf32> to vector<2x128xf32>
    %cst_187 = arith.constant dense<0.000000e+00> : vector<2x128xf32>
    %881 = tpu.matmul %879, %784, %cst_187 {dimension_numbers = #tpu.dot_dimension_numbers<[1], [0], [0], [1], [0, 0, 1, 1], [], []>} : vector<2x32xf32>, vector<32x128xf32>, vector<2x128xf32> -> vector<2x128xf32>
    %882 = arith.addf %880, %881 : vector<2x128xf32>
    %883 = vector.extract_strided_slice %882 {offsets = [0, 0], sizes = [2, 32], strides = [1, 1]} : vector<2x128xf32> to vector<2x32xf32>
    %cst_188 = arith.constant 0.000000e+00 : f32
    %884 = vector.broadcast %cst_188 : f32 to vector<2x32xf32>
    %885 = arith.subf %884, %883 : vector<2x32xf32>
    %886 = math.exp %885 : vector<2x32xf32>
    %cst_189 = arith.constant 1.000000e+00 : f32
    %887 = vector.broadcast %cst_189 : f32 to vector<2x32xf32>
    %888 = arith.addf %887, %886 : vector<2x32xf32>
    %889 = tpu.reciprocal %888 {approx = true} : vector<2x32xf32> -> vector<2x32xf32>
    %890 = vector.extract_strided_slice %882 {offsets = [0, 32], sizes = [2, 32], strides = [1, 1]} : vector<2x128xf32> to vector<2x32xf32>
    %cst_190 = arith.constant 0.000000e+00 : f32
    %891 = vector.broadcast %cst_190 : f32 to vector<2x32xf32>
    %892 = arith.subf %891, %890 : vector<2x32xf32>
    %893 = math.exp %892 : vector<2x32xf32>
    %cst_191 = arith.constant 1.000000e+00 : f32
    %894 = vector.broadcast %cst_191 : f32 to vector<2x32xf32>
    %895 = arith.addf %894, %893 : vector<2x32xf32>
    %896 = tpu.reciprocal %895 {approx = true} : vector<2x32xf32> -> vector<2x32xf32>
    %897 = vector.extract_strided_slice %882 {offsets = [0, 64], sizes = [2, 32], strides = [1, 1]} : vector<2x128xf32> to vector<2x32xf32>
    %898 = math.tanh %897 : vector<2x32xf32>
    %899 = vector.extract_strided_slice %882 {offsets = [0, 96], sizes = [2, 32], strides = [1, 1]} : vector<2x128xf32> to vector<2x32xf32>
    %cst_192 = arith.constant 0.000000e+00 : f32
    %900 = vector.broadcast %cst_192 : f32 to vector<2x32xf32>
    %901 = arith.subf %900, %899 : vector<2x32xf32>
    %902 = math.exp %901 : vector<2x32xf32>
    %cst_193 = arith.constant 1.000000e+00 : f32
    %903 = vector.broadcast %cst_193 : f32 to vector<2x32xf32>
    %904 = arith.addf %903, %902 : vector<2x32xf32>
    %905 = tpu.reciprocal %904 {approx = true} : vector<2x32xf32> -> vector<2x32xf32>
    %906 = arith.mulf %896, %877 : vector<2x32xf32>
    %907 = arith.mulf %889, %898 : vector<2x32xf32>
    %908 = arith.addf %906, %907 : vector<2x32xf32>
    %909 = math.tanh %908 : vector<2x32xf32>
    %910 = arith.mulf %905, %909 : vector<2x32xf32>
    %911 = vector.extract_strided_slice %783 {offsets = [8, 0], sizes = [2, 128], strides = [1, 1]} : vector<10x128xf32> to vector<2x128xf32>
    %cst_194 = arith.constant dense<0.000000e+00> : vector<2x128xf32>
    %912 = tpu.matmul %910, %784, %cst_194 {dimension_numbers = #tpu.dot_dimension_numbers<[1], [0], [0], [1], [0, 0, 1, 1], [], []>} : vector<2x32xf32>, vector<32x128xf32>, vector<2x128xf32> -> vector<2x128xf32>
    %913 = arith.addf %911, %912 : vector<2x128xf32>
    %914 = vector.extract_strided_slice %913 {offsets = [0, 0], sizes = [2, 32], strides = [1, 1]} : vector<2x128xf32> to vector<2x32xf32>
    %cst_195 = arith.constant 0.000000e+00 : f32
    %915 = vector.broadcast %cst_195 : f32 to vector<2x32xf32>
    %916 = arith.subf %915, %914 : vector<2x32xf32>
    %917 = math.exp %916 : vector<2x32xf32>
    %cst_196 = arith.constant 1.000000e+00 : f32
    %918 = vector.broadcast %cst_196 : f32 to vector<2x32xf32>
    %919 = arith.addf %918, %917 : vector<2x32xf32>
    %920 = tpu.reciprocal %919 {approx = true} : vector<2x32xf32> -> vector<2x32xf32>
    %921 = vector.extract_strided_slice %913 {offsets = [0, 32], sizes = [2, 32], strides = [1, 1]} : vector<2x128xf32> to vector<2x32xf32>
    %cst_197 = arith.constant 0.000000e+00 : f32
    %922 = vector.broadcast %cst_197 : f32 to vector<2x32xf32>
    %923 = arith.subf %922, %921 : vector<2x32xf32>
    %924 = math.exp %923 : vector<2x32xf32>
    %cst_198 = arith.constant 1.000000e+00 : f32
    %925 = vector.broadcast %cst_198 : f32 to vector<2x32xf32>
    %926 = arith.addf %925, %924 : vector<2x32xf32>
    %927 = tpu.reciprocal %926 {approx = true} : vector<2x32xf32> -> vector<2x32xf32>
    %928 = vector.extract_strided_slice %913 {offsets = [0, 64], sizes = [2, 32], strides = [1, 1]} : vector<2x128xf32> to vector<2x32xf32>
    %929 = math.tanh %928 : vector<2x32xf32>
    %930 = vector.extract_strided_slice %913 {offsets = [0, 96], sizes = [2, 32], strides = [1, 1]} : vector<2x128xf32> to vector<2x32xf32>
    %cst_199 = arith.constant 0.000000e+00 : f32
    %931 = vector.broadcast %cst_199 : f32 to vector<2x32xf32>
    %932 = arith.subf %931, %930 : vector<2x32xf32>
    %933 = math.exp %932 : vector<2x32xf32>
    %cst_200 = arith.constant 1.000000e+00 : f32
    %934 = vector.broadcast %cst_200 : f32 to vector<2x32xf32>
    %935 = arith.addf %934, %933 : vector<2x32xf32>
    %936 = tpu.reciprocal %935 {approx = true} : vector<2x32xf32> -> vector<2x32xf32>
    %937 = arith.mulf %927, %908 : vector<2x32xf32>
    %938 = arith.mulf %920, %929 : vector<2x32xf32>
    %939 = arith.addf %937, %938 : vector<2x32xf32>
    %940 = math.tanh %939 : vector<2x32xf32>
    %941 = arith.mulf %936, %940 : vector<2x32xf32>
    %c0_201 = arith.constant 0 : index
    %c0_202 = arith.constant 0 : index
    %942 = vector.load %arg18[%c0_201, %c0_202] : memref<160x160xf32, #tpu.memory_space<vmem>>, vector<160x160xf32>
    %cst_203 = arith.constant 0.000000e+00 : f32
    %943 = vector.broadcast %cst_203 : f32 to vector<2x160xf32>
    %c0_204 = arith.constant 0 : index
    %c0_205 = arith.constant 0 : index
    %944 = vector.load %arg19[%c0_204, %c0_205] : memref<1x160xf32, #tpu.memory_space<vmem>>, vector<1x160xf32>
    %945 = vector.broadcast %944 : vector<1x160xf32> to vector<2x160xf32>
    %946 = arith.addf %943, %945 : vector<2x160xf32>
    %947 = vector.extract_strided_slice %39 {offsets = [0, 0], sizes = [2, 32], strides = [1, 1]} : vector<10x32xf32> to vector<2x32xf32>
    %948 = arith.addf %947, %817 : vector<2x32xf32>
    %949 = vector.extract_strided_slice %942 {offsets = [0, 0], sizes = [32, 160], strides = [1, 1]} : vector<160x160xf32> to vector<32x160xf32>
    %cst_206 = arith.constant dense<0.000000e+00> : vector<2x160xf32>
    %950 = tpu.matmul %948, %949, %cst_206 {dimension_numbers = #tpu.dot_dimension_numbers<[1], [0], [0], [1], [0, 0, 1, 1], [], []>} : vector<2x32xf32>, vector<32x160xf32>, vector<2x160xf32> -> vector<2x160xf32>
    %951 = arith.addf %946, %950 : vector<2x160xf32>
    %952 = vector.extract_strided_slice %39 {offsets = [2, 0], sizes = [2, 32], strides = [1, 1]} : vector<10x32xf32> to vector<2x32xf32>
    %953 = arith.addf %952, %848 : vector<2x32xf32>
    %954 = vector.extract_strided_slice %942 {offsets = [32, 0], sizes = [32, 160], strides = [1, 1]} : vector<160x160xf32> to vector<32x160xf32>
    %cst_207 = arith.constant dense<0.000000e+00> : vector<2x160xf32>
    %955 = tpu.matmul %953, %954, %cst_207 {dimension_numbers = #tpu.dot_dimension_numbers<[1], [0], [0], [1], [0, 0, 1, 1], [], []>} : vector<2x32xf32>, vector<32x160xf32>, vector<2x160xf32> -> vector<2x160xf32>
    %956 = arith.addf %951, %955 : vector<2x160xf32>
    %957 = vector.extract_strided_slice %39 {offsets = [4, 0], sizes = [2, 32], strides = [1, 1]} : vector<10x32xf32> to vector<2x32xf32>
    %958 = arith.addf %957, %879 : vector<2x32xf32>
    %959 = vector.extract_strided_slice %942 {offsets = [64, 0], sizes = [32, 160], strides = [1, 1]} : vector<160x160xf32> to vector<32x160xf32>
    %cst_208 = arith.constant dense<0.000000e+00> : vector<2x160xf32>
    %960 = tpu.matmul %958, %959, %cst_208 {dimension_numbers = #tpu.dot_dimension_numbers<[1], [0], [0], [1], [0, 0, 1, 1], [], []>} : vector<2x32xf32>, vector<32x160xf32>, vector<2x160xf32> -> vector<2x160xf32>
    %961 = arith.addf %956, %960 : vector<2x160xf32>
    %962 = vector.extract_strided_slice %39 {offsets = [6, 0], sizes = [2, 32], strides = [1, 1]} : vector<10x32xf32> to vector<2x32xf32>
    %963 = arith.addf %962, %910 : vector<2x32xf32>
    %964 = vector.extract_strided_slice %942 {offsets = [96, 0], sizes = [32, 160], strides = [1, 1]} : vector<160x160xf32> to vector<32x160xf32>
    %cst_209 = arith.constant dense<0.000000e+00> : vector<2x160xf32>
    %965 = tpu.matmul %963, %964, %cst_209 {dimension_numbers = #tpu.dot_dimension_numbers<[1], [0], [0], [1], [0, 0, 1, 1], [], []>} : vector<2x32xf32>, vector<32x160xf32>, vector<2x160xf32> -> vector<2x160xf32>
    %966 = arith.addf %961, %965 : vector<2x160xf32>
    %967 = vector.extract_strided_slice %39 {offsets = [8, 0], sizes = [2, 32], strides = [1, 1]} : vector<10x32xf32> to vector<2x32xf32>
    %968 = arith.addf %967, %941 : vector<2x32xf32>
    %969 = vector.extract_strided_slice %942 {offsets = [128, 0], sizes = [32, 160], strides = [1, 1]} : vector<160x160xf32> to vector<32x160xf32>
    %cst_210 = arith.constant dense<0.000000e+00> : vector<2x160xf32>
    %970 = tpu.matmul %968, %969, %cst_210 {dimension_numbers = #tpu.dot_dimension_numbers<[1], [0], [0], [1], [0, 0, 1, 1], [], []>} : vector<2x32xf32>, vector<32x160xf32>, vector<2x160xf32> -> vector<2x160xf32>
    %971 = arith.addf %966, %970 : vector<2x160xf32>
    %972 = arith.mulf %971, %971 : vector<2x160xf32>
    %973 = arith.mulf %971, %972 : vector<2x160xf32>
    %cst_211 = arith.constant 4.471500e-02 : f32
    %974 = vector.broadcast %cst_211 : f32 to vector<2x160xf32>
    %975 = arith.mulf %974, %973 : vector<2x160xf32>
    %976 = arith.addf %971, %975 : vector<2x160xf32>
    %cst_212 = arith.constant 0.797884583 : f32
    %977 = vector.broadcast %cst_212 : f32 to vector<2x160xf32>
    %978 = arith.mulf %977, %976 : vector<2x160xf32>
    %979 = math.tanh %978 : vector<2x160xf32>
    %cst_213 = arith.constant 1.000000e+00 : f32
    %980 = vector.broadcast %cst_213 : f32 to vector<2x160xf32>
    %981 = arith.addf %980, %979 : vector<2x160xf32>
    %cst_214 = arith.constant 5.000000e-01 : f32
    %982 = vector.broadcast %cst_214 : f32 to vector<2x160xf32>
    %983 = arith.mulf %982, %981 : vector<2x160xf32>
    %984 = arith.mulf %971, %983 : vector<2x160xf32>
    %c0_215 = arith.constant 0 : index
    %c0_216 = arith.constant 0 : index
    %985 = vector.load %arg20[%c0_215, %c0_216] : memref<160x32xf32, #tpu.memory_space<vmem>>, vector<160x32xf32>
    %cst_217 = arith.constant dense<0.000000e+00> : vector<2x32xf32>
    %986 = tpu.matmul %984, %985, %cst_217 {dimension_numbers = #tpu.dot_dimension_numbers<[1], [0], [0], [1], [0, 0, 1, 1], [], []>} : vector<2x160xf32>, vector<160x32xf32>, vector<2x32xf32> -> vector<2x32xf32>
    %c0_218 = arith.constant 0 : index
    %c0_219 = arith.constant 0 : index
    %987 = vector.load %arg21[%c0_218, %c0_219] : memref<1x32xf32, #tpu.memory_space<vmem>>, vector<1x32xf32>
    %988 = vector.broadcast %987 : vector<1x32xf32> to vector<2x32xf32>
    %989 = arith.addf %986, %988 : vector<2x32xf32>
    %990 = arith.mulf %989, %989 : vector<2x32xf32>
    %991 = arith.mulf %989, %990 : vector<2x32xf32>
    %cst_220 = arith.constant 4.471500e-02 : f32
    %992 = vector.broadcast %cst_220 : f32 to vector<2x32xf32>
    %993 = arith.mulf %992, %991 : vector<2x32xf32>
    %994 = arith.addf %989, %993 : vector<2x32xf32>
    %cst_221 = arith.constant 0.797884583 : f32
    %995 = vector.broadcast %cst_221 : f32 to vector<2x32xf32>
    %996 = arith.mulf %995, %994 : vector<2x32xf32>
    %997 = math.tanh %996 : vector<2x32xf32>
    %cst_222 = arith.constant 1.000000e+00 : f32
    %998 = vector.broadcast %cst_222 : f32 to vector<2x32xf32>
    %999 = arith.addf %998, %997 : vector<2x32xf32>
    %cst_223 = arith.constant 5.000000e-01 : f32
    %1000 = vector.broadcast %cst_223 : f32 to vector<2x32xf32>
    %1001 = arith.mulf %1000, %999 : vector<2x32xf32>
    %1002 = arith.mulf %989, %1001 : vector<2x32xf32>
    %c0_224 = arith.constant 0 : index
    %c0_225 = arith.constant 0 : index
    %c0_226 = arith.constant 0 : index
    %1003 = vector.load %arg22[%c0_224, %c0_225, %c0_226] : memref<1x2x32xf32, #tpu.memory_space<vmem>>, vector<1x2x32xf32>
    %1004 = vector.shape_cast %1003 : vector<1x2x32xf32> to vector<2x32xf32>
    %1005 = vector.shape_cast %1002 : vector<2x32xf32> to vector<1x2x32xf32>
    tpu.vector_store %arg22[%c0_224, %c0_225, %c0_226], %1005 {strides = array<i32>} : memref<1x2x32xf32, #tpu.memory_space<vmem>>, vector<1x2x32xf32>,
    return
  }
  func.func @transform_0(%arg0: i32) -> (i32, i32, i32) {
    %c0_i32 = arith.constant 0 : i32
    %c0_i32_0 = arith.constant 0 : i32
    %c0_i32_1 = arith.constant 0 : i32
    return %arg0, %c0_i32, %c0_i32_0 : i32, i32, i32
  }
  func.func @transform_1(%arg0: i32) -> (i32, i32, i32) {
    %c0_i32 = arith.constant 0 : i32
    %c0_i32_0 = arith.constant 0 : i32
    %c0_i32_1 = arith.constant 0 : i32
    return %arg0, %c0_i32, %c0_i32_0 : i32, i32, i32
  }
  func.func @transform_2(%arg0: i32) -> (i32, i32) {
    %c0_i32 = arith.constant 0 : i32
    %c0_i32_0 = arith.constant 0 : i32
    %c0_i32_1 = arith.constant 0 : i32
    return %c0_i32, %c0_i32_0 : i32, i32
  }
  func.func @transform_3(%arg0: i32) -> (i32, i32) {
    %c0_i32 = arith.constant 0 : i32
    %c0_i32_0 = arith.constant 0 : i32
    %c0_i32_1 = arith.constant 0 : i32
    return %c0_i32, %c0_i32_0 : i32, i32
  }
  func.func @transform_4(%arg0: i32) -> (i32, i32) {
    %c0_i32 = arith.constant 0 : i32
    %c0_i32_0 = arith.constant 0 : i32
    %c0_i32_1 = arith.constant 0 : i32
    return %c0_i32, %c0_i32_0 : i32, i32
  }
  func.func @transform_5(%arg0: i32) -> (i32, i32) {
    %c0_i32 = arith.constant 0 : i32
    %c0_i32_0 = arith.constant 0 : i32
    %c0_i32_1 = arith.constant 0 : i32
    return %c0_i32, %c0_i32_0 : i32, i32
  }
  func.func @transform_6(%arg0: i32) -> i32 {
    %c0_i32 = arith.constant 0 : i32
    %c0_i32_0 = arith.constant 0 : i32
    return %c0_i32 : i32
  }
  func.func @transform_7(%arg0: i32) -> i32 {
    %c0_i32 = arith.constant 0 : i32
    %c0_i32_0 = arith.constant 0 : i32
    return %c0_i32 : i32
  }
  func.func @transform_8(%arg0: i32) -> (i32, i32) {
    %c0_i32 = arith.constant 0 : i32
    %c0_i32_0 = arith.constant 0 : i32
    %c0_i32_1 = arith.constant 0 : i32
    return %c0_i32, %c0_i32_0 : i32, i32
  }
  func.func @transform_9(%arg0: i32) -> (i32, i32) {
    %c0_i32 = arith.constant 0 : i32
    %c0_i32_0 = arith.constant 0 : i32
    %c0_i32_1 = arith.constant 0 : i32
    return %c0_i32, %c0_i32_0 : i32, i32
  }
  func.func @transform_10(%arg0: i32) -> (i32, i32) {
    %c0_i32 = arith.constant 0 : i32
    %c0_i32_0 = arith.constant 0 : i32
    %c0_i32_1 = arith.constant 0 : i32
    return %c0_i32, %c0_i32_0 : i32, i32
  }
  func.func @transform_11(%arg0: i32) -> (i32, i32) {
    %c0_i32 = arith.constant 0 : i32
    %c0_i32_0 = arith.constant 0 : i32
    %c0_i32_1 = arith.constant 0 : i32
    return %c0_i32, %c0_i32_0 : i32, i32
  }
  func.func @transform_12(%arg0: i32) -> (i32, i32) {
    %c0_i32 = arith.constant 0 : i32
    %c0_i32_0 = arith.constant 0 : i32
    %c0_i32_1 = arith.constant 0 : i32
    return %c0_i32, %c0_i32_0 : i32, i32
  }
  func.func @transform_13(%arg0: i32) -> (i32, i32) {
    %c0_i32 = arith.constant 0 : i32
    %c0_i32_0 = arith.constant 0 : i32
    %c0_i32_1 = arith.constant 0 : i32
    return %c0_i32, %c0_i32_0 : i32, i32
  }
  func.func @transform_14(%arg0: i32) -> (i32, i32) {
    %c0_i32 = arith.constant 0 : i32
    %c0_i32_0 = arith.constant 0 : i32
    %c0_i32_1 = arith.constant 0 : i32
    return %c0_i32, %c0_i32_0 : i32, i32
  }
  func.func @transform_15(%arg0: i32) -> (i32, i32) {
    %c0_i32 = arith.constant 0 : i32
    %c0_i32_0 = arith.constant 0 : i32
    %c0_i32_1 = arith.constant 0 : i32
    return %c0_i32, %c0_i32_0 : i32, i32
  }
  func.func @transform_16(%arg0: i32) -> (i32, i32) {
    %c0_i32 = arith.constant 0 : i32
    %c0_i32_0 = arith.constant 0 : i32
    %c0_i32_1 = arith.constant 0 : i32
    return %c0_i32, %c0_i32_0 : i32, i32
  }
  func.func @transform_17(%arg0: i32) -> (i32, i32) {
    %c0_i32 = arith.constant 0 : i32
    %c0_i32_0 = arith.constant 0 : i32
    %c0_i32_1 = arith.constant 0 : i32
    return %c0_i32, %c0_i32_0 : i32, i32
  }
  func.func @transform_18(%arg0: i32) -> (i32, i32) {
    %c0_i32 = arith.constant 0 : i32
    %c0_i32_0 = arith.constant 0 : i32
    %c0_i32_1 = arith.constant 0 : i32
    return %c0_i32, %c0_i32_0 : i32, i32
  }
  func.func @transform_19(%arg0: i32) -> (i32, i32) {
    %c0_i32 = arith.constant 0 : i32
    %c0_i32_0 = arith.constant 0 : i32
    %c0_i32_1 = arith.constant 0 : i32
    return %c0_i32, %c0_i32_0 : i32, i32
  }
  func.func @transform_20(%arg0: i32) -> (i32, i32) {
    %c0_i32 = arith.constant 0 : i32
    %c0_i32_0 = arith.constant 0 : i32
    %c0_i32_1 = arith.constant 0 : i32
    return %c0_i32, %c0_i32_0 : i32, i32
  }
  func.func @transform_21(%arg0: i32) -> (i32, i32, i32) {
    %c0_i32 = arith.constant 0 : i32
    %c0_i32_0 = arith.constant 0 : i32
    %c0_i32_1 = arith.constant 0 : i32
    return %arg0, %c0_i32, %c0_i32_0 : i32, i32, i32
  }
}

</mosaic_0001>

<bundles_post_ra>
// kernel: model_forward.3
= control target key start
LH: loop header
LB: loop body
LE: loop exit
PB: predicated region body
PF: predicated region fallthrough
CT: control target
= control target key end

     0   :  { %vm61_vm0 = vcmask 1046528   ;;  %vm57_vm1 = vcmask 56320   ;;  %s1046_s0 = inlined_call_operand.vmem [shape: f32[4,7], index: 0, kind: input, shape index: {}]   ;;  %s1047_s1 = inlined_call_operand.vmem [shape: f32[4,32], index: 1, kind: input, shape index: {}]   ;;  %s1048_s2 = inlined_call_operand.vmem [shape: f32[3,2,32], index: 2, kind: input, shape index: {}]   ;;  %s1049_s3 = inlined_call_operand.vmem [shape: f32[7,64], index: 3, kind: input, shape index: {}]   ;;  %s1050_s4 = inlined_call_operand.vmem [shape: f32[1,64], index: 4, kind: input, shape index: {}]   ;;  %s1051_s5 = inlined_call_operand.vmem [shape: f32[64,32], index: 5, kind: input, shape index: {}]   ;;  %s1052_s6 = inlined_call_operand.vmem [shape: f32[1,32], index: 6, kind: input, shape index: {}]   ;;  %s1053_s7 = inlined_call_operand.vmem [shape: f32[64,128], index: 7, kind: input, shape index: {}]   ;;  %s1054_s8 = inlined_call_operand.vmem [shape: f32[1,128], index: 8, kind: input, shape index: {}]   ;;  %s1055_s9 = inlined_call_operand.vmem [shape: f32[128,32], index: 9, kind: input, shape index: {}]   ;;  %s1056_s10 = inlined_call_operand.vmem [shape: f32[1,32], index: 10, kind: input, shape index: {}]   ;;  %s1057_s11 = inlined_call_operand.vmem [shape: f32[128,256], index: 11, kind: input, shape index: {}]   ;;  %s1058_s12 = inlined_call_operand.vmem [shape: f32[1,256], index: 12, kind: input, shape index: {}]   ;;  %s1059_s13 = inlined_call_operand.vmem [shape: f32[256,3], index: 13, kind: input, shape index: {}]   ;;  %s1060_s14 = inlined_call_operand.vmem [shape: f32[1,3], index: 14, kind: input, shape index: {}]   ;;  %s1061_s15 = inlined_call_operand.hbm [shape: f32[2,3], index: 15, kind: output, shape index: {}]  }
   0x1   :  { %v52_v0 = vld [vmem:[%s1049_s3] sm:$0x7f]  ;;  %v93_v2 = vld [vmem:[%s1051_s5 + $0x38] sm:$0xff]  ;;  %v92_v3 = vld [vmem:[%s1051_s5 + $0x30] sm:$0xff] }
   0x2   :  { %v51_v1 = vld [vmem:[%s1046_s0] sm:$0xf]  ;;  %574 = vmatpush.msk.msra.mxu0 %vm61_vm0, %v52_v0  ;;  %110 = vmatpush.msra.mxu3 %v93_v2  ;;  %v91_v4 = vld [vmem:[%s1051_s5 + $0x28] sm:$0xff] }
   0x3   :  { %575 = vmatmul.msk.f32.vlgmr.msra.gmra.mxu0 %vm57_vm1, %v51_v1 }
   0x4   :  { %111 = vmatpush.msra.mxu3 %v92_v3 }
   0x5   :  { %20 = vsyncpa [#allocation3], 0  ;;  %v90_v5 = vld [vmem:[%s1051_s5 + $0x20] sm:$0xff]  ;;  %v89_v6 = vld [vmem:[%s1051_s5 + $0x18] sm:$0xff]  ;;  %vm98_vm2 = vcmask 523264   ;;  %vm138_vm3 = vcmask 261120  }
   0x6   :  { %112 = vmatpush.msra.mxu3 %v91_v4  ;;  %v88_v7 = vld [vmem:[%s1051_s5 + $0x10] sm:$0xff]  ;;  %v87_v8 = vld [vmem:[%s1051_s5 + $0x8] sm:$0xff]  ;;  %v86_v9 = vld [vmem:[%s1051_s5] sm:$0xff]  ;;  %vm532_vm4 = vcmask 17408   ;;  %s565_s26 = sshll.u32 %s1061_s15, 4  ;;  %s566_s26 = int_to_ptr.hbm [resolvable:$true] %s565_s26 }
   0x7   :  { %v590_v10 = vld [vmem:[%s1050_s4] ss:$0 sm:$0xff]  ;;  %v128_v14 = vld [vmem:[%s1053_s7 + $0x18] sm:$0xff]  ;;  %v127_v16 = vld [vmem:[%s1053_s7 + $0x10] sm:$0xff] }
   0x8   :  { %113 = vmatpush.msra.mxu3 %v90_v5  ;;  %154 = vmatpush.msrb.mxu0 %v128_v14  ;;  %v132_v15 = vld [vmem:[%s1053_s7 + $0x38] sm:$0xff]  ;;  %v131_v17 = vld [vmem:[%s1053_s7 + $0x30] sm:$0xff]  ;;  %v126_v18 = vld [vmem:[%s1053_s7 + $0x8] sm:$0xff] }
   0x9   :  { %v130_v19 = vld [vmem:[%s1053_s7 + $0x28] sm:$0xff]  ;;  %v125_v20 = vld [vmem:[%s1053_s7] sm:$0xff]  ;;  %v203_v22 = vld [vmem:[%s1055_s9 + $0x78] sm:$0xff] }
   0xa   :  { %114 = vmatpush.msra.mxu3 %v89_v6  ;;  %155 = vmatpush.msrb.mxu0 %v127_v16  ;;  %v129_v21 = vld [vmem:[%s1053_s7 + $0x20] sm:$0xff]  ;;  %v202_v23 = vld [vmem:[%s1055_s9 + $0x70] sm:$0xff]  ;;  %v201_v24 = vld [vmem:[%s1055_s9 + $0x68] sm:$0xff] }
   0xb   :  { %v200_v25 = vld [vmem:[%s1055_s9 + $0x60] sm:$0xff]  ;;  %v199_v26 = vld [vmem:[%s1055_s9 + $0x58] sm:$0xff]  ;;  %v198_v27 = vld [vmem:[%s1055_s9 + $0x50] sm:$0xff] }
   0xc   :  { %115 = vmatpush.msra.mxu3 %v88_v7  ;;  %156 = vmatpush.msrb.mxu0 %v126_v18  ;;  %v197_v28 = vld [vmem:[%s1055_s9 + $0x48] sm:$0xff]  ;;  %v196_v29 = vld [vmem:[%s1055_s9 + $0x40] sm:$0xff]  ;;  %v195_v30 = vld [vmem:[%s1055_s9 + $0x38] sm:$0xff] }
   0xd   :  { %v591_v31 = vld [vmem:[%s1052_s6] ss:$0 sm:$0xff]  ;;  %v194_v38 = vld [vmem:[%s1055_s9 + $0x30] sm:$0xff]  ;;  %v193_v39 = vld [vmem:[%s1055_s9 + $0x28] sm:$0xff] }
   0xe   :  { %116 = vmatpush.msra.mxu3 %v87_v8  ;;  %157 = vmatpush.msrb.mxu0 %v125_v20  ;;  %v123_v34 = vld [vmem:[%s1047_s1] sm:$0xf]  ;;  %v191_v41 = vld [vmem:[%s1055_s9 + $0x18] sm:$0xff]  ;;  %v190_v42 = vld [vmem:[%s1055_s9 + $0x10] sm:$0xff] }
   0xf   :  { %v192_v40 = vld [vmem:[%s1055_s9 + $0x20] sm:$0xff]  ;;  %v189_v43 = vld [vmem:[%s1055_s9 + $0x8] sm:$0xff]  ;;  %v236_v45 = vld [vmem:[%s1057_s11 + $0x38] sm:$0xff] }
  0x10   :  { %117 = vmatpush.msra.mxu3 %v86_v9  ;;  %208 = vmatpush.msra.mxu0 %v203_v22  ;;  %v188_v44 = vld [vmem:[%s1055_s9] sm:$0xff]  ;;  %v235_v46 = vld [vmem:[%s1057_s11 + $0x30] sm:$0xff]  ;;  %v234_v47 = vld [vmem:[%s1057_s11 + $0x28] sm:$0xff] }
  0x11   :  { %v592_v48 = vld [vmem:[%s1054_s8] ss:$0 sm:$0xff]  ;;  %v243_v55 = vld [vmem:[%s1057_s11 + $0x70] sm:$0xff]  ;;  %v244_v56 = vld [vmem:[%s1057_s11 + $0x78] sm:$0xff] }
  0x12   :  { %178 = vmatpush.msrb.mxu3 %v132_v15  ;;  %209 = vmatpush.msra.mxu0 %v202_v23  ;;  %v233_v54 = vld [vmem:[%s1057_s11 + $0x20] sm:$0xff]  ;;  %v232_v57 = vld [vmem:[%s1057_s11 + $0x18] sm:$0xff]  ;;  %v231_v58 = vld [vmem:[%s1057_s11 + $0x10] sm:$0xff] }
  0x13   :  { %330 = vmatpush.msra.mxu1 %v243_v55  ;;  %350 = vmatpush.msra.mxu2 %v244_v56  ;;  %v241_v59 = vld [vmem:[%s1057_s11 + $0x60] sm:$0xff]  ;;  %v242_v60 = vld [vmem:[%s1057_s11 + $0x68] sm:$0xff]  ;;  %v239_v63 = vld [vmem:[%s1057_s11 + $0x50] sm:$0xff] }
  0x14   :  { %179 = vmatpush.msrb.mxu3 %v131_v17  ;;  %210 = vmatpush.msra.mxu0 %v201_v24  ;;  %v230_v61 = vld [vmem:[%s1057_s11 + $0x8] sm:$0xff]  ;;  %v229_v62 = vld [vmem:[%s1057_s11] sm:$0xff]  ;;  %v240_v0 = vld [vmem:[%s1057_s11 + $0x58] sm:$0xff] }
  0x15   :  { %331 = vmatpush.msra.mxu1 %v241_v59  ;;  %351 = vmatpush.msra.mxu2 %v242_v60  ;;  %v251_v1 = vld [vmem:[%s1057_s11 + $0xb0] sm:$0xff]  ;;  %v237_v2 = vld [vmem:[%s1057_s11 + $0x40] sm:$0xff]  ;;  %v238_v3 = vld [vmem:[%s1057_s11 + $0x48] sm:$0xff] }
  0x16   :  { %180 = vmatpush.msrb.mxu3 %v130_v19  ;;  %211 = vmatpush.msra.mxu0 %v200_v25  ;;  %v314_v4 = vld [vmem:[%s1048_s2] sm:$0x3]  ;;  %v252_v6 = vld [vmem:[%s1057_s11 + $0xb8] sm:$0xff]  ;;  %v259_v7 = vld [vmem:[%s1057_s11 + $0xf0] sm:$0xff] }
  0x17   :  { %332 = vmatpush.msra.mxu1 %v239_v63  ;;  %352 = vmatpush.msra.mxu2 %v240_v0  ;;  %v249_v5 = vld [vmem:[%s1057_s11 + $0xa0] sm:$0xff]  ;;  %v247_v8 = vld [vmem:[%s1057_s11 + $0x90] sm:$0xff]  ;;  %v250_v9 = vld [vmem:[%s1057_s11 + $0xa8] sm:$0xff] }
  0x18   :  { %181 = vmatpush.msrb.mxu3 %v129_v21  ;;  %212 = vmatpush.msra.mxu0 %v199_v26  ;;  %v246_v14 = vld [vmem:[%s1057_s11 + $0x88] sm:$0xff]  ;;  %v253_v15 = vld [vmem:[%s1057_s11 + $0xc0] sm:$0xff]  ;;  %v471_v18 = vld [vmem:[%s1059_s13 + $0x78] sm:$0xff] }
  0x19   :  { %333 = vmatpush.msra.mxu1 %v237_v2  ;;  %353 = vmatpush.msra.mxu2 %v238_v3  ;;  %v586_v16 = vld [vmem:[%s1048_s2 + $0x4] sm:$0x3]  ;;  %v583_v17 = vld [vmem:[%s1048_s2 + $0x2] sm:$0x3]  ;;  %v470_v19 = vld [vmem:[%s1059_s13 + $0x70] sm:$0xff] }
  0x1a   :  { %213 = vmatpush.msra.mxu0 %v198_v27  ;;  %581 = vmatmul.msk.f32.vlgmr.msra.gmra.mxu1 %vm138_vm3, %v314_v4  ;;  %v487_v20 = vld [vmem:[%s1059_s13 + $0xf8] sm:$0xff]  ;;  %v469_v21 = vld [vmem:[%s1059_s13 + $0x68] sm:$0xff]  ;;  %v486_v22 = vld [vmem:[%s1059_s13 + $0xf0] sm:$0xff] }
  0x1b   :  { %582 = vmatmul.msk.f32.vlgmr.msra.gmra.mxu2 %vm138_vm3, %v314_v4  ;;  %397 = vmatpush.msrb.mxu1 %v252_v6  ;;  %v468_v23 = vld [vmem:[%s1059_s13 + $0x60] sm:$0xff]  ;;  %v467_v24 = vld [vmem:[%s1059_s13 + $0x58] sm:$0xff]  ;;  %v474_v55 = vld [vmem:[%s1059_s13 + $0x90] sm:$0xff] }
  0x1c   :  { %214 = vmatpush.msra.mxu0 %v197_v28  ;;  %424 = vmatpush.msrb.mxu2 %v259_v7  ;;  %v593_v25 = vld [vmem:[%s1056_s10] ss:$0 sm:$0xff]  ;;  %v473_v56 = vld [vmem:[%s1059_s13 + $0x88] sm:$0xff] }
  0x1d   :  { %398 = vmatpush.msrb.mxu1 %v250_v9 }
  0x1e   :  { %215 = vmatpush.msra.mxu0 %v196_v29  ;;  %v260_v29 = vld [vmem:[%s1057_s11 + $0xf8] sm:$0xff] }
  0x20   :  { %216 = vmatpush.msra.mxu0 %v195_v30  ;;  %v258_v30 = vld [vmem:[%s1057_s11 + $0xe8] sm:$0xff] }
  0x22   :  { %217 = vmatpush.msra.mxu0 %v194_v38  ;;  %v483_v38 = vld [vmem:[%s1059_s13 + $0xd8] sm:$0xff] }
  0x24   :  { %218 = vmatpush.msra.mxu0 %v193_v39  ;;  %v463_v39 = vld [vmem:[%s1059_s13 + $0x38] sm:$0xff] }
  0x26   :  { %219 = vmatpush.msra.mxu0 %v192_v40  ;;  %v482_v40 = vld [vmem:[%s1059_s13 + $0xd0] sm:$0xff] }
  0x28   :  { %220 = vmatpush.msra.mxu0 %v191_v41  ;;  %v462_v41 = vld [vmem:[%s1059_s13 + $0x30] sm:$0xff] }
  0x2a   :  { %221 = vmatpush.msra.mxu0 %v190_v42  ;;  %v481_v42 = vld [vmem:[%s1059_s13 + $0xc8] sm:$0xff] }
  0x2c   :  { %222 = vmatpush.msra.mxu0 %v189_v43  ;;  %v461_v43 = vld [vmem:[%s1059_s13 + $0x28] sm:$0xff] }
  0x2e   :  { %223 = vmatpush.msra.mxu0 %v188_v44  ;;  %v480_v44 = vld [vmem:[%s1059_s13 + $0xc0] sm:$0xff] }
  0x80   :  { %v82_v11 = vpop.f32.mrf.mxu0 }
  0x81   :  { %v83_v12 = vadd.f32 %v590_v10, %v82_v11  ;;  %v257_v10 = vld [vmem:[%s1057_s11 + $0xe0] sm:$0xff] }
  0x82   :  { %v245_v11 = vld [vmem:[%s1057_s11 + $0x80] sm:$0xff]  ;;  %425 = vmatpush.msrb.mxu2 %v257_v10 }
  0x83   :  { %v85_v13 = vmax.f32 %v83_v12, 0.0  ;;  %v248_v12 = vld [vmem:[%s1057_s11 + $0x98] sm:$0xff] }
  0x84   :  { %399 = vmatpush.msrb.mxu1 %v248_v12 }
  0x85   :  { %576 = vmatmul.msk.f32.vlgmr.msra.gmra.mxu3 %vm98_vm2, %v85_v13  ;;  %v255_v13 = vld [vmem:[%s1057_s11 + $0xd0] sm:$0xff] }
  0x86   :  { %304 = vmatpush.msra.mxu3 %v236_v45  ;;  %426 = vmatpush.msrb.mxu2 %v255_v13  ;;  %v460_v45 = vld [vmem:[%s1059_s13 + $0x20] sm:$0xff] }
  0x87   :  { %400 = vmatpush.msrb.mxu1 %v246_v14 }
  0x88   :  { %305 = vmatpush.msra.mxu3 %v234_v47  ;;  %427 = vmatpush.msrb.mxu2 %v253_v15  ;;  %v459_v47 = vld [vmem:[%s1059_s13 + $0x18] sm:$0xff]  ;;  %v594_v15 = vld [vmem:[%s1060_s14] ss:$0 sm:$0xff]  ;;  %s625_s14 = smov [#allocation2]  }
  0x89   :  { %585 = vmatmul.msk.f32.vlgmr.msrb.gmra.mxu1 %vm138_vm3, %v583_v17  ;;  %587 = vmatmul.msk.f32.vlgmr.msrb.gmra.mxu2 %vm138_vm3, %v586_v16  ;;  %s563_s10 = sshll.u32 %s625_s14, 4  ;;  %s564_s10 = int_to_ptr.vmem [resolvable:$true] %s563_s10 }
  0x8a   :  { %306 = vmatpush.msra.mxu3 %v232_v57  ;;  %492 = vmatpush.msra.mxu1 %v471_v18  ;;  %v472_v57 = vld [vmem:[%s1059_s13 + $0x80] sm:$0xff] }
  0x8b   :  { %512 = vmatpush.msra.mxu2 %v487_v20 }
  0x8c   :  { %307 = vmatpush.msra.mxu3 %v230_v61  ;;  %493 = vmatpush.msra.mxu1 %v470_v19 }
  0x8d   :  { %513 = vmatpush.msra.mxu2 %v486_v22 }
  0x8e   :  { %494 = vmatpush.msra.mxu1 %v469_v21 }
  0x90   :  { %495 = vmatpush.msra.mxu1 %v468_v23 }
  0x92   :  { %496 = vmatpush.msra.mxu1 %v467_v24 }
  0x97   :  { %v335_v63 = vpop.f32.mrf.mxu1 }
  0x9e   :  { %v355_v59 = vpop.f32.mrf.mxu2 }
 0x106   :  { %v402_v9 = vpop.f32.mrf.mxu1 }
 0x108   :  { %v119_v32 = vpop.f32.mrf.mxu3 }
 0x109   :  { %v120_v33 = vadd.f32 %v591_v31, %v119_v32  ;;  %v256_v31 = vld [vmem:[%s1057_s11 + $0xd8] sm:$0xff]  ;;  %v254_v32 = vld [vmem:[%s1057_s11 + $0xc8] sm:$0xff] }
 0x10b   :  { %v122_v35 = vmax.f32 %v120_v33, 0.0  ;;  %v466_v33 = vld [vmem:[%s1059_s13 + $0x50] sm:$0xff] }
 0x10c   :  { %497 = vmatpush.msra.mxu1 %v466_v33 }
 0x10d   :  { %v124_v36 = vadd.f32 %v123_v34, %v122_v35  ;;  %v485_v34 = vld [vmem:[%s1059_s13 + $0xe8] sm:$0xff] }
 0x10e   :  { %514 = vmatpush.msra.mxu2 %v485_v34  ;;  %v465_v35 = vld [vmem:[%s1059_s13 + $0x48] sm:$0xff] }
 0x10f   :  { %v163_v37 = vrot.slane %v124_v36, 2  ;;  %577 = vmatmul.msk.f32.vlgmr.msrb.gmra.mxu0 %vm138_vm3, %v124_v36  ;;  %v484_v36 = vld [vmem:[%s1059_s13 + $0xe0] sm:$0xff]  ;;  %498 = vmatpush.msra.mxu1 %v465_v35 }
 0x110   :  { %284 = vmatpush.msrb.mxu0 %v235_v46  ;;  %515 = vmatpush.msra.mxu2 %v484_v36  ;;  %v479_v46 = vld [vmem:[%s1059_s13 + $0xb8] sm:$0xff] }
 0x111   :  { %578 = vmatmul.msk.f32.vlgmr.msrb.gmra.mxu3 %vm138_vm3, %v163_v37  ;;  %v464_v37 = vld [vmem:[%s1059_s13 + $0x40] sm:$0xff] }
 0x112   :  { %285 = vmatpush.msrb.mxu0 %v233_v54  ;;  %377 = vmatpush.msrb.mxu3 %v251_v1  ;;  %v475_v54 = vld [vmem:[%s1059_s13 + $0x98] sm:$0xff] }
 0x113   :  { %499 = vmatpush.msra.mxu1 %v464_v37  ;;  %516 = vmatpush.msra.mxu2 %v483_v38 }
 0x114   :  { %286 = vmatpush.msrb.mxu0 %v231_v58  ;;  %378 = vmatpush.msrb.mxu3 %v249_v5  ;;  %v261_v58 = vld [vmem:[%s1058_s12] sm:$0x3]  ;;  %v429_v5 = vpop.f32.mrf.mxu2 }
 0x115   :  { %500 = vmatpush.msra.mxu1 %v463_v39  ;;  %517 = vmatpush.msra.mxu2 %v482_v40  ;;  %v263_v60 = vperm.slane %v261_v58, 0  ;;  %v264_v1 = vperm.slane %v261_v58, 1 }
 0x116   :  { %287 = vmatpush.msrb.mxu0 %v229_v62  ;;  %379 = vmatpush.msrb.mxu3 %v247_v8 }
 0x117   :  { %501 = vmatpush.msra.mxu1 %v462_v41  ;;  %518 = vmatpush.msra.mxu2 %v481_v42 }
 0x118   :  { %380 = vmatpush.msrb.mxu3 %v245_v11 }
 0x119   :  { %502 = vmatpush.msra.mxu1 %v461_v43  ;;  %519 = vmatpush.msra.mxu2 %v480_v44 }
 0x11b   :  { %503 = vmatpush.msra.mxu1 %v460_v45  ;;  %520 = vmatpush.msra.mxu2 %v479_v46 }
 0x11d   :  { %504 = vmatpush.msra.mxu1 %v459_v47 }
 0x18c   :  { %v159_v49 = vpop.f32.mrf.mxu0 }
 0x18d   :  { %v162_v50 = vadd.f32 %v592_v48, %v159_v49  ;;  %v478_v48 = vld [vmem:[%s1059_s13 + $0xb0] sm:$0xff] }
 0x18e   :  { %521 = vmatpush.msra.mxu2 %v478_v48  ;;  %v458_v49 = vld [vmem:[%s1059_s13 + $0x10] sm:$0xff] }
 0x18f   :  { %505 = vmatpush.msra.mxu1 %v458_v49 }
 0x194   :  { %v183_v51 = vpop.f32.mrf.mxu3 }
 0x195   :  { %v186_v52 = vadd.f32 %v183_v51, %v162_v50  ;;  %v477_v50 = vld [vmem:[%s1059_s13 + $0xa8] sm:$0xff] }
 0x196   :  { %522 = vmatpush.msra.mxu2 %v477_v50  ;;  %v457_v51 = vld [vmem:[%s1059_s13 + $0x8] sm:$0xff] }
 0x197   :  { %v187_v53 = vmax.f32 %v186_v52, 0.0  ;;  %v476_v52 = vld [vmem:[%s1059_s13 + $0xa0] sm:$0xff]  ;;  %506 = vmatpush.msra.mxu1 %v457_v51 }
 0x198   :  { %523 = vmatpush.msra.mxu2 %v476_v52 }
 0x199   :  { %224 = vmatmul.f32.vlgmr.msra.gmra.mxu0 %v187_v53  ;;  %v456_v53 = vld [vmem:[%s1059_s13] sm:$0xff] }
 0x19a   :  { %507 = vmatpush.msra.mxu1 %v456_v53  ;;  %524 = vmatpush.msra.mxu2 %v475_v54 }
 0x19c   :  { %525 = vmatpush.msra.mxu2 %v474_v55 }
 0x19e   :  { %526 = vmatpush.msra.mxu2 %v473_v56 }
 0x1a0   :  { %527 = vmatpush.msra.mxu2 %v472_v57 }
 0x216   :  { %v225_v26 = vpop.f32.mrf.mxu0 }
 0x217   :  { %v226_v27 = vadd.f32 %v593_v25, %v225_v26 }
 0x219   :  { %v228_v28 = vmax.f32 %v226_v27, 0.0 }
 0x21b   :  { %579 = vmatmul.msk.f32.vlgmr.msrb.gmra.mxu0 %vm138_vm3, %v228_v28  ;;  %580 = vmatmul.msk.f32.vlgmr.msra.gmra.mxu3 %vm138_vm3, %v228_v28 }
 0x21c   :  { %444 = vmatpush.msra.mxu3 %v260_v29 }
 0x21e   :  { %445 = vmatpush.msra.mxu3 %v258_v30 }
 0x220   :  { %446 = vmatpush.msra.mxu3 %v256_v31 }
 0x222   :  { %447 = vmatpush.msra.mxu3 %v254_v32 }
 0x223   :  { %584 = vmatmul.msk.f32.vlgmr.msrb.gmra.mxu3 %vm138_vm3, %v583_v17 }
 0x22b   :  { %588 = vmatmul.msk.f32.vlgmr.msra.gmra.mxu3 %vm138_vm3, %v586_v16 }
 0x298   :  { %v289_v61 = vpop.f32.mrf.mxu0 }
 0x299   :  { %v312_v0 = vadd.f32 %v289_v61, %v263_v60 }
 0x29b   :  { %v358_v2 = vadd.f32 %v335_v63, %v312_v0 }
 0x29e   :  { %v309_v62 = vpop.f32.mrf.mxu3 }
 0x29f   :  { %v313_v3 = vadd.f32 %v309_v62, %v264_v1 }
 0x2a1   :  { %v359_v7 = vadd.f32 %v355_v59, %v313_v3 }
 0x2a3   :  { %v406_v11 = vadd.f32 %v402_v9, %v359_v7 }
 0x2a6   :  { %v382_v4 = vpop.f32.mrf.mxu3 }
 0x2a7   :  { %v405_v6 = vadd.f32 %v382_v4, %v358_v2 }
 0x2a9   :  { %v452_v8 = vadd.f32 %v429_v5, %v405_v6 }
 0x2ab   :  { %v454_v10 = vmax.f32 %v452_v8, 0.0 }
 0x2ad   :  { %508 = vmatmul.f32.vlgmr.msra.gmra.mxu1 %v454_v10 }
 0x2ae   :  { %v449_v12 = vpop.f32.mrf.mxu3 }
 0x2af   :  { %v453_v13 = vadd.f32 %v449_v12, %v406_v11 }
 0x2b1   :  { %v455_v14 = vmax.f32 %v453_v13, 0.0 }
 0x2b3   :  { %528 = vmatmul.f32.vlgmr.msra.gmra.mxu2 %v455_v14 }
 0x32a   :  { %v509_v16 = vpop.f32.mrf.mxu1 }
 0x32b   :  { %v510_v17 = vadd.f32 %v594_v15, %v509_v16 }
 0x336   :  { %v529_v18 = vpop.f32.mrf.mxu2 }
 0x337   :  { %v530_v19 = vadd.f32 %v529_v18, %v510_v17 }
 0x339   :  { %v533_v20 = vsel %vm532_vm4, %v530_v19, -inf }
 0x33a   :  { %534 = vmax.xlane.f32.xlu0 %v533_v20 }
 0x3ad   :  { %v535_v21 = vpop.xlane.xlu0 %534 }
 0x3ae   :  { %v536_v22 = vsub.f32 %v530_v19, %v535_v21 }
 0x3b0   :  { %v537_v23 = vmul.f32 1.442695, %v536_v22 }
 0x3b2   :  { %595 = vpow2.f32 %v537_v23 }
 0x3b8   :  { %v596_v24 = vpop.eup %595 }
 0x3b9   :  { %v539_v25 = vsel %vm532_vm4, %v596_v24, 0.0 }
 0x3ba   :  { %540 = vadd.xlane.f32.xlu0 %v539_v25 }
 0x42d   :  { %v541_v26 = vpop.xlane.xlu0 %540 }
 0x42e   :  { %597 = vrcp.f32 %v541_v26  ;;  %v553_v30 = vand.u32 2147483648, %v541_v26  ;;  %v551_v32 = vand.u32 2147483647, %v541_v26  ;;  %vm547_vm6 = vweird.f32 %v541_v26 }
 0x430   :  { %v554_v34 = vor.u32 1.1754944e-38, %v553_v30  ;;  %vm552_vm8 = vcmp.eq.f32.partialorder %v551_v32, 8.507059e+37 }
 0x434   :  { %v598_v27 = vpop.eup %597 }
 0x435   :  { %v543_v28 = vmul.f32 %v598_v27, %v541_v26  ;;  %vm548_vm5 = vweird.f32 %v598_v27 }
 0x436   :  { %vm549_vm7 = vmor %vm547_vm6, %vm548_vm5 }
 0x437   :  { %v544_v29 = vsub.f32 1.0, %v543_v28 }
 0x439   :  { %v545_v31 = vmul.f32 %v598_v27, %v544_v29 }
 0x43b   :  { %v546_v33 = vadd.f32 %v598_v27, %v545_v31 }
 0x43d   :  { %v550_v35 = vsel %vm549_vm7, %v598_v27, %v546_v33 }
 0x43e   :  { %v555_v36 = vsel %vm552_vm8, %v554_v34, %v550_v35 }
 0x43f   :  { %v556_v37 = vmul.f32 %v596_v24, %v555_v36 }
 0x441   :  { %557 = vst.msk [vmem:[#allocation2] sm:$0x3] %vm532_vm4, %v556_v37 }
 0x442   :  { %568 = dma.vmem_to_hbm [thread:$0]  %s564_s10, 32, %s566_s26, [#allocation3]  }
 0x443   :  { %623 = dma.done.wait [#allocation3], 32  }
 0x444   :  { %624 = vsyncadd [#allocation3], 4294967264 }
 0x445   :  { %573 = vsyncpa [#allocation3], 1 }

// kernel: model_forward.2
= control target key start
LH: loop header
LB: loop body
LE: loop exit
PB: predicated region body
PF: predicated region fallthrough
CT: control target
= control target key end

     0   :  { %s4189_s0 = inlined_call_operand.vmem [shape: f32[3,10,64], index: 0, kind: input, shape index: {}]   ;;  %s4190_s1 = inlined_call_operand.vmem [shape: f32[3,10,20], index: 1, kind: input, shape index: {}]   ;;  %s4191_s2 = inlined_call_operand.vmem [shape: f32[64,96], index: 2, kind: input, shape index: {}]   ;;  %s4192_s3 = inlined_call_operand.vmem [shape: f32[1,96], index: 3, kind: input, shape index: {}]   ;;  %s4193_s4 = inlined_call_operand.vmem [shape: f32[96,32], index: 4, kind: input, shape index: {}]   ;;  %s4194_s5 = inlined_call_operand.vmem [shape: f32[1,32], index: 5, kind: input, shape index: {}]   ;;  %s4195_s6 = inlined_call_operand.vmem [shape: f32[75], index: 6, kind: input, shape index: {}]   ;;  %s4196_s7 = inlined_call_operand.vmem [shape: f32[5], index: 7, kind: input, shape index: {}]   ;;  %s4197_s8 = inlined_call_operand.vmem [shape: f32[18,128], index: 8, kind: input, shape index: {}]   ;;  %s4198_s9 = inlined_call_operand.vmem [shape: f32[32,128], index: 9, kind: input, shape index: {}]   ;;  %s4199_s10 = inlined_call_operand.vmem [shape: f32[1,128], index: 10, kind: input, shape index: {}]   ;;  %s4200_s11 = inlined_call_operand.vmem [shape: f32[32,128], index: 11, kind: input, shape index: {}]   ;;  %s4201_s12 = inlined_call_operand.vmem [shape: f32[32,128], index: 12, kind: input, shape index: {}]   ;;  %s4202_s13 = inlined_call_operand.vmem [shape: f32[1,128], index: 13, kind: input, shape index: {}]   ;;  %s4203_s14 = inlined_call_operand.vmem [shape: f32[32,128], index: 14, kind: input, shape index: {}]   ;;  %s4204_s15 = inlined_call_operand.vmem [shape: f32[32,128], index: 15, kind: input, shape index: {}]   ;;  %s4205_s16 = inlined_call_operand.vmem [shape: f32[1,128], index: 16, kind: input, shape index: {}]   ;;  %s4206_s17 = inlined_call_operand.vmem [shape: f32[160,160], index: 17, kind: input, shape index: {}]   ;;  %s4207_s18 = inlined_call_operand.vmem [shape: f32[1,160], index: 18, kind: input, shape index: {}]   ;;  %s4208_s19 = inlined_call_operand.vmem [shape: f32[160,32], index: 19, kind: input, shape index: {}]   ;;  %s4209_s20 = inlined_call_operand.vmem [shape: f32[1,32], index: 20, kind: input, shape index: {}]   ;;  %s4210_s21 = inlined_call_operand.vmem [shape: f32[3,2,32], index: 21, kind: output, shape index: {}]  }
   0x1   :  { %4223 = sst [smem:[#allocation11_spill]] %s4189_s0 }
   0x2   :  { %4224 = sst [smem:[#allocation12_spill]] %s4190_s1 }
   0x3   :  { %4225 = sst [smem:[#allocation13_spill]] %s4191_s2 }
   0x4   :  { %4226 = sst [smem:[#allocation14_spill]] %s4192_s3 }
   0x5   :  { %4227 = sst [smem:[#allocation15_spill]] %s4193_s4 }
   0x6   :  { %4228 = sst [smem:[#allocation16_spill]] %s4194_s5 }
   0x7   :  { %26 = vsyncpa [#allocation6], 0 }
   0x8   :  { %27 = vsyncpa [#allocation8], 0  ;;  %s3342_s2 = smov 0  }
   0x9 LB: > { %s2874_s25 = sadd.s32 4294967295, %s3223_s2   ;;  %p2876_p0 = scmp.ge.s32.totalorder %s3223_s2, 1  ;;  %s3223_s2 = sphi %s3342_s2, %s33_s2  }
   0xa   : > { %p515_p1 = scmp.lt.s32.totalorder %s3223_s2, 4  ;;  %s539_s3 = sshll.u32 %s4195_s6, 4  ;;  %s540_s3 = int_to_ptr.vmem [resolvable:$true] %s539_s3 }
   0xb   : > { %p3019_p3 = scmp.eq.s32.totalorder %s2874_s25, 0  ;;  %s549_s0 = sshll.u32 %s4196_s7, 4  ;;  %s550_s0 = int_to_ptr.vmem [resolvable:$true] %s549_s0 }
   0xc   : > { %p516_p2 = pnand %p2876_p0, %p515_p1  ;;  %s3225_s4 = smov [#allocation5]  }
   0xd   : > { %s3226_s30 = smov [#allocation7]  }
   0xe   : > { %p3012_p4 = pneg %p516_p2 }
   0xf   : > { %617 = sbr.rel (%p516_p2) target bundleno = 8814 (0x226e), region = 104 }
  0x10   : > { %p3013_p5 = pnand %p3019_p3, %p3012_p4 }
  0x12   : > { %3015 = dma.vmem_to_smem (!%p3013_p5), %s540_s3, 16, %s3225_s4, [#allocation6]  }
  0x13   : > { %3018 = dma.vmem_to_smem (!%p3013_p5), %s550_s0, 16, %s3226_s30, [#allocation8]  }
  0x14   : > { %3214 = dma.done.wait (%p3019_p3), [#allocation6], 16  }
  0x15   : > { %3216 = vsyncadd (%p3019_p3), [#allocation6], 4294967280 }
  0x16   : > { %3218 = dma.done.wait (%p3019_p3), [#allocation8], 16  }
  0x17   : > { %3220 = vsyncadd (%p3019_p3), [#allocation8], 4294967280 }
  0x18   : > { %629 = sfence }
  0x19   : > { %p688_p6 = scmp.lt.s32.totalorder %s2874_s25, 2  ;;  %s2923_s5 = sld [smem:[#allocation5 + $0x1f]]  ;;  %vm1442_vm0 = vcmask 1041408   ;;  %vm948_vm1 = vcmask 140288   ;;  %vm1435_vm2 = vcmask 146432   ;;  %vm1525_vm3 = vcmask 254976  }
  0x1a   : > { %s2892_s22 = sld [smem:[#allocation5 + $0x1]]  ;;  %s4216_s4 = smov 127   ;;  %vm1473_vm4 = vcmask 261120   ;;  %vm1583_vm5 = vcmask 257026   ;;  %vm1644_vm6 = vcmask 259076   ;;  %vm718_vm7 = vcmask 523264  }
  0x1b   : > { %s4241_s25 = smov (!%p688_p6, %s2874_s25), 2  ;;  %s2939_s1 = sld [smem:[#allocation5 + $0x2e]]  ;;  %vm1705_vm8 = vcmask 261126   ;;  %vm782_vm9 = vcmask 785408  }
  0x1c   : > { %s4213_s23 = sshll.u32 %s4241_s25, 4  ;;  %s4229_s27 = sld [smem:[#allocation12_spill]] }
  0x1d   : > { %s2907_s28 = sld [smem:[#allocation5 + $0x10]] }
  0x1e   : > { %s2893_s29 = sld [smem:[#allocation5 + $0x2]] }
  0x1f   : > { %v1074_v1 = vstv %s2923_s5  ;;  %s2908_s0 = sld [smem:[#allocation5 + $0x11]]  ;;  %s4214_s5 = smov 126  }
  0x20   : > { %v835_v3 = vstv %s2892_s22  ;;  %s2940_s30 = sld [smem:[#allocation5 + $0x2f]] }
  0x21   : > { %v1193_v5 = vstv %s2939_s1  ;;  %s2895_s24 = sld [smem:[#allocation5 + $0x4]] }
  0x22   : > { %s3369_s3 = scalar_lea.vmem %s4229_s27, %s4213_s23  ;;  %s2924_s26 = sld [smem:[#allocation5 + $0x20]] }
  0x23   : > { %v3372_v0 = vld [vmem:[%s3369_s3] sm:$0xff]  ;;  %v955_v7 = vstv %s2907_s28  ;;  %s2926_s22 = sld [smem:[#allocation5 + $0x22]]  ;;  %s4218_s23 = smov 64  }
  0x24   : > { %v1075_v2 = vmul.f32 %v1074_v1, %v3372_v0  ;;  %v836_v4 = vmul.f32 %v835_v3, %v3372_v0  ;;  %v843_v6 = vstv %s2893_s29  ;;  %v1194_v9 = vmul.f32 %v1193_v5, %v3372_v0  ;;  %s2910_s27 = sld [smem:[#allocation5 + $0x13]] }
  0x25   : > { %v844_v8 = vmul.f32 %v843_v6, %v3372_v0  ;;  %v956_v10 = vmul.f32 %v955_v7, %v3372_v0  ;;  %v963_v11 = vstv %s2908_s0  ;;  %s2942_s1 = sld [smem:[#allocation5 + $0x31]] }
  0x26   : > { %1077 = vrot.lane.b32.xlu1 %v1075_v2, %s4216_s4  ;;  %838 = vrot.lane.b32.xlu0 %v836_v4, %s4216_s4  ;;  %v1201_v12 = vstv %s2940_s30  ;;  %v964_v13 = vmul.f32 %v963_v11, %v3372_v0  ;;  %s2911_s28 = sld [smem:[#allocation5 + $0x14]] }
  0x27   : > { %846 = vrot.lane.b32.xlu2 %v844_v8, %s4214_s5  ;;  %v858_v14 = vstv %s2895_s24  ;;  %v1202_v16 = vmul.f32 %v1201_v12, %v3372_v0  ;;  %s2896_s29 = sld [smem:[#allocation5 + $0x5]] }
  0x28   : > { %v1082_v15 = vstv %s2924_s26  ;;  %v859_v18 = vmul.f32 %v858_v14, %v3372_v0  ;;  %s2927_s0 = sld [smem:[#allocation5 + $0x23]] }
  0x29   : > { %v1097_v17 = vstv %s2926_s22  ;;  %v1083_v19 = vmul.f32 %v1082_v15, %v3372_v0  ;;  %s2898_s30 = sld [smem:[#allocation5 + $0x7]] }
  0x2a   : > { %v978_v20 = vstv %s2910_s27  ;;  %v1098_v21 = vmul.f32 %v1097_v17, %v3372_v0  ;;  %v861_v22 = vrot.slane %v859_v18, 2  ;;  %s2943_s24 = sld [smem:[#allocation5 + $0x32]] }
  0x2b   : > { %v979_v23 = vmul.f32 %v978_v20, %v3372_v0  ;;  %v1216_v24 = vstv %s2942_s1  ;;  %s2913_s26 = sld [smem:[#allocation5 + $0x16]] }
  0x2c   : > { %v1100_v25 = vrot.slane %v1098_v21, 2  ;;  %v987_v26 = vstv %s2911_s28  ;;  %v1217_v27 = vmul.f32 %v1216_v24, %v3372_v0  ;;  %s2945_s22 = sld [smem:[#allocation5 + $0x34]] }
  0x2d   : > { %v981_v28 = vrot.slane %v979_v23, 2  ;;  %v867_v29 = vstv %s2896_s29  ;;  %v988_v30 = vmul.f32 %v987_v26, %v3372_v0  ;;  %s2929_s27 = sld [smem:[#allocation5 + $0x25]] }
  0x2e   : > { %1196 = vrot.lane.b32.xlu1 %v1194_v9, %s4216_s4  ;;  %958 = vrot.lane.b32.xlu0 %v956_v10, %s4216_s4  ;;  %v1219_v31 = vrot.slane %v1217_v27, 2  ;;  %v868_v32 = vmul.f32 %v867_v29, %v3372_v0  ;;  %v1106_v33 = vstv %s2927_s0  ;;  %s2899_s1 = sld [smem:[#allocation5 + $0x8]]  ;;  %v3438_v27 = vld [vmem:[%s3369_s3 + $0x8] sm:$0x3] }
  0x2f   : > { %966 = vrot.lane.b32.xlu2 %v964_v13, %s4214_s5  ;;  %v990_v34 = vrot.slane %v988_v30, 2  ;;  %v883_v35 = vstv %s2898_s30  ;;  %v1107_v36 = vmul.f32 %v1106_v33, %v3372_v0  ;;  %s2930_s28 = sld [smem:[#allocation5 + $0x26]] }
  0x30   : > { %v870_v37 = vrot.slane %v868_v32, 2  ;;  %v1225_v38 = vstv %s2943_s24  ;;  %v884_v39 = vmul.f32 %v883_v35, %v3372_v0  ;;  %s2914_s29 = sld [smem:[#allocation5 + $0x17]] }
  0x31   : > { %v1109_v40 = vrot.slane %v1107_v36, 2  ;;  %v1226_v41 = vmul.f32 %v1225_v38, %v3372_v0  ;;  %v1003_v42 = vstv %s2913_s26  ;;  %s2946_s0 = sld [smem:[#allocation5 + $0x35]] }
  0x32   : > { %v886_v43 = vrot.slane %v884_v39, 4  ;;  %v1241_v44 = vstv %s2945_s22  ;;  %v1004_v45 = vmul.f32 %v1003_v42, %v3372_v0  ;;  %s2916_s30 = sld [smem:[#allocation5 + $0x19]] }
  0x33   : > { %v1228_v46 = vrot.slane %v1226_v41, 2  ;;  %v1122_v47 = vstv %s2929_s27  ;;  %v1242_v48 = vmul.f32 %v1241_v44, %v3372_v0  ;;  %s2901_s24 = sld [smem:[#allocation5 + $0xa]] }
  0x34   : > { %v1006_v49 = vrot.slane %v1004_v45, 4  ;;  %v1123_v50 = vmul.f32 %v1122_v47, %v3372_v0  ;;  %v892_v51 = vstv %s2899_s1  ;;  %s2932_s26 = sld [smem:[#allocation5 + $0x28]] }
  0x35   : > { %v1244_v52 = vrot.slane %v1242_v48, 4  ;;  %v1131_v53 = vstv %s2930_s28  ;;  %v893_v54 = vmul.f32 %v892_v51, %v3372_v0  ;;  %s2902_s22 = sld [smem:[#allocation5 + $0xb]] }
  0x36   : > { %1204 = vrot.lane.b32.xlu1 %v1202_v16, %s4214_s5  ;;  %1085 = vrot.lane.b32.xlu0 %v1083_v19, %s4214_s5  ;;  %v1125_v55 = vrot.slane %v1123_v50, 4  ;;  %v1012_v56 = vstv %s2914_s29  ;;  %v1132_v57 = vmul.f32 %v1131_v53, %v3372_v0  ;;  %s2948_s27 = sld [smem:[#allocation5 + $0x37]] }
  0x37   : > { %862 = vrot.lane.b32.xlu2 %v861_v22, %s4216_s4  ;;  %v895_v58 = vrot.slane %v893_v54, 4  ;;  %v1013_v59 = vmul.f32 %v1012_v56, %v3372_v0  ;;  %v1250_v60 = vstv %s2946_s0  ;;  %s2917_s1 = sld [smem:[#allocation5 + $0x1a]] }
  0x38   : > { %v1134_v61 = vrot.slane %v1132_v57, 4  ;;  %v1028_v62 = vstv %s2916_s30  ;;  %v1251_v63 = vmul.f32 %v1250_v60, %v3372_v0  ;;  %s2949_s28 = sld [smem:[#allocation5 + $0x38]] }
  0x39   : > { %v1015_v1 = vrot.slane %v1013_v59, 4  ;;  %v908_v2 = vstv %s2901_s24  ;;  %v1029_v3 = vmul.f32 %v1028_v62, %v3372_v0  ;;  %s2933_s29 = sld [smem:[#allocation5 + $0x29]] }
  0x3a   : > { %v1253_v4 = vrot.slane %v1251_v63, 4  ;;  %v909_v5 = vmul.f32 %v908_v2, %v3372_v0  ;;  %v1147_v6 = vstv %s2932_s26  ;;  %s2904_s0 = sld [smem:[#allocation5 + $0xd]] }
  0x3b   : > { %v1031_v7 = vrot.slane %v1029_v3, 6  ;;  %v917_v8 = vstv %s2902_s22  ;;  %v1148_v9 = vmul.f32 %v1147_v6, %v3372_v0  ;;  %s2935_s30 = sld [smem:[#allocation5 + $0x2b]] }
  0x3c   : > { %v911_v10 = vrot.slane %v909_v5, 6  ;;  %v1266_v11 = vstv %s2948_s27  ;;  %v918_v12 = vmul.f32 %v917_v8, %v3372_v0  ;;  %s2919_s24 = sld [smem:[#allocation5 + $0x1c]] }
  0x3d   : > { %v1150_v13 = vrot.slane %v1148_v9, 6  ;;  %v1267_v14 = vmul.f32 %v1266_v11, %v3372_v0  ;;  %v1037_v15 = vstv %s2917_s1  ;;  %s2951_s26 = sld [smem:[#allocation5 + $0x3a]] }
  0x3e   : > { %1101 = vrot.lane.b32.xlu1 %v1100_v25, %s4216_s4  ;;  %982 = vrot.lane.b32.xlu0 %v981_v28, %s4216_s4  ;;  %v920_v16 = vrot.slane %v918_v12, 6  ;;  %v1275_v17 = vstv %s2949_s28  ;;  %v1038_v18 = vmul.f32 %v1037_v15, %v3372_v0  ;;  %s2920_s22 = sld [smem:[#allocation5 + $0x1d]] }
  0x3f   : > { %1220 = vrot.lane.b32.xlu2 %v1219_v31, %s4216_s4  ;;  %v1269_v19 = vrot.slane %v1267_v14, 6  ;;  %v1156_v20 = vstv %s2933_s29  ;;  %v1276_v21 = vmul.f32 %v1275_v17, %v3372_v0  ;;  %s2905_s27 = sld [smem:[#allocation5 + $0xe]] }
  0x40   : > { %v1040_v22 = vrot.slane %v1038_v18, 6  ;;  %v1157_v23 = vmul.f32 %v1156_v20, %v3372_v0  ;;  %v930_v26 = vstv %s2904_s0  ;;  %s2936_s1 = sld [smem:[#allocation5 + $0x2c]] }
  0x41   : > { %v1278_v24 = vrot.slane %v1276_v21, 6  ;;  %v1169_v28 = vstv %s2935_s30  ;;  %v931_v29 = vmul.f32 %v930_v26, %v3438_v27  ;;  %s2952_s28 = sld [smem:[#allocation5 + $0x3b]] }
  0x42   : > { %v1159_v25 = vrot.slane %v1157_v23, 6  ;;  %v1050_v30 = vstv %s2919_s24  ;;  %v1170_v31 = vmul.f32 %v1169_v28, %v3438_v27  ;;  %s830_s29 = sld [smem:[#allocation5]] }
  0x43   : > { %v1051_v32 = vmul.f32 %v1050_v30, %v3438_v27  ;;  %v1288_v33 = vstv %s2951_s26  ;;  %s2894_s0 = sld [smem:[#allocation5 + $0x3]] }
  0x44   : > { %v1289_v35 = vmul.f32 %v1288_v33, %v3438_v27  ;;  %s2938_s30 = sld [smem:[#allocation5 + $0x2d]] }
  0x45   : > { %v938_v36 = vstv %s2905_s27  ;;  %s2941_s24 = sld [smem:[#allocation5 + $0x30]] }
  0x46   : > { %991 = vrot.lane.b32.xlu1 %v990_v34, %s4214_s5  ;;  %871 = vrot.lane.b32.xlu0 %v870_v37, %s4214_s5  ;;  %v1058_v34 = vstv %s2920_s22  ;;  %v939_v38 = vmul.f32 %v938_v36, %v3438_v27  ;;  %v1177_v39 = vstv %s2936_s1  ;;  %s2922_s26 = sld [smem:[#allocation5 + $0x1e]] }
  0x47   : > { %1110 = vrot.lane.b32.xlu2 %v1109_v40, %s4214_s5  ;;  %v1059_v37 = vmul.f32 %v1058_v34, %v3438_v27  ;;  %v1178_v41 = vmul.f32 %v1177_v39, %v3438_v27  ;;  %v1296_v42 = vstv %s2952_s28  ;;  %s2925_s22 = sld [smem:[#allocation5 + $0x21]] }
  0x48   : > { %v831_v45 = vstv %s830_s29  ;;  %s2906_s27 = sld [smem:[#allocation5 + $0xf]] }
  0x49   : > { %v832_v48 = vmul.f32 %v831_v45, %v3372_v0  ;;  %s2909_s1 = sld [smem:[#allocation5 + $0x12]] }
  0x4a   : > { %v1189_v56 = vstv %s2938_s30  ;;  %s2928_s28 = sld [smem:[#allocation5 + $0x24]] }
  0x4b   : > { %v1209_v59 = vstv %s2941_s24  ;;  %s2912_s29 = sld [smem:[#allocation5 + $0x15]] }
  0x4c   : > { %v1210_v63 = vmul.f32 %v1209_v59, %v3372_v0  ;;  %v1070_v18 = vstv %s2922_s26  ;;  %s2931_s30 = sld [smem:[#allocation5 + $0x27]] }
  0x4d   : > { %s2944_s24 = sld [smem:[#allocation5 + $0x33]] }
  0x4e   : > { %887 = vrot.lane.b32.xlu1 %v886_v43, %s4216_s4  ;;  %1229 = vrot.lane.b32.xlu0 %v1228_v46, %s4214_s5  ;;  %v1297_v43 = vmul.f32 %v1296_v42, %v3438_v27  ;;  %v851_v46 = vstv %s2894_s0  ;;  %v1212_v3 = vrot.slane %v1210_v63, 2  ;;  %v951_v23 = vstv %s2906_s27  ;;  %s2897_s0 = sld [smem:[#allocation5 + $0x6]] }
  0x4f   : > { %1007 = vrot.lane.b32.xlu2 %v1006_v49, %s4216_s4  ;;  %v852_v49 = vmul.f32 %v851_v46, %v3372_v0  ;;  %v952_v28 = vmul.f32 %v951_v23, %v3372_v0  ;;  %s3489_s26 = sld [smem:[#allocation5 + $0x18]] }
  0x50   : > { %s3504_s27 = sld [smem:[#allocation5 + $0x2a]] }
  0x51   : > { %v854_v53 = vrot.slane %v852_v49, 2 }
  0x54   : > { %v876_v45 = vstv %s2897_s0  ;;  %s2961_s0 = sld [smem:[#allocation5 + $0x43]] }
  0x56   : > { %1245 = vrot.lane.b32.xlu1 %v1244_v52, %s4216_s4  ;;  %1126 = vrot.lane.b32.xlu0 %v1125_v55, %s4216_s4 }
  0x57   : > { %896 = vrot.lane.b32.xlu2 %v895_v58, %s4214_s5 }
  0x5e   : > { %1135 = vrot.lane.b32.xlu1 %v1134_v61, %s4214_s5  ;;  %1016 = vrot.lane.b32.xlu0 %v1015_v1, %s4214_s5  ;;  %v1190_v61 = vmul.f32 %v1189_v56, %v3372_v0 }
  0x5f   : > { %1254 = vrot.lane.b32.xlu2 %v1253_v4, %s4214_s5 }
  0x66   : > { %1032 = vrot.lane.b32.xlu1 %v1031_v7, %s4216_s4  ;;  %912 = vrot.lane.b32.xlu0 %v911_v10, %s4216_s4 }
  0x67   : > { %1151 = vrot.lane.b32.xlu2 %v1150_v13, %s4216_s4 }
  0x6e   : > { %921 = vrot.lane.b32.xlu1 %v920_v16, %s4214_s5  ;;  %1270 = vrot.lane.b32.xlu0 %v1269_v19, %s4216_s4  ;;  %v1090_v19 = vstv %s2925_s22  ;;  %s2900_s22 = sld [smem:[#allocation5 + $0x9]] }
  0x6f   : > { %1041 = vrot.lane.b32.xlu2 %v1040_v22, %s4214_s5  ;;  %v1071_v22 = vmul.f32 %v1070_v18, %v3372_v0 }
  0x76   : > { %1279 = vrot.lane.b32.xlu1 %v1278_v24, %s4214_s5  ;;  %1160 = vrot.lane.b32.xlu0 %v1159_v25, %s4214_s5  ;;  %v1091_v25 = vmul.f32 %v1090_v19, %v3372_v0 }
  0x77   : > { %933 = vrot.lane.b32.xlu2 %v931_v29, %s4216_s4  ;;  %v971_v29 = vstv %s2909_s1  ;;  %s3506_s1 = sld [smem:[#allocation5 + $0x36]] }
  0x78   : > { %v972_v34 = vmul.f32 %v971_v29, %v3372_v0  ;;  %v3541_v29 = vld [vmem:[%s4198_s9 + $0x10] sm:$0xff] }
  0x7e   : > { %1172 = vrot.lane.b32.xlu1 %v1170_v31, %s4216_s4  ;;  %1053 = vrot.lane.b32.xlu0 %v1051_v32, %s4216_s4  ;;  %v1093_v31 = vrot.slane %v1091_v25, 2 }
  0x7f   : > { %1291 = vrot.lane.b32.xlu2 %v1289_v35, %s4216_s4  ;;  %v1115_v35 = vstv %s2928_s28  ;;  %s3512_s28 = sld [smem:[#allocation5 + $0x1b]] }
  0x80   : > { %v1116_v42 = vmul.f32 %v1115_v35, %v3372_v0  ;;  %v3552_v35 = vld [vmem:[%s4198_s9 + $0x8] sm:$0xff]  ;;  %s3554_s4 = sld [smem:[#allocation7 + $0x2]] }
  0x81   : > { %v847_v40 = vpop.permute.xlu2 %846 }
  0x86   : > { %1061 = vrot.lane.b32.xlu1 %v1059_v37, %s4214_s5  ;;  %941 = vrot.lane.b32.xlu0 %v939_v38, %s4214_s5 }
  0x87   : > { %1180 = vrot.lane.b32.xlu2 %v1178_v41, %s4214_s5  ;;  %v974_v41 = vrot.slane %v972_v34, 2  ;;  %v1428_v34 = vld [vmem:[%s4197_s8] sm:$0xff] }
  0x89   : > { %v3456_v44 = vpop.permute.xlu2 %966 }
  0x8e   : > { %1299 = vrot.lane.b32.xlu0 %v1297_v43, %s4214_s5  ;;  %v996_v43 = vstv %s2912_s29  ;;  %s3517_s29 = sld [smem:[#allocation5 + $0xc]] }
  0x8f   : > { %v997_v49 = vmul.f32 %v996_v43, %v3372_v0  ;;  %s3565_s5 = sld [smem:[#allocation5 + $0x39]] }
  0x91   : > { %v863_v47 = vpop.permute.xlu2 %862  ;;  %v999_v56 = vrot.slane %v997_v49, 4 }
  0x98   : > { %v1078_v50 = vpop.permute.xlu1 %1077  ;;  %v839_v51 = vpop.permute.xlu0 %838 }
  0x99   : > { %v841_v52 = vadd.f32 %v839_v51, %v832_v48  ;;  %v1221_v55 = vpop.permute.xlu2 %1220  ;;  %v1080_v26 = vadd.f32 %v1078_v50, %v1071_v22  ;;  %v1118_v50 = vrot.slane %v1116_v42, 4  ;;  %v1140_v51 = vstv %s2931_s30  ;;  %s4220_s30 = smov 32  }
  0x9b   : > { %v849_v54 = vadd.f32 %v847_v40, %v841_v52 }
  0x9d   : > { %v856_v57 = vadd.f32 %v854_v53, %v849_v54  ;;  %v877_v53 = vmul.f32 %v876_v45, %v3372_v0  ;;  %v926_v45 = vstv %s3517_s29  ;;  %s3585_s29 = sld [smem:[#allocation7]] }
  0x9f   : > { %v3461_v60 = vadd.f32 %v863_v47, %v856_v57 }
  0xa0   : > { %v1197_v58 = vpop.permute.xlu1 %1196  ;;  %v959_v62 = vpop.permute.xlu0 %958 }
  0xa1   : > { %v1199_v1 = vadd.f32 %v1197_v58, %v1190_v61  ;;  %v1111_v2 = vpop.permute.xlu2 %1110  ;;  %v961_v33 = vadd.f32 %v959_v62, %v952_v28  ;;  %v1141_v58 = vmul.f32 %v1140_v51, %v3372_v0  ;;  %v879_v61 = vrot.slane %v877_v53, 4 }
  0xa2   : > { %v1234_v62 = vstv %s2944_s24  ;;  %v1165_v28 = vstv %s3504_s27  ;;  %s2955_s27 = sld [smem:[#allocation5 + $0x3d]] }
  0xa3   : > { %v969_v39 = vadd.f32 %v3456_v44, %v961_v33  ;;  %v1259_v33 = vstv %s3506_s1  ;;  %s4230_s1 = smov 127   ;;  %s2956_s24 = sld [smem:[#allocation5 + $0x3e]] }
  0xa5   : > { %v976_v47 = vadd.f32 %v974_v41, %v969_v39  ;;  %v1166_v39 = vmul.f32 %v1165_v28, %v3438_v27  ;;  %v1260_v41 = vmul.f32 %v1259_v33, %v3372_v0 }
  0xa8   : > { %v1205_v4 = vpop.permute.xlu1 %1204  ;;  %v1086_v6 = vpop.permute.xlu0 %1085 }
  0xa9   : > { %v1207_v5 = vadd.f32 %v1205_v4, %v1199_v1  ;;  %v3467_v9 = vpop.permute.xlu2 %1007  ;;  %v1088_v30 = vadd.f32 %v1086_v6, %v1080_v26  ;;  %v1021_v1 = vstv %s3489_s26  ;;  %v1235_v6 = vmul.f32 %v1234_v62, %v3372_v0  ;;  %s2953_s26 = sld [smem:[#allocation7 + $0x3]] }
  0xab   : > { %v1214_v7 = vadd.f32 %v1212_v3, %v1207_v5  ;;  %v1095_v38 = vadd.f32 %v1093_v31, %v1088_v30  ;;  %v1143_v5 = vrot.slane %v1141_v58, 6  ;;  %v1237_v23 = vrot.slane %v1235_v6, 4 }
  0xac   : > { %v3229_v58 = vmov 0.0  }
  0xad   : > { %v3465_v8 = vadd.f32 %v1221_v55, %v1214_v7  ;;  %v901_v7 = vstv %s2900_s22  ;;  %s4231_s22 = smov 126  }
  0xae   : > { %v902_v19 = vmul.f32 %v901_v7, %v3372_v0 }
  0xb0   : > { %v1102_v10 = vpop.permute.xlu1 %1101  ;;  %v983_v11 = vpop.permute.xlu0 %982 }
  0xb1   : > { %v3469_v12 = vpop.permute.xlu2 %896  ;;  %v1104_v40 = vadd.f32 %v1102_v10, %v1095_v38  ;;  %v985_v52 = vadd.f32 %v983_v11, %v976_v47  ;;  %v1046_v47 = vstv %s3512_s28  ;;  %s3577_s28 = sld [smem:[#allocation7 + $0x1]] }
  0xb3   : > { %v1113_v48 = vadd.f32 %v1111_v2, %v1104_v40 }
  0xb5   : > { %v1120_v57 = vadd.f32 %v1118_v50, %v1113_v48  ;;  %v927_v50 = vmul.f32 %v926_v45, %v3438_v27 }
  0xb8   : > { %v992_v13 = vpop.permute.xlu1 %991  ;;  %v872_v14 = vpop.permute.xlu0 %871 }
  0xb9   : > { %v3471_v15 = vpop.permute.xlu2 %1254  ;;  %v994_v55 = vadd.f32 %v992_v13, %v985_v52  ;;  %v874_v59 = vadd.f32 %v872_v14, %v3461_v60  ;;  %v1022_v60 = vmul.f32 %v1021_v1, %v3372_v0  ;;  %v1047_v52 = vmul.f32 %v1046_v47, %v3438_v27 }
  0xbb   : > { %v1001_v3 = vadd.f32 %v999_v56, %v994_v55  ;;  %v881_v11 = vadd.f32 %v879_v61, %v874_v59  ;;  %v1024_v26 = vrot.slane %v1022_v60, 6  ;;  %v1262_v56 = vrot.slane %v1260_v41, 6 }
  0xbc   : > { %v1185_v59 = vstv %s3554_s4  ;;  %s2958_s4 = sld [smem:[#allocation5 + $0x40]] }
  0xbd   : > { %v1010_v13 = vadd.f32 %v3467_v9, %v1001_v3  ;;  %v1430_v9 = vld [vmem:[%s4197_s8 + $0x10] sm:$0x3] }
  0xbe   : > { %2970 = vmatpush.msk.msra.mxu2 %vm1442_vm0, %v1430_v9 }
  0xc0   : > { %v3473_v16 = vpop.permute.xlu1 %887  ;;  %v3475_v17 = vpop.permute.xlu0 %1229 }
  0xc1   : > { %v3479_v21 = vpop.permute.xlu2 %1151  ;;  %v890_v14 = vadd.f32 %v3473_v16, %v881_v11  ;;  %v1232_v22 = vadd.f32 %v3475_v17, %v3465_v8  ;;  %v3529_v16 = vld [vmem:[%s4198_s9 + $0x18] sm:$0xff]  ;;  %v1429_v8 = vld [vmem:[%s4197_s8 + $0x8] sm:$0xff] }
  0xc2   : > { %1489 = vmatpush.msra.mxu3 %v3529_v16  ;;  %1460 = vmatpush.msra.mxu2 %v1429_v8 }
  0xc3   : > { %v899_v30 = vadd.f32 %v3469_v12, %v890_v14  ;;  %v946_v14 = vstv %s3585_s29  ;;  %s2967_s29 = sld [smem:[#allocation5 + $0x49]] }
  0xc4   : > { %1490 = vmatpush.msra.mxu3 %v3541_v29  ;;  %1461 = vmatpush.msra.mxu2 %v1428_v34 }
  0xc6   : > { %1491 = vmatpush.msra.mxu3 %v3552_v35  ;;  %1602 = vmatpush.msrb.mxu2 %v3529_v16 }
  0xc8   : > { %v3477_v20 = vpop.permute.xlu1 %1245  ;;  %v1127_v24 = vpop.permute.xlu0 %1126  ;;  %1603 = vmatpush.msrb.mxu2 %v3541_v29 }
  0xc9   : > { %v3485_v37 = vpop.permute.xlu2 %1041  ;;  %v1129_v63 = vadd.f32 %v1127_v24, %v1120_v57 }
  0xca   : > { %1604 = vmatpush.msrb.mxu2 %v3552_v35 }
  0xd0   : > { %v1136_v32 = vpop.permute.xlu1 %1135  ;;  %v1017_v36 = vpop.permute.xlu0 %1016 }
  0xd1   : > { %v3497_v54 = vpop.permute.xlu2 %933  ;;  %v1138_v4 = vadd.f32 %v1136_v32, %v1129_v63  ;;  %v1019_v25 = vadd.f32 %v1017_v36, %v1010_v13  ;;  %v904_v32 = vrot.slane %v902_v19, 6  ;;  %v1239_v36 = vadd.f32 %v1237_v23, %v1232_v22 }
  0xd3   : > { %v1145_v18 = vadd.f32 %v1143_v5, %v1138_v4  ;;  %v1026_v12 = vadd.f32 %v1024_v26, %v1019_v25  ;;  %v1248_v40 = vadd.f32 %v3477_v20, %v1239_v36  ;;  %v906_v43 = vadd.f32 %v904_v32, %v899_v30  ;;  %v3571_v20 = vld [vmem:[%s4198_s9] sm:$0xff] }
  0xd4   : > { %1492 = vmatpush.msra.mxu3 %v3571_v20  ;;  %1605 = vmatpush.msrb.mxu2 %v3571_v20  ;;  %v1066_v5 = vstv %s3577_s28  ;;  %v1304_v25 = vstv %s2953_s26  ;;  %s2959_s28 = sld [smem:[#allocation5 + $0x41]] }
  0xd5   : > { %v1154_v31 = vadd.f32 %v3479_v21, %v1145_v18  ;;  %1493 = vmatmul.f32.vlgmr.msra.gmra.mxu3 %v3229_v58  ;;  %s2964_s26 = sld [smem:[#allocation5 + $0x46]] }
  0xd6   : > { %1541 = vmatpush.msrb.mxu3 %v3529_v16 }
  0xd8   : > { %v3491_v46 = vpop.permute.xlu1 %1032  ;;  %v3494_v44 = vpop.permute.xlu0 %912  ;;  %1542 = vmatpush.msrb.mxu3 %v3541_v29 }
  0xd9   : > { %v3521_v24 = vpop.permute.xlu2 %1291  ;;  %v1035_v42 = vadd.f32 %v3491_v46, %v1026_v12  ;;  %v915_v48 = vadd.f32 %v3494_v44, %v906_v43  ;;  %v1257_v46 = vadd.f32 %v3471_v15, %v1248_v40 }
  0xda   : > { %1543 = vmatpush.msrb.mxu3 %v3552_v35 }
  0xdb   : > { %v1044_v44 = vadd.f32 %v3485_v37, %v1035_v42  ;;  %v1264_v37 = vadd.f32 %v1262_v56, %v1257_v46  ;;  %v1312_v56 = vstv %s2955_s27  ;;  %s2965_s27 = sld [smem:[#allocation5 + $0x47]] }
  0xdc   : > { %1544 = vmatpush.msrb.mxu3 %v3571_v20 }
  0xdd   : > { %v1048_v63 = vadd.f32 %v1047_v52, %v1044_v44 }
  0xde   : > { %1663 = vmatpush.msra.mxu3 %v3529_v16 }
  0xe0   : > { %v3502_v2 = vpop.permute.xlu1 %921  ;;  %v3509_v10 = vpop.permute.xlu0 %1270  ;;  %1664 = vmatpush.msra.mxu3 %v3541_v29 }
  0xe1   : > { %v1181_v53 = vpop.permute.xlu2 %1180  ;;  %v924_v55 = vadd.f32 %v3502_v2, %v915_v48  ;;  %v1284_v2 = vstv %s3565_s5  ;;  %v1273_v3 = vadd.f32 %v3509_v10, %v1264_v37  ;;  %s2962_s5 = sld [smem:[#allocation5 + $0x44]] }
  0xe2   : > { %v1285_v60 = vmul.f32 %v1284_v2, %v3438_v27  ;;  %1665 = vmatpush.msra.mxu3 %v3552_v35  ;;  %v1344_v2 = vstv %s2959_s28  ;;  %s2963_s28 = sld [smem:[#allocation5 + $0x45]] }
  0xe3   : > { %v928_v62 = vadd.f32 %v927_v50, %v924_v55 }
  0xe4   : > { %1666 = vmatpush.msra.mxu3 %v3571_v20 }
  0xe5   : > { %v936_v7 = vadd.f32 %v3497_v54, %v928_v62 }
  0xe7   : > { %v1369_v37 = vstv %s2962_s5  ;;  %s2954_s5 = sld [smem:[#allocation5 + $0x3c]] }
  0xe8   : > { %v3534_v17 = vpop.permute.xlu1 %1279  ;;  %v1161_v38 = vpop.permute.xlu0 %1160  ;;  %v1370_v62 = vmul.f32 %v1369_v37, %v3372_v0 }
  0xe9   : > { %v1163_v21 = vadd.f32 %v1161_v38, %v1154_v31  ;;  %v1282_v11 = vadd.f32 %v3534_v17, %v1273_v3 }
  0xeb   : > { %v1167_v49 = vadd.f32 %v1166_v39, %v1163_v21  ;;  %v1286_v22 = vadd.f32 %v1285_v60, %v1282_v11 }
  0xed   : > { %v1294_v54 = vadd.f32 %v3521_v24, %v1286_v22  ;;  %v3616_v24 = vld [vmem:[%s4199_s10] ss:$0 sm:$0xff] }
  0xf0   : > { %v1173_v51 = vpop.permute.xlu1 %1172  ;;  %v1054_v15 = vpop.permute.xlu0 %1053 }
  0xf1   : > { %v1175_v57 = vadd.f32 %v1173_v51, %v1167_v49  ;;  %v1056_v4 = vadd.f32 %v1054_v15, %v1048_v63  ;;  %v1313_v15 = vmul.f32 %v1312_v56, %v3372_v0  ;;  %v1372_v63 = vrot.slane %v1370_v62, 4 }
  0xf3   : > { %v1183_v61 = vadd.f32 %v1181_v53, %v1175_v57  ;;  %v1335_v57 = vstv %s2958_s4  ;;  %s2968_s4 = sld [smem:[#allocation5 + $0x4a]] }
  0xf5   : > { %v1186_v1 = vadd.f32 %v1185_v59, %v1183_v61  ;;  %v1336_v59 = vmul.f32 %v1335_v57, %v3372_v0 }
  0xf7   : > { %1187 = vst.msk [vmem:[#allocation2 + $0x4] sm:$0x3] %vm948_vm1, %v1186_v1  ;;  %v1338_v61 = vrot.slane %v1336_v59, 2  ;;  %v1320_v1 = vstv %s2956_s24  ;;  %s2957_s24 = sld [smem:[#allocation5 + $0x3f]] }
  0xf8   : > { %v1062_v6 = vpop.permute.xlu1 %1061  ;;  %v942_v18 = vpop.permute.xlu0 %941  ;;  %v1321_v3 = vmul.f32 %v1320_v1, %v3372_v0 }
  0xf9   : > { %v1064_v13 = vadd.f32 %v1062_v6, %v1056_v4  ;;  %v944_v19 = vadd.f32 %v942_v18, %v936_v7  ;;  %v1407_v6 = vstv %s2967_s29  ;;  %v1385_v18 = vstv %s2964_s26  ;;  %s2969_s29 = sld [smem:[#allocation7 + $0x4]] }
  0xfb   : > { %v1067_v10 = vadd.f32 %v1066_v5, %v1064_v13  ;;  %v947_v23 = vadd.f32 %v946_v14, %v944_v19  ;;  %v1345_v5 = vmul.f32 %v1344_v2, %v3372_v0  ;;  %v1408_v13 = vmul.f32 %v1407_v6, %v3438_v27 }
  0xfc   : > { %v1360_v19 = vstv %s2961_s0  ;;  %s4232_s0 = sld [smem:[#allocation13_spill]] }
  0xfd   : > { %1068 = vst.msk [vmem:[#allocation2 + $0x2] sm:$0x3] %vm948_vm1, %v1067_v10  ;;  %v1347_v14 = vrot.slane %v1345_v5, 2  ;;  %v1386_v10 = vmul.f32 %v1385_v18, %v3372_v0 }
  0xfe   : > { %949 = vst.msk [vmem:[#allocation2] sm:$0x3] %vm948_vm1, %v947_v23 }
  0xff   : > { %v1388_v23 = vrot.slane %v1386_v10, 6 }
 0x100   : > { %v1300_v26 = vpop.permute.xlu0 %1299 }
 0x101   : > { %v1302_v9 = vadd.f32 %v1300_v26, %v1294_v54  ;;  %v1361_v54 = vmul.f32 %v1360_v19, %v3372_v0  ;;  %v1394_v26 = vstv %s2965_s27 }
 0x103   : > { %v1305_v8 = vadd.f32 %v1304_v25, %v1302_v9  ;;  %v1363_v25 = vrot.slane %v1361_v54, 4  ;;  %v1395_v9 = vmul.f32 %v1394_v26, %v3372_v0  ;;  %v3178_v0 = vld [vmem:[%s3369_s3] sm:$0xff]  ;;  %s2966_s3 = sld [smem:[#allocation5 + $0x48]] }
 0x105   : > { %1306 = vst.msk [vmem:[#allocation2 + $0x6] sm:$0x3] %vm948_vm1, %v1305_v8  ;;  %v1397_v8 = vrot.slane %v1395_v9, 6 }
 0x10c   : > { %v1426_v17 = vld [vmem:[#allocation2] sm:$0xff] }
 0x10d   : > { %2971 = vmatmul.msk.f32.vlgmr.msra.gmra.mxu2 %vm1435_vm2, %v1426_v17  ;;  %v1415_v17 = vstv %s2968_s4  ;;  %s4237_s4 = smov 64  }
 0x10e   : > { %1724 = vmatpush.msra.mxu2 %v3529_v16 }
 0x110   : > { %1725 = vmatpush.msra.mxu2 %v3541_v29 }
 0x112   : > { %1726 = vmatpush.msra.mxu2 %v3552_v35 }
 0x114   : > { %1727 = vmatpush.msra.mxu2 %v3571_v20 }
 0x158   : > { %v1494_v30 = vpop.f32.mrf.mxu3 }
 0x190   : > { %v1463_v28 = vpop.f32.mrf.mxu2 }
 0x191   : > { %v3619_v31 = vadd.f32 %v3616_v24, %v1463_v28  ;;  %v1416_v28 = vmul.f32 %v1415_v17, %v3438_v27 }
 0x193   : > { %v1497_v32 = vadd.f32 %v1494_v30, %v3619_v31 }
 0x195   : > { %3044 = vtanh.f32 %v1497_v32  ;;  %v1498_v29 = vsub.f32 0.0, %v1497_v32 }
 0x197   : > { %v1499_v33 = vmul.f32 1.442695, %v1498_v29  ;;  %v1308_v29 = vstv %s2954_s5 }
 0x199   : > { %3046 = vpow2.f32 %v1499_v33  ;;  %v1309_v33 = vmul.f32 %v3178_v0, %v1308_v29 }
 0x19b   : > { %v3045_v16 = vpop.eup %3044 }
 0x19c   : > { %1506 = vrot.lane.b32.xlu1 %v3045_v16, %s4218_s23 }
 0x19f   : > { %v3047_v34 = vpop.eup %3046 }
 0x1a0   : > { %v1501_v35 = vadd.f32 1.0, %v3047_v34  ;;  %v1328_v34 = vstv %s2957_s24 }
 0x1a2   : > { %3048 = vrcp.f32 %v1501_v35 }
 0x1a8   : > { %v3049_v36 = vpop.eup %3048 }
 0x1a9   : > { %v1504_v21 = vmul.f32 0.0, %v3049_v36 }
 0x20e   : > { %v1507_v38 = vpop.permute.xlu1 %1506 }
 0x20f   : > { %v1509_v12 = vmul.f32 %v3049_v36, %v1507_v38  ;;  %v1329_v38 = vmul.f32 %v3178_v0, %v1328_v34 }
 0x211   : > { %1511 = vrot.lane.b32.xlu2 %v1509_v12, %s4220_s30 }
 0x26b   : > { %v1512_v39 = vpop.permute.xlu2 %1511 }
 0x26c   : > { %v1514_v40 = vadd.f32 %v1512_v39, %v1504_v21  ;;  %v1331_v39 = vrot.slane %v1329_v38, 2 }
 0x26e   : > { %3050 = vtanh.f32 %v1514_v40  ;;  %v1560_v4 = vrot.slane %v1514_v40, 6 }
 0x274   : > { %v3051_v41 = vpop.eup %3050 }
 0x275   : > { %1517 = vrot.lane.b32.xlu0 %v3051_v41, %s4218_s23 }
 0x2e7   : > { %v1518_v42 = vpop.permute.xlu0 %1517 }
 0x2e8   : > { %v1520_v43 = vmul.f32 %v3049_v36, %v1518_v42 }
 0x2ea   : > { %1522 = vrot.lane.b32.xlu1 %v1520_v43, %s4220_s30 }
 0x2f2   : > { %1315 = vrot.lane.b32.xlu1 %v1313_v15, %s4230_s1 }
 0x2fa   : > { %1339 = vrot.lane.b32.xlu1 %v1338_v61, %s4230_s1  ;;  %v1403_v61 = vstv %s2966_s3  ;;  %s4233_s3 = sshll.u32 %s4241_s25, 4 }
 0x2fb   : > { %v1404_v62 = vmul.f32 %v1403_v61, %v3438_v27  ;;  %v1769_v61 = vld [vmem:[%s4200_s11 + $0x18] sm:$0xff] }
 0x302   : > { %1373 = vrot.lane.b32.xlu1 %v1372_v63, %s4231_s22 }
 0x30a   : > { %1410 = vrot.lane.b32.xlu1 %v1408_v13, %s4230_s1 }
 0x35c   : > { %v1523_v45 = vpop.permute.xlu1 %1522 }
 0x35d   : > { %1526 = vst.msk [vmem:[#allocation3] sm:$0x3] %vm1525_vm3, %v1523_v45  ;;  %2973 = vmatmul.msk.f32.vlgmr.msrb.gmra.mxu3 %vm1473_vm4, %v1523_v45 }
 0x364   : > { %v1316_v35 = vpop.permute.xlu1 %1315 }
 0x365   : > { %v1318_v36 = vadd.f32 %v1316_v35, %v1309_v33 }
 0x36c   : > { %v1340_v41 = vpop.permute.xlu1 %1339 }
 0x3e0   : > { %v1546_v47 = vpop.f32.mrf.mxu3 }
 0x3e1   : > { %v1550_v48 = vrot.slane %v1546_v47, 6 }
 0x3e3   : > { %v1552_v49 = vadd.f32 %v1550_v48, %v3619_v31 }
 0x3e5   : > { %3052 = vtanh.f32 %v1552_v49  ;;  %v1553_v46 = vsub.f32 0.0, %v1552_v49 }
 0x3e7   : > { %v1554_v50 = vmul.f32 1.442695, %v1553_v46 }
 0x3e9   : > { %3054 = vpow2.f32 %v1554_v50  ;;  %v1378_v50 = vstv %s2963_s28  ;;  %s4235_s28 = sld [smem:[#allocation15_spill]] }
 0x3eb   : > { %v3053_v20 = vpop.eup %3052 }
 0x3ec   : > { %1564 = vrot.lane.b32.xlu2 %v3053_v20, %s4218_s23 }
 0x3ef   : > { %v3055_v51 = vpop.eup %3054 }
 0x3f0   : > { %v1556_v52 = vadd.f32 1.0, %v3055_v51 }
 0x3f2   : > { %3056 = vrcp.f32 %v1556_v52  ;;  %v1379_v52 = vmul.f32 %v3178_v0, %v1378_v50  ;;  %v712_v50 = vld [vmem:[%s4232_s0 + $0x30] sm:$0xff] }
 0x3f4   : > { %1323 = vrot.lane.b32.xlu2 %v1321_v3, %s4231_s22  ;;  %v1423_v3 = vstv %s2969_s29 }
 0x3f8   : > { %v3057_v53 = vpop.eup %3056 }
 0x3f9   : > { %v1562_v7 = vmul.f32 %v3057_v53, %v1560_v4 }
 0x3fc   : > { %1348 = vrot.lane.b32.xlu2 %v1347_v14, %s4231_s22 }
 0x404   : > { %1389 = vrot.lane.b32.xlu2 %v1388_v23, %s4230_s1 }
 0x40c   : > { %1418 = vrot.lane.b32.xlu2 %v1416_v28, %s4231_s22 }
 0x446   : > { %v1565_v44 = vpop.permute.xlu2 %1564 }
 0x447   : > { %v1567_v55 = vmul.f32 %v3057_v53, %v1565_v44 }
 0x449   : > { %1569 = vrot.lane.b32.xlu0 %v1567_v55, %s4220_s30  ;;  %v1381_v55 = vrot.slane %v1379_v52, 6  ;;  %v710_v52 = vld [vmem:[%s4232_s0 + $0x20] sm:$0xff] }
 0x44e   : > { %v1324_v12 = vpop.permute.xlu2 %1323 }
 0x44f   : > { %v1326_v21 = vadd.f32 %v1324_v12, %v1318_v36 }
 0x451   : > { %v1333_v40 = vadd.f32 %v1331_v39, %v1326_v21 }
 0x453   : > { %v1342_v43 = vadd.f32 %v1340_v41, %v1333_v40 }
 0x456   : > { %v1349_v47 = vpop.permute.xlu2 %1348 }
 0x457   : > { %v1351_v48 = vadd.f32 %v1349_v47, %v1342_v43 }
 0x45e   : > { %v1390_v57 = vpop.permute.xlu2 %1389 }
 0x466   : > { %v1419_v4 = vpop.permute.xlu2 %1418 }
 0x4bb   : > { %v1570_v11 = vpop.permute.xlu0 %1569 }
 0x4bc   : > { %v3640_v60 = vadd.f32 %v1570_v11, %v1562_v7 }
 0x4be   : > { %3058 = vtanh.f32 %v3640_v60 }
 0x4c4   : > { %v3059_v22 = vpop.eup %3058 }
 0x4c5   : > { %1575 = vrot.lane.b32.xlu0 %v3059_v22, %s4218_s23 }
 0x4cd   : > { %1364 = vrot.lane.b32.xlu0 %v1363_v25, %s4230_s1  ;;  %s2960_s1 = sld [smem:[#allocation5 + $0x42]] }
 0x4d3   : > { %v1353_v42 = vstv %s2960_s1 }
 0x4d4   : > { %v1354_v45 = vmul.f32 %v3178_v0, %v1353_v42 }
 0x4d5   : > { %1398 = vrot.lane.b32.xlu0 %v1397_v8, %s4231_s22  ;;  %v1621_v8 = vrot.slane %v3640_v60, 6  ;;  %s4234_s22 = sld [smem:[#allocation11_spill]] }
 0x4d6   : > { %v1356_v49 = vrot.slane %v1354_v45, 4 }
 0x4d8   : > { %v1358_v20 = vadd.f32 %v1356_v49, %v1351_v48 }
 0x4db   : > { %s692_s27 = scalar_lea.vmem %s4234_s22, %s4233_s3  ;;  %s4239_s22 = sld [smem:[#allocation16_spill]] }
 0x537   : > { %v1576_v30 = vpop.permute.xlu0 %1575 }
 0x538   : > { %v3655_v32 = vmul.f32 %v3057_v53, %v1576_v30  ;;  %v1374_v53 = vpop.permute.xlu1 %1373 }
 0x53a   : > { %v1585_v16 = vrot.slane %v3655_v32, 2 }
 0x53c   : > { %1586 = vrot.lane.b32.xlu0 %v1585_v16, %s4220_s30 }
 0x53f   : > { %v1365_v46 = vpop.permute.xlu0 %1364 }
 0x540   : > { %v1367_v51 = vadd.f32 %v1365_v46, %v1358_v20  ;;  %v1411_v1 = vpop.permute.xlu1 %1410  ;;  %v713_v46 = vld [vmem:[%s4232_s0 + $0x38] sm:$0xff] }
 0x541   : > { %733 = vmatpush.msra.mxu0 %v713_v46 }
 0x542   : > { %v1376_v44 = vadd.f32 %v1374_v53, %v1367_v51  ;;  %v711_v51 = vld [vmem:[%s4232_s0 + $0x28] sm:$0xff]  ;;  %v3700_v53 = vld [vmem:[%s4201_s12 + $0x18] sm:$0xff] }
 0x543   : > { %734 = vmatpush.msra.mxu0 %v712_v50  ;;  %1819 = vmatpush.msrb.mxu3 %v3700_v53 }
 0x544   : > { %v1383_v56 = vadd.f32 %v1381_v55, %v1376_v44  ;;  %v3705_v44 = vld [vmem:[%s4201_s12 + $0x10] sm:$0xff]  ;;  %v709_v55 = vld [vmem:[%s4232_s0 + $0x18] sm:$0xff] }
 0x545   : > { %735 = vmatpush.msra.mxu0 %v711_v51  ;;  %1820 = vmatpush.msrb.mxu3 %v3705_v44 }
 0x546   : > { %v1392_v15 = vadd.f32 %v1390_v57, %v1383_v56  ;;  %v708_v56 = vld [vmem:[%s4232_s0 + $0x10] sm:$0xff]  ;;  %v707_v57 = vld [vmem:[%s4232_s0 + $0x8] sm:$0xff] }
 0x547   : > { %v1399_v59 = vpop.permute.xlu0 %1398  ;;  %736 = vmatpush.msra.mxu0 %v710_v52 }
 0x548   : > { %v1401_v37 = vadd.f32 %v1399_v59, %v1392_v15  ;;  %v706_v15 = vld [vmem:[%s4232_s0] sm:$0xff] }
 0x549   : > { %737 = vmatpush.msra.mxu0 %v709_v55  ;;  %v702_v59 = vld [vmem:[%s692_s27] sm:$0xff] }
 0x54a   : > { %v1405_v63 = vadd.f32 %v1404_v62, %v1401_v37  ;;  %v1768_v37 = vld [vmem:[%s4200_s11 + $0x10] sm:$0xff]  ;;  %v703_v62 = vld [vmem:[%s692_s27 + $0x8] sm:$0x3]  ;;  %s4238_s27 = smov 32  }
 0x54b   : > { %738 = vmatpush.msra.mxu0 %v708_v56 }
 0x54c   : > { %v1413_v2 = vadd.f32 %v1411_v1, %v1405_v63 }
 0x54d   : > { %739 = vmatpush.msra.mxu0 %v707_v57 }
 0x54e   : > { %v1421_v5 = vadd.f32 %v1419_v4, %v1413_v2  ;;  %v1767_v2 = vld [vmem:[%s4200_s11 + $0x8] sm:$0xff]  ;;  %v3749_v4 = vld [vmem:[%s4201_s12] sm:$0xff] }
 0x54f   : > { %740 = vmatpush.msra.mxu0 %v706_v15 }
 0x550   : > { %v1424_v6 = vadd.f32 %v1423_v3, %v1421_v5  ;;  %2888 = vmatmul.msk.f32.vlgmr.msra.gmra.mxu0 %vm718_vm7, %v702_v59  ;;  %v3744_v3 = vld [vmem:[%s4201_s12 + $0x8] sm:$0xff]  ;;  %v1766_v5 = vld [vmem:[%s4200_s11] sm:$0xff] }
 0x551   : > { %1792 = vmatpush.msrb.mxu0 %v1769_v61  ;;  %1821 = vmatpush.msrb.mxu3 %v3744_v3 }
 0x552   : > { %1425 = vst.msk [vmem:[#allocation2 + $0x8] sm:$0x3] %vm948_vm1, %v1424_v6  ;;  %v777_v6 = vld [vmem:[%s4235_s28 + $0x58] sm:$0xff] }
 0x553   : > { %1793 = vmatpush.msrb.mxu0 %v1768_v37  ;;  %1822 = vmatpush.msrb.mxu3 %v3749_v4 }
 0x554   : > { %793 = vmatpush.msra.mxu1 %v777_v6 }
 0x555   : > { %1794 = vmatpush.msrb.mxu0 %v1767_v2 }
 0x557   : > { %1795 = vmatpush.msrb.mxu0 %v1766_v5 }
 0x558   : > { %2889 = vmatmul.msk.f32.gmra.mxu0 %vm718_vm7, %v703_v62 }
 0x559   : > { %v1427_v7 = vld [vmem:[#allocation2 + $0x8] sm:$0x3] }
 0x55a   : > { %2972 = vmatmul.msk.f32.gmra.mxu2 %vm1435_vm2, %v1427_v7  ;;  %v776_v7 = vld [vmem:[%s4235_s28 + $0x50] sm:$0xff] }
 0x55b   : > { %794 = vmatpush.msra.mxu1 %v776_v7 }
 0x5ae   : > { %v1587_v11 = vpop.permute.xlu0 %1586 }
 0x5af   : > { %2974 = vmatmul.msk.f32.vlgmr.msrb.gmra.mxu2 %vm1473_vm4, %v1587_v11  ;;  %v775_v11 = vld [vmem:[%s4235_s28 + $0x48] sm:$0xff] }
 0x5b0   : > { %1870 = vmatpush.msrb.mxu2 %v3700_v53  ;;  %795 = vmatpush.msra.mxu1 %v775_v11 }
 0x5b2   : > { %1871 = vmatpush.msrb.mxu2 %v3705_v44 }
 0x5b4   : > { %1872 = vmatpush.msrb.mxu2 %v3744_v3 }
 0x5b6   : > { %1873 = vmatpush.msrb.mxu2 %v3749_v4 }
 0x5dd   : > { %v3664_v13 = vpop.f32.mrf.mxu2 }
 0x632   : > { %v1607_v14 = vpop.f32.mrf.mxu2 }
 0x633   : > { %v1611_v27 = vrot.slane %v1607_v14, 4  ;;  %v774_v14 = vld [vmem:[%s4235_s28 + $0x40] sm:$0xff] }
 0x634   : > { %796 = vmatpush.msra.mxu1 %v774_v14 }
 0x635   : > { %v1613_v18 = vadd.f32 %v1611_v27, %v3619_v31  ;;  %v773_v27 = vld [vmem:[%s4235_s28 + $0x38] sm:$0xff] }
 0x636   : > { %797 = vmatpush.msra.mxu1 %v773_v27 }
 0x637   : > { %3060 = vtanh.f32 %v1613_v18  ;;  %v1614_v19 = vsub.f32 0.0, %v1613_v18  ;;  %v772_v18 = vld [vmem:[%s4235_s28 + $0x30] sm:$0xff] }
 0x638   : > { %798 = vmatpush.msra.mxu1 %v772_v18 }
 0x639   : > { %v1615_v22 = vmul.f32 1.442695, %v1614_v19  ;;  %v770_v19 = vld [vmem:[%s4235_s28 + $0x20] sm:$0xff] }
 0x63b   : > { %3062 = vpow2.f32 %v1615_v22  ;;  %v769_v22 = vld [vmem:[%s4235_s28 + $0x18] sm:$0xff] }
 0x63d   : > { %v3061_v10 = vpop.eup %3060 }
 0x63e   : > { %1625 = vrot.lane.b32.xlu1 %v3061_v10, %s4218_s23  ;;  %v771_v10 = vld [vmem:[%s4235_s28 + $0x28] sm:$0xff] }
 0x63f   : > { %799 = vmatpush.msra.mxu1 %v771_v10 }
 0x641   : > { %v3063_v23 = vpop.eup %3062  ;;  %800 = vmatpush.msra.mxu1 %v770_v19 }
 0x642   : > { %v1617_v54 = vadd.f32 1.0, %v3063_v23 }
 0x643   : > { %801 = vmatpush.msra.mxu1 %v769_v22 }
 0x644   : > { %3064 = vrcp.f32 %v1617_v54  ;;  %v768_v54 = vld [vmem:[%s4235_s28 + $0x10] sm:$0xff] }
 0x645   : > { %802 = vmatpush.msra.mxu1 %v768_v54 }
 0x64a   : > { %v3065_v25 = vpop.eup %3064 }
 0x64b   : > { %v1623_v17 = vmul.f32 %v3065_v25, %v1621_v8  ;;  %v766_v8 = vld [vmem:[%s4235_s28] sm:$0xff] }
 0x6b0   : > { %v1626_v26 = vpop.permute.xlu1 %1625 }
 0x6b1   : > { %v1628_v9 = vmul.f32 %v3065_v25, %v1626_v26  ;;  %v767_v26 = vld [vmem:[%s4235_s28 + $0x8] sm:$0xff] }
 0x6b2   : > { %803 = vmatpush.msra.mxu1 %v767_v26 }
 0x6b3   : > { %1630 = vrot.lane.b32.xlu2 %v1628_v9, %s4220_s30 }
 0x6b4   : > { %804 = vmatpush.msra.mxu1 %v766_v8 }
 0x70d   : > { %v1631_v28 = vpop.permute.xlu2 %1630 }
 0x70e   : > { %v1633_v30 = vadd.f32 %v1631_v28, %v1623_v17 }
 0x710   : > { %3066 = vtanh.f32 %v1633_v30  ;;  %v1682_v45 = vrot.slane %v1633_v30, 6 }
 0x716   : > { %v3067_v16 = vpop.eup %3066 }
 0x717   : > { %1636 = vrot.lane.b32.xlu0 %v3067_v16, %s4218_s23 }
 0x789   : > { %v1637_v29 = vpop.permute.xlu0 %1636 }
 0x78a   : > { %v1639_v0 = vmul.f32 %v3065_v25, %v1637_v29  ;;  %v742_v25 = vpop.f32.mrf.mxu0 }
 0x78c   : > { %v1646_v33 = vrot.slane %v1639_v0, 4 }
 0x78e   : > { %1647 = vrot.lane.b32.xlu1 %v1646_v33, %s4220_s30 }
 0x792   : > { %v745_v29 = vpop.f32.mrf.mxu0 }
 0x800   : > { %v1648_v34 = vpop.permute.xlu1 %1647 }
 0x801   : > { %2975 = vmatmul.msk.f32.vlgmr.msra.gmra.mxu3 %vm1473_vm4, %v1648_v34 }
 0x802   : > { %1990 = vmatpush.msra.mxu3 %v3700_v53 }
 0x804   : > { %1991 = vmatpush.msra.mxu3 %v3705_v44 }
 0x806   : > { %1992 = vmatpush.msra.mxu3 %v3744_v3 }
 0x808   : > { %1993 = vmatpush.msra.mxu3 %v3749_v4 }
 0x809   : > { %1823 = vmatmul.f32.vlgmr.msrb.gmra.mxu3 %v3229_v58 }
 0x884   : > { %v1668_v35 = vpop.f32.mrf.mxu3 }
 0x885   : > { %v1672_v36 = vrot.slane %v1668_v35, 2 }
 0x887   : > { %v1674_v38 = vadd.f32 %v1672_v36, %v3619_v31 }
 0x889   : > { %3068 = vtanh.f32 %v1674_v38  ;;  %v1675_v12 = vsub.f32 0.0, %v1674_v38 }
 0x88b   : > { %v1676_v21 = vmul.f32 1.442695, %v1675_v12 }
 0x88d   : > { %3070 = vpow2.f32 %v1676_v21 }
 0x88f   : > { %v3069_v60 = vpop.eup %3068 }
 0x890   : > { %1686 = vrot.lane.b32.xlu2 %v3069_v60, %s4218_s23 }
 0x893   : > { %v3071_v39 = vpop.eup %3070 }
 0x894   : > { %v1678_v40 = vadd.f32 1.0, %v3071_v39 }
 0x896   : > { %3072 = vrcp.f32 %v1678_v40 }
 0x898   : > { %1580 = vrot.lane.b32.xlu2 %v3655_v32, %s4220_s30 }
 0x89c   : > { %v3073_v41 = vpop.eup %3072 }
 0x89d   : > { %v1684_v47 = vmul.f32 %v3073_v41, %v1682_v45 }
 0x8ea   : > { %v1687_v42 = vpop.permute.xlu2 %1686 }
 0x8eb   : > { %v1689_v43 = vmul.f32 %v3073_v41, %v1687_v42 }
 0x8ed   : > { %1691 = vrot.lane.b32.xlu0 %v1689_v43, %s4220_s30 }
 0x8f2   : > { %v1581_v31 = vpop.permute.xlu2 %1580 }
 0x8f3   : > { %1584 = vst.msk [vmem:[#allocation3] sm:$0xc] %vm1583_vm5, %v1581_v31 }
 0x8f5   : > { %1641 = vrot.lane.b32.xlu0 %v1639_v0, %s4220_s30 }
 0x95f   : > { %v1692_v32 = vpop.permute.xlu0 %1691 }
 0x960   : > { %v3680_v48 = vadd.f32 %v1692_v32, %v1684_v47  ;;  %v3807_v32 = vld [vmem:[%s4202_s13] ss:$0 sm:$0xff] }
 0x962   : > { %3074 = vtanh.f32 %v3680_v48 }
 0x967   : > { %v1642_v49 = vpop.permute.xlu0 %1641 }
 0x968   : > { %v3075_v20 = vpop.eup %3074  ;;  %1645 = vst.msk [vmem:[#allocation3] sm:$0x30] %vm1644_vm6, %v1642_v49 }
 0x969   : > { %1697 = vrot.lane.b32.xlu1 %v3075_v20, %s4218_s23  ;;  %v1824_v20 = vpop.f32.mrf.mxu3 }
 0x9db   : > { %v1698_v63 = vpop.permute.xlu1 %1697 }
 0x9dc   : > { %v3734_v1 = vmul.f32 %v3073_v41, %v1698_v63 }
 0x9de   : > { %1702 = vrot.lane.b32.xlu1 %v3734_v1, %s4220_s30  ;;  %s4236_s30 = sld [smem:[#allocation14_spill]]  ;;  %v1707_v52 = vrot.slane %v3734_v1, 6 }
 0x9e4   : > { %v3039_v23 = vld [vmem:[%s4236_s30] ss:$0 sm:$0xff] }
 0x9e5   : > { %v743_v9 = vadd.f32 %v3039_v23, %v742_v25  ;;  %v746_v33 = vadd.f32 %v3039_v23, %v745_v29 }
 0x9e7   : > { %v748_v17 = vmul.f32 %v743_v9, %v743_v9  ;;  %v749_v34 = vmul.f32 %v746_v33, %v746_v33 }
 0x9e9   : > { %v750_v30 = vmul.f32 %v748_v17, %v743_v9  ;;  %v751_v38 = vmul.f32 %v749_v34, %v746_v33 }
 0x9eb   : > { %v752_v16 = vmul.f32 0.044715, %v750_v30  ;;  %v753_v60 = vmul.f32 0.044715, %v751_v38 }
 0x9ed   : > { %v754_v0 = vadd.f32 %v752_v16, %v743_v9  ;;  %v755_v12 = vadd.f32 %v753_v60, %v746_v33 }
 0x9ef   : > { %v756_v35 = vmul.f32 0.7978846, %v754_v0  ;;  %v757_v39 = vmul.f32 0.7978846, %v755_v12 }
 0x9f1   : > { %3076 = vtanh.f32 %v756_v35 }
 0x9f2   : > { %3078 = vtanh.f32 %v757_v39 }
 0x9f7   : > { %v3077_v21 = vpop.eup %3076 }
 0x9f8   : > { %v760_v40 = vadd.f32 1.0, %v3077_v21  ;;  %v3079_v43 = vpop.eup %3078  ;;  %v1467_v21 = vadd.f32 %v3616_v24, %v3664_v13 }
 0x9f9   : > { %v761_v31 = vadd.f32 1.0, %v3079_v43 }
 0x9fa   : > { %v762_v41 = vmul.f32 0.5, %v760_v40 }
 0x9fb   : > { %v763_v45 = vmul.f32 0.5, %v761_v31 }
 0x9fc   : > { %v764_v42 = vmul.f32 %v762_v41, %v743_v9 }
 0x9fd   : > { %v765_v47 = vmul.f32 %v763_v45, %v746_v33 }
 0x9fe   : > { %2890 = vmatmul.msk.f32.vlgmr.msra.gmra.mxu1 %vm782_vm9, %v764_v42 }
 0xa06   : > { %2891 = vmatmul.msk.f32.gmra.mxu1 %vm782_vm9, %v765_v47 }
 0xa50   : > { %v1703_v28 = vpop.permute.xlu1 %1702 }
 0xa51   : > { %1706 = vst.msk [vmem:[#allocation3] sm:$0xc0] %vm1705_vm8, %v1703_v28 }
 0xa58   : > { %v1764_v36 = vld [vmem:[#allocation3] sm:$0xff] }
 0xa59   : > { %2977 = vmatmul.msk.f32.vlgmr.msrb.gmra.mxu0 %vm1473_vm4, %v1764_v36 }
 0xad6   : > { %v1797_v49 = vpop.f32.mrf.mxu0 }
 0xad7   : > { %v3810_v46 = vadd.f32 %v3807_v32, %v1797_v49 }
 0xad9   : > { %v1827_v50 = vadd.f32 %v1824_v20, %v3810_v46 }
 0xadb   : > { %3080 = vtanh.f32 %v1827_v50  ;;  %v1828_v55 = vsub.f32 0.0, %v1827_v50 }
 0xadd   : > { %v1829_v56 = vmul.f32 1.442695, %v1828_v55 }
 0xadf   : > { %3082 = vpow2.f32 %v1829_v56 }
 0xae1   : > { %v3081_v51 = vpop.eup %3080 }
 0xae2   : > { %1836 = vrot.lane.b32.xlu2 %v3081_v51, %s4237_s4 }
 0xae5   : > { %v3083_v57 = vpop.eup %3082 }
 0xae6   : > { %v1831_v15 = vadd.f32 1.0, %v3083_v57 }
 0xae8   : > { %3084 = vrcp.f32 %v1831_v15 }
 0xaea   : > { %1708 = vrot.lane.b32.xlu2 %v1707_v52, %s4238_s27 }
 0xaee   : > { %v3085_v59 = vpop.eup %3084 }
 0xaef   : > { %v1834_v63 = vmul.f32 0.0, %v3085_v59 }
 0xb3c   : > { %v1837_v61 = vpop.permute.xlu2 %1836 }
 0xb3d   : > { %v1839_v37 = vmul.f32 %v3085_v59, %v1837_v61 }
 0xb3f   : > { %1841 = vrot.lane.b32.xlu0 %v1839_v37, %s4238_s27 }
 0xb44   : > { %v1709_v62 = vpop.permute.xlu2 %1708 }
 0xb45   : > { %2976 = vmatmul.msk.f32.vlgmr.msra.gmra.mxu2 %vm1473_vm4, %v1709_v62 }
 0xb46   : > { %1930 = vmatpush.msra.mxu2 %v3700_v53 }
 0xb48   : > { %1931 = vmatpush.msra.mxu2 %v3705_v44 }
 0xb4a   : > { %1932 = vmatpush.msra.mxu2 %v3744_v3 }
 0xb4c   : > { %1933 = vmatpush.msra.mxu2 %v3749_v4 }
 0xbb1   : > { %v1842_v1 = vpop.permute.xlu0 %1841 }
 0xbb2   : > { %v1844_v2 = vadd.f32 %v1842_v1, %v1834_v63  ;;  %v1740_v1 = vrot.slane %v3680_v48, 6 }
 0xbb4   : > { %3086 = vtanh.f32 %v1844_v2 }
 0xbba   : > { %v3087_v5 = vpop.eup %3086 }
 0xbbb   : > { %1847 = vrot.lane.b32.xlu1 %v3087_v5, %s4237_s4 }
 0xbc8   : > { %v1729_v14 = vpop.f32.mrf.mxu2 }
 0xbc9   : > { %v1732_v40 = vadd.f32 %v1729_v14, %v1467_v21 }
 0xbcb   : > { %v1733_v50 = vsub.f32 0.0, %v1732_v40 }
 0xbcd   : > { %v1734_v24 = vmul.f32 1.442695, %v1733_v50 }
 0xc2d   : > { %v1848_v6 = vpop.permute.xlu1 %1847 }
 0xc2e   : > { %v1850_v7 = vmul.f32 %v3085_v59, %v1848_v6 }
 0xc30   : > { %1852 = vrot.lane.b32.xlu0 %v1850_v7, %s4238_s27 }
 0xca2   : > { %v1853_v11 = vpop.permute.xlu0 %1852 }
 0xca3   : > { %1855 = vst.msk [vmem:[#allocation4] sm:$0x3] %vm1525_vm3, %v1853_v11  ;;  %2979 = vmatmul.msk.f32.vlgmr.msrb.gmra.mxu2 %vm1473_vm4, %v1853_v11 }
 0xca4   : > { %2050 = vmatpush.msrb.mxu2 %v3700_v53 }
 0xca6   : > { %2051 = vmatpush.msrb.mxu2 %v3705_v44 }
 0xca8   : > { %2052 = vmatpush.msrb.mxu2 %v3744_v3 }
 0xcaa   : > { %2053 = vmatpush.msrb.mxu2 %v3749_v4  ;;  %v1889_v4 = vrot.slane %v1844_v2, 6 }
 0xd26   : > { %v1875_v27 = vpop.f32.mrf.mxu2 }
 0xd27   : > { %v1879_v18 = vrot.slane %v1875_v27, 6 }
 0xd29   : > { %v1881_v10 = vadd.f32 %v1879_v18, %v3810_v46 }
 0xd2b   : > { %3088 = vtanh.f32 %v1881_v10  ;;  %v1882_v22 = vsub.f32 0.0, %v1881_v10 }
 0xd2d   : > { %v1883_v23 = vmul.f32 1.442695, %v1882_v22 }
 0xd2f   : > { %3090 = vpow2.f32 %v1883_v23 }
 0xd31   : > { %v3089_v19 = vpop.eup %3088 }
 0xd32   : > { %1893 = vrot.lane.b32.xlu1 %v3089_v19, %s4237_s4 }
 0xd35   : > { %v3091_v54 = vpop.eup %3090 }
 0xd36   : > { %v1885_v53 = vadd.f32 1.0, %v3091_v54 }
 0xd38   : > { %3092 = vrcp.f32 %v1885_v53 }
 0xd3e   : > { %v3093_v44 = vpop.eup %3092 }
 0xd3f   : > { %v1891_v26 = vmul.f32 %v3093_v44, %v1889_v4 }
 0xda4   : > { %v1894_v25 = vpop.permute.xlu1 %1893 }
 0xda5   : > { %v1896_v3 = vmul.f32 %v3093_v44, %v1894_v25 }
 0xda7   : > { %1898 = vrot.lane.b32.xlu2 %v1896_v3, %s4238_s27 }
 0xe01   : > { %v1899_v9 = vpop.permute.xlu2 %1898 }
 0xe02   : > { %v1901_v8 = vadd.f32 %v1899_v9, %v1891_v26 }
 0xe04   : > { %3094 = vtanh.f32 %v1901_v8  ;;  %v1949_v31 = vrot.slane %v1901_v8, 6 }
 0xe0a   : > { %v3095_v17 = vpop.eup %3094 }
 0xe0b   : > { %1904 = vrot.lane.b32.xlu0 %v3095_v17, %s4237_s4 }
 0xe7d   : > { %v1905_v28 = vpop.permute.xlu0 %1904 }
 0xe7e   : > { %v3834_v30 = vmul.f32 %v3093_v44, %v1905_v28 }
 0xe80   : > { %v1913_v16 = vrot.slane %v3834_v30, 2 }
 0xe82   : > { %1914 = vrot.lane.b32.xlu1 %v1913_v16, %s4238_s27 }
 0xef4   : > { %v1915_v29 = vpop.permute.xlu1 %1914 }
 0xef5   : > { %2980 = vmatmul.msk.f32.vlgmr.msra.gmra.mxu2 %vm1473_vm4, %v1915_v29 }
 0xf78   : > { %v1935_v0 = vpop.f32.mrf.mxu2 }
 0xf79   : > { %v1939_v33 = vrot.slane %v1935_v0, 4 }
 0xf7b   : > { %v1941_v34 = vadd.f32 %v1939_v33, %v3810_v46 }
 0xf7d   : > { %3096 = vtanh.f32 %v1941_v34  ;;  %v1942_v36 = vsub.f32 0.0, %v1941_v34 }
 0xf7f   : > { %v1943_v38 = vmul.f32 1.442695, %v1942_v36 }
 0xf81   : > { %3098 = vpow2.f32 %v1943_v38 }
 0xf83   : > { %v3097_v35 = vpop.eup %3096 }
 0xf84   : > { %1953 = vrot.lane.b32.xlu2 %v3097_v35, %s4237_s4 }
 0xf87   : > { %v3099_v60 = vpop.eup %3098 }
 0xf88   : > { %v1945_v12 = vadd.f32 1.0, %v3099_v60 }
 0xf8a   : > { %3100 = vrcp.f32 %v1945_v12 }
 0xf8b   : > { %3102 = vtanh.f32 %v1732_v40 }
 0xf90   : > { %v3101_v39 = vpop.eup %3100 }
 0xf91   : > { %v3103_v43 = vpop.eup %3102  ;;  %v1951_v45 = vmul.f32 %v3101_v39, %v1949_v31 }
 0xfde   : > { %v1954_v41 = vpop.permute.xlu2 %1953 }
 0xfdf   : > { %v1956_v42 = vmul.f32 %v3101_v39, %v1954_v41 }
 0xfe1   : > { %1958 = vrot.lane.b32.xlu0 %v1956_v42, %s4238_s27 }
 0xfe9   : > { %1744 = vrot.lane.b32.xlu0 %v3103_v43, %s4237_s4 }
0x1053   : > { %v1959_v47 = vpop.permute.xlu0 %1958 }
0x1054   : > { %v1961_v49 = vadd.f32 %v1959_v47, %v1951_v45  ;;  %v2095_v45 = vld [vmem:[%s4203_s14 + $0x18] sm:$0xff]  ;;  %v2094_v47 = vld [vmem:[%s4203_s14 + $0x10] sm:$0xff] }
0x1055   : > { %2118 = vmatpush.msra.mxu0 %v2095_v45 }
0x1056   : > { %3104 = vtanh.f32 %v1961_v49  ;;  %v2009_v54 = vrot.slane %v1961_v49, 6  ;;  %v2093_v49 = vld [vmem:[%s4203_s14 + $0x8] sm:$0xff] }
0x1057   : > { %3106 = vpow2.f32 %v1734_v24  ;;  %2119 = vmatpush.msra.mxu0 %v2094_v47 }
0x1059   : > { %2120 = vmatpush.msra.mxu0 %v2093_v49 }
0x105b   : > { %v1745_v57 = vpop.permute.xlu0 %1744 }
0x105c   : > { %v3105_v20 = vpop.eup %3104 }
0x105d   : > { %1964 = vrot.lane.b32.xlu1 %v3105_v20, %s4237_s4  ;;  %v3107_v13 = vpop.eup %3106  ;;  %v2092_v20 = vld [vmem:[%s4203_s14] sm:$0xff] }
0x105e   : > { %v1736_v51 = vadd.f32 1.0, %v3107_v13  ;;  %2121 = vmatpush.msra.mxu0 %v2092_v20 }
0x1060   : > { %3108 = vrcp.f32 %v1736_v51 }
0x1066   : > { %v3109_v15 = vpop.eup %3108 }
0x1067   : > { %v1747_v59 = vmul.f32 %v3109_v15, %v1745_v57  ;;  %v1742_v5 = vmul.f32 %v3109_v15, %v1740_v1  ;;  %v2129_v57 = vld [vmem:[%s4204_s15] sm:$0xff] }
0x10cf   : > { %v1965_v52 = vpop.permute.xlu1 %1964 }
0x10d0   : > { %v3846_v55 = vmul.f32 %v3101_v39, %v1965_v52  ;;  %v2132_v52 = vld [vmem:[%s4204_s15 + $0x18] sm:$0xff] }
0x10d1   : > { %2145 = vmatpush.msrb.mxu0 %v2132_v52  ;;  %2194 = vmatpush.msrb.mxu3 %v2132_v52 }
0x10d2   : > { %v1973_v56 = vrot.slane %v3846_v55, 4  ;;  %2250 = vmatpush.msra.mxu2 %v2132_v52  ;;  %2306 = vmatpush.msrb.mxu1 %v2132_v52 }
0x10d4   : > { %1974 = vrot.lane.b32.xlu2 %v1973_v56, %s4238_s27  ;;  %v2130_v56 = vld [vmem:[%s4204_s15 + $0x8] sm:$0xff] }
0x10dc   : > { %1749 = vrot.lane.b32.xlu2 %v1747_v59, %s4238_s27 }
0x112e   : > { %v1975_v61 = vpop.permute.xlu2 %1974 }
0x112f   : > { %2981 = vmatmul.msk.f32.vlgmr.msra.gmra.mxu3 %vm1473_vm4, %v1975_v61 }
0x1136   : > { %v1750_v2 = vpop.permute.xlu2 %1749 }
0x1137   : > { %v1752_v6 = vadd.f32 %v1750_v2, %v1742_v5 }
0x11b2   : > { %v1995_v37 = vpop.f32.mrf.mxu3 }
0x11b3   : > { %v1999_v62 = vrot.slane %v1995_v37, 2 }
0x11b5   : > { %v2001_v63 = vadd.f32 %v1999_v62, %v3810_v46  ;;  %v3909_v62 = vld [vmem:[%s4205_s16] ss:$0 sm:$0xff] }
0x11b7   : > { %3110 = vtanh.f32 %v2001_v63  ;;  %v2002_v14 = vsub.f32 0.0, %v2001_v63 }
0x11b8   : > { %3112 = vtanh.f32 %v1752_v6 }
0x11b9   : > { %v2003_v27 = vmul.f32 1.442695, %v2002_v14 }
0x11bb   : > { %3114 = vpow2.f32 %v2003_v27 }
0x11bd   : > { %v3111_v7 = vpop.eup %3110 }
0x11be   : > { %2013 = vrot.lane.b32.xlu1 %v3111_v7, %s4237_s4  ;;  %v3113_v11 = vpop.eup %3112 }
0x11c1   : > { %v3115_v18 = vpop.eup %3114 }
0x11c2   : > { %v2005_v10 = vadd.f32 1.0, %v3115_v18 }
0x11c4   : > { %3116 = vrcp.f32 %v2005_v10 }
0x11c6   : > { %1755 = vrot.lane.b32.xlu1 %v3113_v11, %s4237_s4 }
0x11ca   : > { %v3117_v46 = vpop.eup %3116 }
0x11cb   : > { %v2011_v53 = vmul.f32 %v3117_v46, %v2009_v54  ;;  %v2400_v54 = vld [vmem:[%s4206_s17 + $0x18] sm:$0xff] }
0x1230   : > { %v2014_v19 = vpop.permute.xlu1 %2013 }
0x1231   : > { %v2016_v48 = vmul.f32 %v3117_v46, %v2014_v19 }
0x1233   : > { %2018 = vrot.lane.b32.xlu0 %v2016_v48, %s4238_s27 }
0x1238   : > { %v1756_v22 = vpop.permute.xlu1 %1755 }
0x1239   : > { %v1758_v23 = vmul.f32 %v3109_v15, %v1756_v22  ;;  %v2404_v22 = vld [vmem:[%s4206_s17 + $0x38] sm:$0xff] }
0x123b   : > { %1760 = vrot.lane.b32.xlu0 %v1758_v23, %s4238_s27  ;;  %v2402_v23 = vld [vmem:[%s4206_s17 + $0x28] sm:$0xff] }
0x12a5   : > { %v2019_v44 = vpop.permute.xlu0 %2018 }
0x12a6   : > { %v2021_v25 = vadd.f32 %v2019_v44, %v2011_v53 }
0x12a8   : > { %3118 = vtanh.f32 %v2021_v25  ;;  %v2066_v40 = vrot.slane %v2021_v25, 6  ;;  %v3931_v25 = vld [vmem:[%s4239_s22] ss:$0 sm:$0xff] }
0x12ad   : > { %v1761_v3 = vpop.permute.xlu0 %1760 }
0x12ae   : > { %v3119_v4 = vpop.eup %3118  ;;  %1763 = vst.msk [vmem:[#allocation3 + $0x8] sm:$0x3] %vm1525_vm3, %v1761_v3  ;;  %v806_v3 = vpop.f32.mrf.mxu1 }
0x12af   : > { %2024 = vrot.lane.b32.xlu2 %v3119_v4, %s4237_s4  ;;  %v807_v4 = vadd.f32 %v3931_v25, %v806_v3 }
0x12b5   : > { %v1765_v26 = vld [vmem:[#allocation3 + $0x8] sm:$0x3] }
0x12b6   : > { %2978 = vmatmul.msk.f32.gmra.mxu0 %vm1473_vm4, %v1765_v26  ;;  %v812_v26 = vmul.f32 %v807_v4, %v807_v4 }
0x1309   : > { %v2025_v9 = vpop.permute.xlu2 %2024 }
0x130a   : > { %v2027_v8 = vmul.f32 %v3117_v46, %v2025_v9  ;;  %v814_v9 = vmul.f32 %v812_v26, %v807_v4 }
0x130c   : > { %v2033_v17 = vrot.slane %v2027_v8, 6 }
0x130e   : > { %2034 = vrot.lane.b32.xlu1 %v2033_v17, %s4238_s27  ;;  %v816_v17 = vmul.f32 0.044715, %v814_v9 }
0x1333   : > { %v1800_v16 = vpop.f32.mrf.mxu0 }
0x1334   : > { %v1801_v29 = vadd.f32 %v3807_v32, %v1800_v16 }
0x1380   : > { %v2035_v28 = vpop.permute.xlu1 %2034 }
0x1381   : > { %2982 = vmatmul.msk.f32.vlgmr.msrb.gmra.mxu2 %vm1473_vm4, %v2035_v28  ;;  %v818_v28 = vadd.f32 %v816_v17, %v807_v4 }
0x1383   : > { %v820_v16 = vmul.f32 0.7978846, %v818_v28 }
0x1404   : > { %v2055_v0 = vpop.f32.mrf.mxu2 }
0x1405   : > { %v2058_v33 = vadd.f32 %v2055_v0, %v1801_v29 }
0x1407   : > { %3120 = vtanh.f32 %v2058_v33  ;;  %v2059_v35 = vsub.f32 0.0, %v2058_v33 }
0x1409   : > { %v2060_v36 = vmul.f32 1.442695, %v2059_v35 }
0x140b   : > { %3122 = vpow2.f32 %v2060_v36 }
0x140d   : > { %v3121_v34 = vpop.eup %3120 }
0x140e   : > { %2070 = vrot.lane.b32.xlu2 %v3121_v34, %s4237_s4 }
0x1411   : > { %v3123_v38 = vpop.eup %3122 }
0x1412   : > { %v2062_v60 = vadd.f32 1.0, %v3123_v38 }
0x1414   : > { %3124 = vrcp.f32 %v2062_v60 }
0x1416   : > { %1909 = vrot.lane.b32.xlu2 %v3834_v30, %s4238_s27 }
0x141a   : > { %v3125_v12 = vpop.eup %3124 }
0x141b   : > { %v2068_v41 = vmul.f32 %v3125_v12, %v2066_v40 }
0x1468   : > { %v2071_v21 = vpop.permute.xlu2 %2070 }
0x1469   : > { %v2073_v39 = vmul.f32 %v3125_v12, %v2071_v21 }
0x146b   : > { %2075 = vrot.lane.b32.xlu0 %v2073_v39, %s4238_s27 }
0x1470   : > { %v1910_v32 = vpop.permute.xlu2 %1909 }
0x1471   : > { %1912 = vst.msk [vmem:[#allocation4] sm:$0xc] %vm1583_vm5, %v1910_v32 }
0x1473   : > { %1969 = vrot.lane.b32.xlu0 %v3846_v55, %s4238_s27  ;;  %v2131_v55 = vld [vmem:[%s4204_s15 + $0x10] sm:$0xff] }
0x1474   : > { %2146 = vmatpush.msrb.mxu0 %v2131_v55  ;;  %2195 = vmatpush.msrb.mxu3 %v2131_v55 }
0x1475   : > { %2251 = vmatpush.msra.mxu2 %v2131_v55  ;;  %2307 = vmatpush.msrb.mxu1 %v2131_v55 }
0x1476   : > { %2147 = vmatpush.msrb.mxu0 %v2130_v56  ;;  %2196 = vmatpush.msrb.mxu3 %v2130_v56 }
0x1477   : > { %2252 = vmatpush.msra.mxu2 %v2130_v56  ;;  %2308 = vmatpush.msrb.mxu1 %v2130_v56 }
0x1478   : > { %2148 = vmatpush.msrb.mxu0 %v2129_v57  ;;  %2197 = vmatpush.msrb.mxu3 %v2129_v57 }
0x1479   : > { %2253 = vmatpush.msra.mxu2 %v2129_v57  ;;  %2309 = vmatpush.msrb.mxu1 %v2129_v57 }
0x147a   : > { %2362 = vmatpush.msra.mxu3 %v2132_v52  ;;  %v2401_v52 = vld [vmem:[%s4206_s17 + $0x20] sm:$0xff] }
0x147c   : > { %2363 = vmatpush.msra.mxu3 %v2131_v55  ;;  %v2399_v55 = vld [vmem:[%s4206_s17 + $0x10] sm:$0xff] }
0x147e   : > { %2364 = vmatpush.msra.mxu3 %v2130_v56  ;;  %v2397_v56 = vld [vmem:[%s4206_s17] sm:$0xff] }
0x1480   : > { %2365 = vmatpush.msra.mxu3 %v2129_v57 }
0x14dd   : > { %v2076_v30 = vpop.permute.xlu0 %2075 }
0x14de   : > { %v2078_v42 = vadd.f32 %v2076_v30, %v2068_v41 }
0x14e0   : > { %3126 = vtanh.f32 %v2078_v42 }
0x14e5   : > { %v1970_v43 = vpop.permute.xlu0 %1969 }
0x14e6   : > { %v3127_v31 = vpop.eup %3126  ;;  %1972 = vst.msk [vmem:[#allocation4] sm:$0x30] %vm1644_vm6, %v1970_v43 }
0x14e7   : > { %2081 = vrot.lane.b32.xlu1 %v3127_v31, %s4237_s4 }
0x14ef   : > { %2029 = vrot.lane.b32.xlu1 %v2027_v8, %s4238_s27  ;;  %v2398_v8 = vld [vmem:[%s4206_s17 + $0x8] sm:$0xff] }
0x1559   : > { %v2082_v50 = vpop.permute.xlu1 %2081 }
0x155a   : > { %v2084_v24 = vmul.f32 %v3125_v12, %v2082_v50 }
0x155c   : > { %2086 = vrot.lane.b32.xlu2 %v2084_v24, %s4238_s27 }
0x1561   : > { %v2030_v13 = vpop.permute.xlu1 %2029 }
0x1562   : > { %2032 = vst.msk [vmem:[#allocation4] sm:$0xc0] %vm1705_vm8, %v2030_v13 }
0x1569   : > { %v2090_v51 = vld [vmem:[#allocation4] sm:$0xff] }
0x156a   : > { %2983 = vmatmul.msk.f32.vlgmr.msra.gmra.mxu0 %vm1473_vm4, %v2090_v51  ;;  %v2403_v51 = vld [vmem:[%s4206_s17 + $0x30] sm:$0xff] }
0x156b   : > { %2482 = vmatpush.msra.mxu0 %v2404_v22  ;;  %2462 = vmatpush.msrb.mxu2 %v2403_v51 }
0x156d   : > { %2483 = vmatpush.msra.mxu0 %v2402_v23  ;;  %2463 = vmatpush.msrb.mxu2 %v2401_v52 }
0x156f   : > { %2484 = vmatpush.msra.mxu0 %v2400_v54  ;;  %2464 = vmatpush.msrb.mxu2 %v2399_v55 }
0x1571   : > { %2485 = vmatpush.msra.mxu0 %v2398_v8  ;;  %2465 = vmatpush.msrb.mxu2 %v2397_v56 }
0x15b6   : > { %v2087_v15 = vpop.permute.xlu2 %2086 }
0x15b7   : > { %2089 = vst.msk [vmem:[#allocation4 + $0x8] sm:$0x3] %vm1525_vm3, %v2087_v15 }
0x15be   : > { %v2091_v59 = vld [vmem:[#allocation4 + $0x8] sm:$0x3] }
0x15bf   : > { %2984 = vmatmul.msk.f32.gmra.mxu0 %vm1473_vm4, %v2091_v59 }
0x15c7   : > { %2149 = vmatmul.f32.vlgmr.msrb.gmra.mxu0 %v3229_v58 }
0x15e7   : > { %v2123_v61 = vpop.f32.mrf.mxu0 }
0x15e8   : > { %v3912_v63 = vadd.f32 %v3909_v62, %v2123_v61 }
0x163c   : > { %v3904_v37 = vpop.f32.mrf.mxu0 }
0x1644   : > { %v2150_v1 = vpop.f32.mrf.mxu0 }
0x1645   : > { %v2153_v2 = vadd.f32 %v2150_v1, %v3912_v63 }
0x1647   : > { %3128 = vtanh.f32 %v2153_v2  ;;  %v2154_v6 = vsub.f32 0.0, %v2153_v2 }
0x1649   : > { %v2155_v58 = vmul.f32 1.442695, %v2154_v6 }
0x164b   : > { %3130 = vpow2.f32 %v2155_v58 }
0x164d   : > { %v3129_v5 = vpop.eup %3128 }
0x164e   : > { %2162 = vrot.lane.b32.xlu0 %v3129_v5, %s4237_s4 }
0x1651   : > { %v3131_v7 = vpop.eup %3130 }
0x1652   : > { %v2157_v11 = vadd.f32 1.0, %v3131_v7 }
0x1654   : > { %3132 = vrcp.f32 %v2157_v11 }
0x165a   : > { %v3133_v14 = vpop.eup %3132 }
0x165b   : > { %v2160_v10 = vmul.f32 0.0, %v3133_v14 }
0x16c0   : > { %v2163_v27 = vpop.permute.xlu0 %2162 }
0x16c1   : > { %v2165_v18 = vmul.f32 %v3133_v14, %v2163_v27 }
0x16c3   : > { %2167 = vrot.lane.b32.xlu1 %v2165_v18, %s4238_s27 }
0x1735   : > { %v2168_v46 = vpop.permute.xlu1 %2167 }
0x1736   : > { %v2170_v19 = vadd.f32 %v2168_v46, %v2160_v10 }
0x1738   : > { %3134 = vtanh.f32 %v2170_v19  ;;  %v2213_v31 = vrot.slane %v2170_v19, 6 }
0x1739   : > { %3136 = vtanh.f32 %v820_v16 }
0x173e   : > { %v3135_v48 = vpop.eup %3134 }
0x173f   : > { %2173 = vrot.lane.b32.xlu2 %v3135_v48, %s4237_s4  ;;  %v3137_v29 = vpop.eup %3136 }
0x1740   : > { %v824_v0 = vadd.f32 1.0, %v3137_v29 }
0x1742   : > { %v826_v33 = vmul.f32 0.5, %v824_v0 }
0x1744   : > { %v3937_v34 = vmul.f32 %v826_v33, %v807_v4 }
0x1799   : > { %v2174_v53 = vpop.permute.xlu2 %2173 }
0x179a   : > { %v2176_v44 = vmul.f32 %v3133_v14, %v2174_v53  ;;  %v3973_v53 = vpop.f32.mrf.mxu1 }
0x179c   : > { %2178 = vrot.lane.b32.xlu0 %v2176_v44, %s4238_s27 }
0x180e   : > { %v2179_v35 = vpop.permute.xlu0 %2178 }
0x180f   : > { %v2446_v36 = vadd.f32 %v2179_v35, %v3937_v34  ;;  %2985 = vmatmul.msk.f32.vlgmr.msrb.gmra.mxu3 %vm1473_vm4, %v2179_v35 }
0x1811   : > { %2990 = vmatmul.msk.f32.vlgmr.msra.gmra.mxu0 %vm1473_vm4, %v2446_v36 }
0x1892   : > { %v2199_v38 = vpop.f32.mrf.mxu3 }
0x1893   : > { %v2203_v60 = vrot.slane %v2199_v38, 6 }
0x1895   : > { %v2205_v12 = vadd.f32 %v2203_v60, %v3912_v63 }
0x1897   : > { %3138 = vtanh.f32 %v2205_v12  ;;  %v2206_v39 = vsub.f32 0.0, %v2205_v12 }
0x1899   : > { %v2207_v32 = vmul.f32 1.442695, %v2206_v39 }
0x189b   : > { %3140 = vpow2.f32 %v2207_v32  ;;  %v2127_v32 = vadd.f32 %v3909_v62, %v3904_v37  ;;  %v2409_v37 = vld [vmem:[%s4206_s17 + $0x60] sm:$0xff]  ;;  %v2410_v62 = vld [vmem:[%s4206_s17 + $0x68] sm:$0xff] }
0x189d   : > { %v3139_v21 = vpop.eup %3138 }
0x189e   : > { %2217 = vrot.lane.b32.xlu1 %v3139_v21, %s4237_s4 }
0x18a1   : > { %v3141_v40 = vpop.eup %3140 }
0x18a2   : > { %v2209_v41 = vadd.f32 1.0, %v3141_v40 }
0x18a4   : > { %3142 = vrcp.f32 %v2209_v41 }
0x18aa   : > { %v3143_v30 = vpop.eup %3142 }
0x18ab   : > { %v2215_v45 = vmul.f32 %v3143_v30, %v2213_v31 }
0x1910   : > { %v2218_v42 = vpop.permute.xlu1 %2217 }
0x1911   : > { %v2220_v43 = vmul.f32 %v3143_v30, %v2218_v42  ;;  %v2411_v42 = vld [vmem:[%s4206_s17 + $0x70] sm:$0xff] }
0x1912   : > { %2512 = vmatpush.msra.mxu1 %v2411_v42 }
0x1913   : > { %2222 = vrot.lane.b32.xlu2 %v2220_v43, %s4238_s27  ;;  %v2412_v43 = vld [vmem:[%s4206_s17 + $0x78] sm:$0xff] }
0x1914   : > { %2532 = vmatpush.msrb.mxu3 %v2412_v43  ;;  %2513 = vmatpush.msra.mxu1 %v2409_v37 }
0x1916   : > { %2533 = vmatpush.msrb.mxu3 %v2410_v62  ;;  %v2725_v62 = vld [vmem:[%s4208_s19 + $0x78] sm:$0xff] }
0x196d   : > { %v2223_v47 = vpop.permute.xlu2 %2222 }
0x196e   : > { %v2225_v49 = vadd.f32 %v2223_v47, %v2215_v45  ;;  %v2407_v47 = vld [vmem:[%s4206_s17 + $0x50] sm:$0xff] }
0x196f   : > { %2514 = vmatpush.msra.mxu1 %v2407_v47  ;;  %v2722_v47 = vld [vmem:[%s4208_s19 + $0x60] sm:$0xff] }
0x1970   : > { %3144 = vtanh.f32 %v2225_v49  ;;  %v2269_v27 = vrot.slane %v2225_v49, 6  ;;  %v2408_v49 = vld [vmem:[%s4206_s17 + $0x58] sm:$0xff] }
0x1971   : > { %2534 = vmatpush.msrb.mxu3 %v2408_v49  ;;  %v2721_v49 = vld [vmem:[%s4208_s19 + $0x58] sm:$0xff] }
0x1976   : > { %v3145_v20 = vpop.eup %3144 }
0x1977   : > { %2228 = vrot.lane.b32.xlu0 %v3145_v20, %s4237_s4  ;;  %v2405_v20 = vld [vmem:[%s4206_s17 + $0x40] sm:$0xff] }
0x1978   : > { %2515 = vmatpush.msra.mxu1 %v2405_v20  ;;  %v2720_v20 = vld [vmem:[%s4208_s19 + $0x50] sm:$0xff] }
0x19e9   : > { %v2229_v50 = vpop.permute.xlu0 %2228 }
0x19ea   : > { %v3946_v24 = vmul.f32 %v3143_v30, %v2229_v50  ;;  %v2406_v50 = vld [vmem:[%s4206_s17 + $0x48] sm:$0xff] }
0x19eb   : > { %2535 = vmatpush.msrb.mxu3 %v2406_v50  ;;  %v2719_v50 = vld [vmem:[%s4208_s19 + $0x48] sm:$0xff] }
0x19ec   : > { %v2233_v13 = vrot.slane %v3946_v24, 2 }
0x19ee   : > { %2234 = vrot.lane.b32.xlu1 %v2233_v13, %s4238_s27 }
0x1a60   : > { %v2235_v57 = vpop.permute.xlu1 %2234 }
0x1a61   : > { %2986 = vmatmul.msk.f32.vlgmr.msra.gmra.mxu2 %vm1473_vm4, %v2235_v57 }
0x1a69   : > { %2989 = vmatmul.msk.f32.vlgmr.msrb.gmra.mxu2 %vm1473_vm4, %v2446_v36 }
0x1ae4   : > { %v2255_v15 = vpop.f32.mrf.mxu2 }
0x1ae5   : > { %v2259_v59 = vrot.slane %v2255_v15, 4 }
0x1ae7   : > { %v2261_v61 = vadd.f32 %v2259_v59, %v3912_v63  ;;  %v2419_v59 = vld [vmem:[%s4206_s17 + $0xb0] sm:$0xff] }
0x1ae8   : > { %2562 = vmatpush.msra.mxu2 %v2419_v59  ;;  %v2728_v59 = vld [vmem:[%s4208_s19 + $0x90] sm:$0xff] }
0x1ae9   : > { %3146 = vtanh.f32 %v2261_v61  ;;  %v2262_v2 = vsub.f32 0.0, %v2261_v61  ;;  %v2420_v61 = vld [vmem:[%s4206_s17 + $0xb8] sm:$0xff] }
0x1aea   : > { %2582 = vmatpush.msrb.mxu0 %v2420_v61 }
0x1aeb   : > { %v2263_v5 = vmul.f32 1.442695, %v2262_v2  ;;  %v2418_v2 = vld [vmem:[%s4206_s17 + $0xa8] sm:$0xff] }
0x1aec   : > { %2583 = vmatpush.msrb.mxu0 %v2418_v2  ;;  %v2714_v2 = vld [vmem:[%s4208_s19 + $0x20] sm:$0xff] }
0x1aed   : > { %3148 = vpow2.f32 %v2263_v5  ;;  %v2415_v5 = vld [vmem:[%s4206_s17 + $0x90] sm:$0xff] }
0x1aef   : > { %v3147_v1 = vpop.eup %3146 }
0x1af0   : > { %2273 = vrot.lane.b32.xlu2 %v3147_v1, %s4237_s4  ;;  %v2417_v1 = vld [vmem:[%s4206_s17 + $0xa0] sm:$0xff] }
0x1af1   : > { %2563 = vmatpush.msra.mxu2 %v2417_v1  ;;  %v2467_v1 = vpop.f32.mrf.mxu2 }
0x1af3   : > { %v3149_v6 = vpop.eup %3148  ;;  %2564 = vmatpush.msra.mxu2 %v2415_v5  ;;  %v2727_v5 = vld [vmem:[%s4208_s19 + $0x88] sm:$0xff] }
0x1af4   : > { %v2265_v58 = vadd.f32 1.0, %v3149_v6  ;;  %v2416_v6 = vld [vmem:[%s4206_s17 + $0x98] sm:$0xff] }
0x1af5   : > { %2584 = vmatpush.msrb.mxu0 %v2416_v6 }
0x1af6   : > { %3150 = vrcp.f32 %v2265_v58  ;;  %v2413_v58 = vld [vmem:[%s4206_s17 + $0x80] sm:$0xff] }
0x1af7   : > { %2565 = vmatpush.msra.mxu2 %v2413_v58  ;;  %v2713_v58 = vld [vmem:[%s4208_s19 + $0x18] sm:$0xff] }
0x1afc   : > { %v3151_v7 = vpop.eup %3150 }
0x1afd   : > { %v2271_v18 = vmul.f32 %v3151_v7, %v2269_v27 }
0x1b4a   : > { %v2274_v11 = vpop.permute.xlu2 %2273 }
0x1b4b   : > { %v2276_v14 = vmul.f32 %v3151_v7, %v2274_v11 }
0x1b4d   : > { %2278 = vrot.lane.b32.xlu0 %v2276_v14, %s4238_s27 }
0x1bbf   : > { %v2279_v10 = vpop.permute.xlu0 %2278 }
0x1bc0   : > { %v2281_v46 = vadd.f32 %v2279_v10, %v2271_v18 }
0x1bc2   : > { %3152 = vtanh.f32 %v2281_v46  ;;  %v2325_v33 = vrot.slane %v2281_v46, 6 }
0x1bc8   : > { %v3153_v19 = vpop.eup %3152 }
0x1bc9   : > { %2284 = vrot.lane.b32.xlu1 %v3153_v19, %s4237_s4 }
0x1c3b   : > { %v2285_v48 = vpop.permute.xlu1 %2284 }
0x1c3c   : > { %v3968_v22 = vmul.f32 %v3151_v7, %v2285_v48  ;;  %v2414_v7 = vld [vmem:[%s4206_s17 + $0x88] sm:$0xff] }
0x1c3d   : > { %2585 = vmatpush.msrb.mxu0 %v2414_v7  ;;  %v2726_v7 = vld [vmem:[%s4208_s19 + $0x80] sm:$0xff] }
0x1c3e   : > { %v2289_v23 = vrot.slane %v3968_v22, 4 }
0x1c40   : > { %2290 = vrot.lane.b32.xlu2 %v2289_v23, %s4238_s27  ;;  %v2428_v23 = vld [vmem:[%s4206_s17 + $0xf8] sm:$0xff] }
0x1c9a   : > { %v2291_v54 = vpop.permute.xlu2 %2290 }
0x1c9b   : > { %2987 = vmatmul.msk.f32.vlgmr.msrb.gmra.mxu1 %vm1473_vm4, %v2291_v54  ;;  %v2425_v54 = vld [vmem:[%s4206_s17 + $0xe0] sm:$0xff] }
0x1d18   : > { %v2311_v44 = vpop.f32.mrf.mxu1 }
0x1d19   : > { %v2315_v3 = vrot.slane %v2311_v44, 2  ;;  %v2426_v44 = vld [vmem:[%s4206_s17 + $0xe8] sm:$0xff] }
0x1d1b   : > { %v2317_v4 = vadd.f32 %v2315_v3, %v3912_v63  ;;  %v2423_v3 = vld [vmem:[%s4206_s17 + $0xd0] sm:$0xff] }
0x1d1d   : > { %3154 = vtanh.f32 %v2317_v4  ;;  %v2318_v9 = vsub.f32 0.0, %v2317_v4  ;;  %v2424_v4 = vld [vmem:[%s4206_s17 + $0xd8] sm:$0xff] }
0x1d1f   : > { %v2319_v8 = vmul.f32 1.442695, %v2318_v9  ;;  %v2422_v9 = vld [vmem:[%s4206_s17 + $0xc8] sm:$0xff] }
0x1d21   : > { %3156 = vpow2.f32 %v2319_v8  ;;  %v2435_v8 = vld [vmem:[%s4206_s17 + $0x130] sm:$0xff] }
0x1d22   : > { %2662 = vmatpush.msrb.mxu2 %v2435_v8 }
0x1d23   : > { %v3155_v26 = vpop.eup %3154 }
0x1d24   : > { %2329 = vrot.lane.b32.xlu0 %v3155_v26, %s4237_s4  ;;  %v2421_v26 = vld [vmem:[%s4206_s17 + $0xc0] sm:$0xff] }
0x1d27   : > { %v3157_v17 = vpop.eup %3156 }
0x1d28   : > { %v2321_v28 = vadd.f32 1.0, %v3157_v17  ;;  %v2436_v17 = vld [vmem:[%s4206_s17 + $0x138] sm:$0xff] }
0x1d29   : > { %2682 = vmatpush.msra.mxu0 %v2436_v17 }
0x1d2a   : > { %3158 = vrcp.f32 %v2321_v28  ;;  %v2433_v28 = vld [vmem:[%s4206_s17 + $0x120] sm:$0xff] }
0x1d2b   : > { %2663 = vmatpush.msrb.mxu2 %v2433_v28 }
0x1d30   : > { %v3159_v16 = vpop.eup %3158 }
0x1d31   : > { %v2327_v35 = vmul.f32 %v3159_v16, %v2325_v33 }
0x1d96   : > { %v2330_v29 = vpop.permute.xlu0 %2329 }
0x1d97   : > { %v2332_v0 = vmul.f32 %v3159_v16, %v2330_v29  ;;  %v2431_v29 = vld [vmem:[%s4206_s17 + $0x110] sm:$0xff] }
0x1d98   : > { %2664 = vmatpush.msrb.mxu2 %v2431_v29 }
0x1d99   : > { %2334 = vrot.lane.b32.xlu1 %v2332_v0, %s4238_s27 }
0x1e0b   : > { %v2335_v36 = vpop.permute.xlu1 %2334 }
0x1e0c   : > { %v3978_v38 = vadd.f32 %v2335_v36, %v2327_v35 }
0x1e0e   : > { %3160 = vtanh.f32 %v3978_v38  ;;  %v2378_v11 = vrot.slane %v3978_v38, 6 }
0x1e14   : > { %v3161_v63 = vpop.eup %3160 }
0x1e15   : > { %2340 = vrot.lane.b32.xlu2 %v3161_v63, %s4237_s4  ;;  %v810_v63 = vadd.f32 %v3931_v25, %v3973_v53 }
0x1e6f   : > { %v2341_v60 = vpop.permute.xlu2 %2340 }
0x1e70   : > { %v3982_v12 = vmul.f32 %v3159_v16, %v2341_v60  ;;  %v2434_v16 = vld [vmem:[%s4206_s17 + $0x128] sm:$0xff]  ;;  %v813_v60 = vmul.f32 %v810_v63, %v810_v63 }
0x1e71   : > { %2683 = vmatpush.msra.mxu0 %v2434_v16 }
0x1e72   : > { %v2345_v21 = vrot.slane %v3982_v12, 6 }
0x1e74   : > { %2346 = vrot.lane.b32.xlu0 %v2345_v21, %s4238_s27  ;;  %v2432_v21 = vld [vmem:[%s4206_s17 + $0x118] sm:$0xff] }
0x1e75   : > { %2684 = vmatpush.msra.mxu0 %v2432_v21 }
0x1ee6   : > { %v2347_v39 = vpop.permute.xlu0 %2346 }
0x1ee7   : > { %2988 = vmatmul.msk.f32.vlgmr.msra.gmra.mxu3 %vm1473_vm4, %v2347_v39  ;;  %v2429_v39 = vld [vmem:[%s4206_s17 + $0x100] sm:$0xff] }
0x1ee8   : > { %2632 = vmatpush.msra.mxu3 %v2428_v23  ;;  %2665 = vmatpush.msrb.mxu2 %v2429_v39 }
0x1eea   : > { %2633 = vmatpush.msra.mxu3 %v2426_v44 }
0x1eec   : > { %2634 = vmatpush.msra.mxu3 %v2424_v4 }
0x1eee   : > { %2635 = vmatpush.msra.mxu3 %v2422_v9 }
0x1f6a   : > { %v2367_v40 = vpop.f32.mrf.mxu3 }
0x1f6b   : > { %v2370_v41 = vadd.f32 %v2367_v40, %v2127_v32 }
0x1f6d   : > { %3162 = vtanh.f32 %v2370_v41  ;;  %v2371_v31 = vsub.f32 0.0, %v2370_v41 }
0x1f6f   : > { %v2372_v45 = vmul.f32 1.442695, %v2371_v31  ;;  %v2724_v31 = vld [vmem:[%s4208_s19 + $0x70] sm:$0xff] }
0x1f71   : > { %3164 = vpow2.f32 %v2372_v45  ;;  %v2723_v45 = vld [vmem:[%s4208_s19 + $0x68] sm:$0xff] }
0x1f73   : > { %v3163_v30 = vpop.eup %3162 }
0x1f74   : > { %2382 = vrot.lane.b32.xlu1 %v3163_v30, %s4237_s4 }
0x1f7c   : > { %2492 = vrot.lane.b32.xlu1 %v3946_v24, %s4238_s27  ;;  %v3165_v24 = vpop.eup %3164 }
0x1f7d   : > { %v2374_v13 = vadd.f32 1.0, %v3165_v24  ;;  %v2718_v24 = vld [vmem:[%s4208_s19 + $0x40] sm:$0xff] }
0x1f7f   : > { %3166 = vrcp.f32 %v2374_v13  ;;  %v2487_v13 = vpop.f32.mrf.mxu0 }
0x1f85   : > { %v4016_v51 = vpop.eup %3166 }
0x1f86   : > { %v2380_v14 = vmul.f32 %v4016_v51, %v2378_v11 }
0x1fe6   : > { %v2383_v52 = vpop.permute.xlu1 %2382 }
0x1fe7   : > { %v2385_v55 = vmul.f32 %v4016_v51, %v2383_v52  ;;  %v2437_v52 = vld [vmem:[%s4207_s18] sm:$0x3] }
0x1fe8   : > { %v2440_v61 = vperm.slane %v2437_v52, 1 }
0x1fe9   : > { %2387 = vrot.lane.b32.xlu2 %v2385_v55, %s4238_s27  ;;  %v2716_v55 = vld [vmem:[%s4208_s19 + $0x30] sm:$0xff] }
0x1fea   : > { %v2491_v11 = vadd.f32 %v2487_v13, %v2440_v61 }
0x1fee   : > { %v2493_v56 = vpop.permute.xlu1 %2492 }
0x1fef   : > { %v2495_v57 = vadd.f32 %v2493_v56, %v3937_v34  ;;  %v2729_v56 = vld [vmem:[%s4208_s19 + $0x98] sm:$0xff] }
0x1ff1   : > { %v2497_v15 = vrot.slane %v2495_v57, 2  ;;  %2542 = vrot.lane.b32.xlu2 %v3968_v22, %s4238_s27  ;;  %v2427_v22 = vld [vmem:[%s4206_s17 + $0xf0] sm:$0xff] }
0x1ff2   : > { %2612 = vmatpush.msrb.mxu1 %v2427_v22 }
0x1ff3   : > { %2991 = vmatmul.msk.f32.vlgmr.msra.gmra.mxu1 %vm1473_vm4, %v2497_v15  ;;  %2992 = vmatmul.msk.f32.vlgmr.msrb.gmra.mxu3 %vm1473_vm4, %v2497_v15  ;;  %v2715_v15 = vld [vmem:[%s4208_s19 + $0x28] sm:$0xff] }
0x1ff4   : > { %2613 = vmatpush.msrb.mxu1 %v2425_v54  ;;  %2769 = vmatpush.msrb.mxu3 %v2729_v56 }
0x1ff6   : > { %2614 = vmatpush.msrb.mxu1 %v2423_v3  ;;  %2770 = vmatpush.msrb.mxu3 %v2728_v59 }
0x1ff8   : > { %2615 = vmatpush.msrb.mxu1 %v2421_v26  ;;  %2771 = vmatpush.msrb.mxu3 %v2727_v5 }
0x1ffa   : > { %2737 = vmatpush.msra.mxu1 %v2725_v62  ;;  %2772 = vmatpush.msrb.mxu3 %v2726_v7 }
0x1ffc   : > { %2738 = vmatpush.msra.mxu1 %v2724_v31 }
0x1ffe   : > { %2739 = vmatpush.msra.mxu1 %v2723_v45 }
0x2000   : > { %2740 = vmatpush.msra.mxu1 %v2722_v47 }
0x2002   : > { %2741 = vmatpush.msra.mxu1 %v2721_v49 }
0x2004   : > { %2742 = vmatpush.msra.mxu1 %v2720_v20 }
0x2006   : > { %2743 = vmatpush.msra.mxu1 %v2719_v50 }
0x2008   : > { %2744 = vmatpush.msra.mxu1 %v2718_v24 }
0x2043   : > { %v2388_v27 = vpop.permute.xlu2 %2387 }
0x2044   : > { %v2390_v18 = vadd.f32 %v2388_v27, %v2380_v14  ;;  %v2712_v27 = vld [vmem:[%s4208_s19 + $0x10] sm:$0xff] }
0x2046   : > { %3168 = vtanh.f32 %v2390_v18  ;;  %v2711_v18 = vld [vmem:[%s4208_s19 + $0x8] sm:$0xff] }
0x204b   : > { %v2543_v10 = vpop.permute.xlu2 %2542 }
0x204c   : > { %v3169_v46 = vpop.eup %3168  ;;  %v2545_v19 = vadd.f32 %v2543_v10, %v3937_v34  ;;  %v2439_v10 = vperm.slane %v2437_v52, 0 }
0x204d   : > { %2393 = vrot.lane.b32.xlu0 %v3169_v46, %s4237_s4  ;;  %s2887_s4 = sshll.u32 %s4241_s25, 1 }
0x204e   : > { %v2547_v48 = vrot.slane %v2545_v19, 4  ;;  %v2490_v54 = vadd.f32 %v2467_v1, %v2439_v10  ;;  %s701_s1 = scalar_lea.vmem %s4210_s21, %s2887_s4 }
0x2050   : > { %2993 = vmatmul.msk.f32.vlgmr.msra.gmra.mxu2 %vm1473_vm4, %v2547_v48  ;;  %2994 = vmatmul.msk.f32.vlgmr.msrb.gmra.mxu0 %vm1473_vm4, %v2547_v48  ;;  %v2710_v48 = vld [vmem:[%s4208_s19] sm:$0xff] }
0x2055   : > { %2592 = vrot.lane.b32.xlu0 %v3982_v12, %s4238_s27  ;;  %v815_v12 = vmul.f32 %v813_v60, %v810_v63 }
0x2057   : > { %v817_v32 = vmul.f32 0.044715, %v815_v12 }
0x2059   : > { %v819_v40 = vadd.f32 %v817_v32, %v810_v63 }
0x205b   : > { %v821_v25 = vmul.f32 0.7978846, %v819_v40 }
0x205d   : > { %3170 = vtanh.f32 %v821_v25 }
0x2063   : > { %v3171_v53 = vpop.eup %3170 }
0x2064   : > { %v825_v41 = vadd.f32 1.0, %v3171_v53 }
0x2066   : > { %v827_v30 = vmul.f32 0.5, %v825_v41 }
0x2068   : > { %v829_v42 = vmul.f32 %v827_v30, %v810_v63 }
0x2070   : > { %v2517_v14 = vpop.f32.mrf.mxu1 }
0x2071   : > { %v2540_v4 = vadd.f32 %v2517_v14, %v2490_v54 }
0x2076   : > { %v2537_v57 = vpop.f32.mrf.mxu3 }
0x2077   : > { %v2541_v46 = vadd.f32 %v2537_v57, %v2491_v11 }
0x20bf   : > { %v2394_v0 = vpop.permute.xlu0 %2393 }
0x20c0   : > { %v2396_v33 = vmul.f32 %v4016_v51, %v2394_v0  ;;  %v2717_v51 = vld [vmem:[%s4208_s19 + $0x38] sm:$0xff] }
0x20c1   : > { %2745 = vmatpush.msra.mxu1 %v2717_v51 }
0x20c2   : > { %2643 = vrot.lane.b32.xlu1 %v2396_v33, %s4238_s27 }
0x20c3   : > { %2746 = vmatpush.msra.mxu1 %v2716_v55 }
0x20c5   : > { %2747 = vmatpush.msra.mxu1 %v2715_v15 }
0x20c7   : > { %v2593_v35 = vpop.permute.xlu0 %2592  ;;  %2748 = vmatpush.msra.mxu1 %v2714_v2 }
0x20c8   : > { %v2595_v36 = vadd.f32 %v2593_v35, %v3937_v34  ;;  %v2430_v34 = vld [vmem:[%s4206_s17 + $0x108] sm:$0xff] }
0x20c9   : > { %2685 = vmatpush.msra.mxu0 %v2430_v34  ;;  %2749 = vmatpush.msra.mxu1 %v2713_v58 }
0x20ca   : > { %v2597_v38 = vrot.slane %v2595_v36, 6 }
0x20cb   : > { %2750 = vmatpush.msra.mxu1 %v2712_v27 }
0x20cc   : > { %2995 = vmatmul.msk.f32.vlgmr.msrb.gmra.mxu1 %vm1473_vm4, %v2597_v38  ;;  %2996 = vmatmul.msk.f32.vlgmr.msra.gmra.mxu3 %vm1473_vm4, %v2597_v38 }
0x20cd   : > { %v2587_v6 = vpop.f32.mrf.mxu0  ;;  %2751 = vmatpush.msra.mxu1 %v2711_v18 }
0x20ce   : > { %v2591_v22 = vadd.f32 %v2587_v6, %v2541_v46 }
0x20cf   : > { %2752 = vmatpush.msra.mxu1 %v2710_v48 }
0x20d3   : > { %v2567_v23 = vpop.f32.mrf.mxu2 }
0x20d4   : > { %v2590_v8 = vadd.f32 %v2567_v23, %v2540_v4 }
0x2134   : > { %v2644_v43 = vpop.permute.xlu1 %2643 }
0x2135   : > { %v2646_v37 = vadd.f32 %v2644_v43, %v829_v42  ;;  %v3043_v42 = vld [vmem:[%s4209_s20] ss:$0 sm:$0xff] }
0x2137   : > { %2997 = vmatmul.msk.f32.vlgmr.msrb.gmra.mxu2 %vm1473_vm4, %v2646_v37  ;;  %2998 = vmatmul.msk.f32.vlgmr.msra.gmra.mxu0 %vm1473_vm4, %v2646_v37 }
0x2149   : > { %v2617_v9 = vpop.f32.mrf.mxu1 }
0x214a   : > { %v2640_v28 = vadd.f32 %v2617_v9, %v2590_v8 }
0x214f   : > { %v2637_v19 = vpop.f32.mrf.mxu3 }
0x2150   : > { %v2641_v44 = vadd.f32 %v2637_v19, %v2591_v22 }
0x21b4   : > { %v2687_v3 = vpop.f32.mrf.mxu0 }
0x21b5   : > { %v2691_v26 = vadd.f32 %v2687_v3, %v2641_v44 }
0x21b7   : > { %v2693_v17 = vmul.f32 %v2691_v26, %v2691_v26 }
0x21b9   : > { %v2695_v16 = vmul.f32 %v2693_v17, %v2691_v26 }
0x21ba   : > { %v2667_v29 = vpop.f32.mrf.mxu2 }
0x21bb   : > { %v2697_v0 = vmul.f32 0.044715, %v2695_v16  ;;  %v2690_v33 = vadd.f32 %v2667_v29, %v2640_v28 }
0x21bd   : > { %v2699_v35 = vadd.f32 %v2697_v0, %v2691_v26  ;;  %v2692_v36 = vmul.f32 %v2690_v33, %v2690_v33 }
0x21bf   : > { %v2701_v38 = vmul.f32 0.7978846, %v2699_v35  ;;  %v2694_v63 = vmul.f32 %v2692_v36, %v2690_v33 }
0x21c1   : > { %3172 = vtanh.f32 %v2701_v38  ;;  %v2696_v60 = vmul.f32 0.044715, %v2694_v63 }
0x21c3   : > { %v2698_v12 = vadd.f32 %v2696_v60, %v2690_v33 }
0x21c5   : > { %v2700_v21 = vmul.f32 0.7978846, %v2698_v12 }
0x21c7   : > { %v3173_v39 = vpop.eup %3172  ;;  %3174 = vtanh.f32 %v2700_v21 }
0x21c8   : > { %v2705_v34 = vadd.f32 1.0, %v3173_v39 }
0x21ca   : > { %v2707_v32 = vmul.f32 0.5, %v2705_v34 }
0x21cc   : > { %v2709_v40 = vmul.f32 %v2707_v32, %v2691_v26 }
0x21cd   : > { %v3175_v25 = vpop.eup %3174 }
0x21ce   : > { %2999 = vmatmul.msk.f32.vlgmr.msrb.gmra.mxu3 %vm1473_vm4, %v2709_v40  ;;  %v2704_v53 = vadd.f32 1.0, %v3175_v25 }
0x21d0   : > { %v2706_v41 = vmul.f32 0.5, %v2704_v53 }
0x21d2   : > { %v2708_v30 = vmul.f32 %v2706_v41, %v2690_v33 }
0x21d4   : > { %2753 = vmatmul.f32.vlgmr.msra.gmra.mxu1 %v2708_v30 }
0x2251   : > { %v2754_v43 = vpop.f32.mrf.mxu1  ;;  %v2774_v62 = vpop.f32.mrf.mxu3 }
0x2252   : > { %v2755_v37 = vadd.f32 %v3043_v42, %v2754_v43 }
0x2254   : > { %v2775_v31 = vadd.f32 %v2774_v62, %v2755_v37 }
0x2256   : > { %v2777_v45 = vmul.f32 %v2775_v31, %v2775_v31 }
0x2258   : > { %v2778_v47 = vmul.f32 %v2777_v45, %v2775_v31 }
0x225a   : > { %v2779_v49 = vmul.f32 0.044715, %v2778_v47 }
0x225c   : > { %v2780_v20 = vadd.f32 %v2779_v49, %v2775_v31 }
0x225e   : > { %v2781_v50 = vmul.f32 0.7978846, %v2780_v20 }
0x2260   : > { %3176 = vtanh.f32 %v2781_v50 }
0x2266   : > { %v3177_v24 = vpop.eup %3176 }
0x2267   : > { %v2783_v13 = vadd.f32 1.0, %v3177_v24 }
0x2269   : > { %v2784_v51 = vmul.f32 0.5, %v2783_v13 }
0x226b   : > { %v2785_v52 = vmul.f32 %v2784_v51, %v2775_v31 }
0x226d   : > { %2786 = vst.msk [vmem:[%s701_s1] sm:$0x3] %vm1525_vm3, %v2785_v52 }
0x226e PF: > { %s33_s2 = sadd.s32 1, %s3223_s2  }
0x226f   : > { %p30_p7 = scmp.ge.s32.totalorder %s33_s2, 5  }
0x2271   :  { %32 = sbr.rel (!%p30_p7) target bundleno = 9 (0x9), region = 146 }
0x2276   :  { %2806 = vsyncpa [#allocation6], 1 }
0x2277   :  { %2808 = vsyncpa [#allocation6 + $0x1], 1 }
0x2278   :  { %2809 = vsyncpa [#allocation8], 1 }

</bundles_post_ra>
